<compile_context>
chip_gen: v5e
topology: v5e:2x2
jax: 0.10.0
libtpu: 0.0.40
codegen_flags: <defaults>
</compile_context>

<pallas_src>
import functools

import jax
import jax.numpy as jnp
from jax import lax
from jax.experimental import pallas as pl
from jax.experimental.pallas import tpu as pltpu  # noqa: F401  (CompilerParams used at scale)

# ----------------------------- model dimensions -----------------------------
HIDDEN = 32          # phobert hidden_size (synthetic, small)
NUM_HEADS = 2
HEAD_DIM = HIDDEN // NUM_HEADS
FFN = 64
NUM_LAYERS = 4
NUM_LAST_LAYERS = 4
VOCAB = 128          # synthetic vocab (power of two: lane-dense one-hot)
MAX_POS = 64
ASPECT_CATEGORIES = ["FOOD#QUALITY", "SERVICE#GENERAL", "AMBIENCE#GENERAL"]
NUM_ASPECTS = len(ASPECT_CATEGORIES)
NUM_POLARITIES = 4
NUM_OUT = NUM_ASPECTS * NUM_POLARITIES   # 12
LN_EPS = 1e-5


# ------------------------------ helpers --------------------------------------
def _ln(x, g, b):
    mu = jnp.mean(x, axis=-1, keepdims=True)
    var = jnp.mean((x - mu) ** 2, axis=-1, keepdims=True)
    return (x - mu) * lax.rsqrt(var + LN_EPS) * g + b


def _gelu_tanh(x):
    # tanh-approx GELU (EUP-friendly inside Pallas)
    return 0.5 * x * (1.0 + jnp.tanh(0.7978845608028654 * (x + 0.044715 * x * x * x)))


# -------------- fully fused embed + encoder + CLS-concat + head kernel --------
def _fused_kernel(ids_ref, mask_ref,
                  wemb_ref, pos_ref, embg_ref, embb_ref,
                  wq_ref, wk_ref, wv_ref, bq_ref, bk_ref, bv_ref,
                  wo_ref, bo_ref, ln1g_ref, ln1b_ref,
                  w1_ref, b1_ref, w2_ref, b2_ref, ln2g_ref, ln2b_ref,
                  hw_ref, hb_ref,
                  out_ref,
                  *, B, S, H, nh, L, num_last, num_aspects, num_pol):
    hd = H // nh
    scale = hd ** -0.5
    T = B * S

    # ---- embeddings: one-hot gather as an MXU matmul (no dynamic indexing) ----
    onehot = (lax.broadcasted_iota(jnp.int32, (T, VOCAB), 1)
              == ids_ref[...]).astype(jnp.float32)                      # [T, VOCAB]
    emb = jnp.dot(onehot, wemb_ref[...], preferred_element_type=jnp.float32)
    emb = (emb.reshape(B, S, H) + pos_ref[0:S, :][None, :, :]).reshape(T, H)
    x = _ln(emb, embg_ref[...], embb_ref[...])                           # [T, H]

    # ---- additive key-mask bias, built once, tiled over heads ----------------
    bias = (mask_ref[...].astype(jnp.float32) - 1.0) * 1e9               # [B, S]
    bias_hb = jnp.concatenate([bias[:, None, :]] * nh, axis=0)           # [nh*B, 1, S]

    # ---- transformer layers: static in-kernel loop, all weights resident -----
    cls_feats = []
    for l in range(L):
        wq_l, wk_l, wv_l = wq_ref[l], wk_ref[l], wv_ref[l]               # [nh, H, hd]
        bq_l, bk_l, bv_l = bq_ref[l], bk_ref[l], bv_ref[l]               # [nh, 1, hd]
        wo_l, bo_l = wo_ref[l], bo_ref[l]                                # [nh, hd, H], [1, H]

        # per-head projections via head-sliced weights (no lane shuffles on x)
        q_list, k_list, v_list = [], [], []
        for n in range(nh):
            q_list.append(jnp.dot(x, wq_l[n], preferred_element_type=jnp.float32) + bq_l[n])
            k_list.append(jnp.dot(x, wk_l[n], preferred_element_type=jnp.float32) + bk_l[n])
            v_list.append(jnp.dot(x, wv_l[n], preferred_element_type=jnp.float32) + bv_l[n])
        # stack heads into the batch axis -> ONE batched einsum + ONE softmax
        q_h = jnp.stack(q_list, axis=0).reshape(nh * B, S, hd) * scale   # scale folded once
        k_h = jnp.stack(k_list, axis=0).reshape(nh * B, S, hd)
        v_h = jnp.stack(v_list, axis=0).reshape(nh * B, S, hd)

        s = jnp.einsum('bqd,bkd->bqk', q_h, k_h,
                       preferred_element_type=jnp.float32) + bias_hb     # [nh*B, S, S]
        m = jnp.max(s, axis=-1, keepdims=True)
        e = jnp.exp(s - m)
        p = e * pl.reciprocal(jnp.sum(e, axis=-1, keepdims=True), approx=True)  # EUP recip
        ctx = jnp.einsum('bqk,bkd->bqd', p, v_h,
                         preferred_element_type=jnp.float32)             # [nh*B, S, hd]
        ctx = ctx.reshape(nh, T, hd)

        # output projection applied per-head slab and summed (no lane concat)
        attn = bo_l
        for n in range(nh):
            attn = attn + jnp.dot(ctx[n], wo_l[n], preferred_element_type=jnp.float32)

        # residual + LN1, FFN, residual + LN2
        h1 = _ln(x + attn, ln1g_ref[l], ln1b_ref[l])
        f = _gelu_tanh(jnp.dot(h1, w1_ref[l], preferred_element_type=jnp.float32) + b1_ref[l])
        f = jnp.dot(f, w2_ref[l], preferred_element_type=jnp.float32) + b2_ref[l]
        x = _ln(h1 + f, ln2g_ref[l], ln2b_ref[l])

        # collect CLS of the last `num_last` layers (hidden_states[-4:] order)
        if l >= L - num_last:
            cls_feats.append(x.reshape(B, S, H)[:, 0, :])                # [B, H]

    # ---- multitask head: one lane-dense [B, 4H] @ [4H, 12] matmul ------------
    cls_cat = jnp.concatenate(cls_feats, axis=-1)                        # [B, 4H] = [2, 128]
    logits = jnp.dot(cls_cat, hw_ref[...],
                     preferred_element_type=jnp.float32) + hb_ref[...]   # [B, 12]

    # per-aspect softmax (exact division so each aspect's probs sum to 1)
    parts = []
    for a in range(num_aspects):
        lg = logits[:, a * num_pol:(a + 1) * num_pol]
        mm = jnp.max(lg, axis=-1, keepdims=True)
        ee = jnp.exp(lg - mm)
        parts.append(ee / jnp.sum(ee, axis=-1, keepdims=True))
    out_ref[...] = jnp.concatenate(parts, axis=-1)                       # [B, 12], one store


def fused_forward(ids_col, attention_mask, params, *, B, S):
    kernel = functools.partial(
        _fused_kernel, B=B, S=S, H=HIDDEN, nh=NUM_HEADS, L=NUM_LAYERS,
        num_last=NUM_LAST_LAYERS, num_aspects=NUM_ASPECTS, num_pol=NUM_POLARITIES)
    # Single invocation (grid=()): every array is a whole-block VMEM ref.
    return pl.pallas_call(
        kernel,
        out_shape=jax.ShapeDtypeStruct((B, NUM_OUT), jnp.float32),
    )(ids_col, attention_mask,
      params["word_emb"], params["pos_emb"], params["emb_ln_g"], params["emb_ln_b"],
      params["wq"], params["wk"], params["wv"],
      params["bq"], params["bk"], params["bv"],
      params["wo"], params["bo"], params["ln1g"], params["ln1b"],
      params["w1"], params["b1"], params["w2"], params["b2"],
      params["ln2g"], params["ln2b"],
      params["head_w"], params["head_b"])


# ------------------------------ parameter init --------------------------------
def init_params(key):
    ks = jax.random.split(key, 10)

    def nrm(k, shape, scale=0.02):
        return scale * jax.random.normal(k, shape, jnp.float32)

    L, H, nh, hd = NUM_LAYERS, HIDDEN, NUM_HEADS, HEAD_DIM
    return {
        "word_emb": nrm(ks[0], (VOCAB, H)),
        "pos_emb": nrm(ks[1], (MAX_POS, H)),
        "emb_ln_g": jnp.ones((1, H), jnp.float32),
        "emb_ln_b": jnp.zeros((1, H), jnp.float32),
        # per-head weight slabs: q/k/v produced directly in per-head layout
        "wq": nrm(ks[2], (L, nh, H, hd)),
        "wk": nrm(ks[3], (L, nh, H, hd)),
        "wv": nrm(ks[4], (L, nh, H, hd)),
        "bq": jnp.zeros((L, nh, 1, hd), jnp.float32),
        "bk": jnp.zeros((L, nh, 1, hd), jnp.float32),
        "bv": jnp.zeros((L, nh, 1, hd), jnp.float32),
        "wo": nrm(ks[5], (L, nh, hd, H)),
        "bo": jnp.zeros((L, 1, H), jnp.float32),
        "ln1g": jnp.ones((L, 1, H), jnp.float32),
        "ln1b": jnp.zeros((L, 1, H), jnp.float32),
        "w1": nrm(ks[6], (L, H, FFN)),
        "b1": jnp.zeros((L, 1, FFN), jnp.float32),
        "w2": nrm(ks[7], (L, FFN, H)),
        "b2": jnp.zeros((L, 1, H), jnp.float32),
        "ln2g": jnp.ones((L, 1, H), jnp.float32),
        "ln2b": jnp.zeros((L, 1, H), jnp.float32),
        # multitask head over concat of last-4 CLS vectors: one [4H, 12] matrix
        "head_w": nrm(ks[8], (NUM_LAST_LAYERS * H, NUM_OUT)),
        "head_b": jnp.zeros((1, NUM_OUT), jnp.float32),
    }


# ------------------------------ full forward ----------------------------------
def vlsp2018_forward(input_ids, attention_mask, params):
    """Multitask approach: returns softmaxed per-aspect probs [B, num_aspects*4]."""
    B, S = input_ids.shape
    # wrapper only reshapes ids to a [B*S, 1] column (layout the kernel's
    # one-hot gather wants); everything else happens inside the kernel.
    ids_col = input_ids.reshape(B * S, 1).astype(jnp.int32)
    return fused_forward(ids_col, attention_mask.astype(jnp.int32), params, B=B, S=S)


# ----------------------------------- main --------------------------------------
if __name__ == "__main__":
    B, S = 2, 8
    key = jax.random.PRNGKey(0)
    k_ids, k_par = jax.random.split(key)

    input_ids = jax.random.randint(k_ids, (B, S), 0, VOCAB, dtype=jnp.int32)
    attention_mask = jnp.ones((B, S), jnp.int32).at[1, 6:].set(0)  # sample 1 padded

    params = init_params(k_par)

    out = jax.jit(vlsp2018_forward)(input_ids, attention_mask, params)
    out = jax.block_until_ready(out)

    assert out.shape == (B, NUM_OUT), out.shape
    # each aspect's 4-way softmax must sum to 1
    sums = out.reshape(B, NUM_ASPECTS, NUM_POLARITIES).sum(-1)
    assert bool(jnp.allclose(sums, 1.0, atol=1e-3)), sums
    print("KERNEL_OK")
</pallas_src>

<mosaic_0001>
module attributes {stable_mosaic.version = 11 : i64} {
  func.func @_fused_kernel(%arg0: memref<16x1xi32, #tpu.memory_space<vmem>>, %arg1: memref<2x8xi32, #tpu.memory_space<vmem>>, %arg2: memref<128x32xf32, #tpu.memory_space<vmem>>, %arg3: memref<64x32xf32, #tpu.memory_space<vmem>>, %arg4: memref<1x32xf32, #tpu.memory_space<vmem>>, %arg5: memref<1x32xf32, #tpu.memory_space<vmem>>, %arg6: memref<4x2x32x16xf32, #tpu.memory_space<vmem>>, %arg7: memref<4x2x32x16xf32, #tpu.memory_space<vmem>>, %arg8: memref<4x2x32x16xf32, #tpu.memory_space<vmem>>, %arg9: memref<4x2x1x16xf32, #tpu.memory_space<vmem>>, %arg10: memref<4x2x1x16xf32, #tpu.memory_space<vmem>>, %arg11: memref<4x2x1x16xf32, #tpu.memory_space<vmem>>, %arg12: memref<4x2x16x32xf32, #tpu.memory_space<vmem>>, %arg13: memref<4x1x32xf32, #tpu.memory_space<vmem>>, %arg14: memref<4x1x32xf32, #tpu.memory_space<vmem>>, %arg15: memref<4x1x32xf32, #tpu.memory_space<vmem>>, %arg16: memref<4x32x64xf32, #tpu.memory_space<vmem>>, %arg17: memref<4x1x64xf32, #tpu.memory_space<vmem>>, %arg18: memref<4x64x32xf32, #tpu.memory_space<vmem>>, %arg19: memref<4x1x32xf32, #tpu.memory_space<vmem>>, %arg20: memref<4x1x32xf32, #tpu.memory_space<vmem>>, %arg21: memref<4x1x32xf32, #tpu.memory_space<vmem>>, %arg22: memref<128x12xf32, #tpu.memory_space<vmem>>, %arg23: memref<1x12xf32, #tpu.memory_space<vmem>>, %arg24: memref<2x12xf32, #tpu.memory_space<vmem>>) attributes {dimension_semantics = [], scalar_prefetch = 0 : i64, scratch_operands = 0 : i64, tpu.core_type = #tpu.core_type<tc>} {
    %0 = tpu.iota {dimensions = array<i32: 1>} : vector<16x128xi32>
    %c0 = arith.constant 0 : index
    %c0_0 = arith.constant 0 : index
    %1 = vector.load %arg0[%c0, %c0_0] : memref<16x1xi32, #tpu.memory_space<vmem>>, vector<16x1xi32>
    %2 = vector.broadcast %1 : vector<16x1xi32> to vector<16x128xi32>
    %3 = arith.cmpi eq, %0, %2 : vector<16x128xi32>
    %4 = arith.extui %3 : vector<16x128xi1> to vector<16x128xi32>
    %5 = arith.sitofp %4 : vector<16x128xi32> to vector<16x128xf32>
    %c0_1 = arith.constant 0 : index
    %c0_2 = arith.constant 0 : index
    %6 = vector.load %arg2[%c0_1, %c0_2] : memref<128x32xf32, #tpu.memory_space<vmem>>, vector<128x32xf32>
    %cst = arith.constant dense<0.000000e+00> : vector<16x32xf32>
    %7 = tpu.matmul %5, %6, %cst {dimension_numbers = #tpu.dot_dimension_numbers<[1], [0], [0], [1], [0, 0, 1, 1], [], []>} : vector<16x128xf32>, vector<128x32xf32>, vector<16x32xf32> -> vector<16x32xf32>
    %8 = vector.shape_cast %7 : vector<16x32xf32> to vector<2x8x32xf32>
    %c0_3 = arith.constant 0 : index
    %c0_4 = arith.constant 0 : index
    %9 = vector.load %arg3[%c0_3, %c0_4] : memref<64x32xf32, #tpu.memory_space<vmem>>, vector<8x32xf32>
    %10 = vector.shape_cast %9 : vector<8x32xf32> to vector<1x8x32xf32>
    %11 = vector.broadcast %10 : vector<1x8x32xf32> to vector<2x8x32xf32>
    %12 = arith.addf %8, %11 : vector<2x8x32xf32>
    %13 = vector.shape_cast %12 : vector<2x8x32xf32> to vector<16x32xf32>
    %c0_5 = arith.constant 0 : index
    %c0_6 = arith.constant 0 : index
    %14 = vector.load %arg4[%c0_5, %c0_6] : memref<1x32xf32, #tpu.memory_space<vmem>>, vector<1x32xf32>
    %c0_7 = arith.constant 0 : index
    %c0_8 = arith.constant 0 : index
    %15 = vector.load %arg5[%c0_7, %c0_8] : memref<1x32xf32, #tpu.memory_space<vmem>>, vector<1x32xf32>
    %cst_9 = arith.constant dense<0.000000e+00> : vector<16xf32>
    %16 = vector.multi_reduction <add>, %13, %cst_9 [1] : vector<16x32xf32> to vector<16xf32>
    %17 = vector.shape_cast %16 : vector<16xf32> to vector<16x1xf32>
    %cst_10 = arith.constant 3.200000e+01 : f32
    %18 = vector.broadcast %cst_10 : f32 to vector<16x1xf32>
    %19 = arith.divf %17, %18 : vector<16x1xf32>
    %20 = vector.broadcast %19 : vector<16x1xf32> to vector<16x32xf32>
    %21 = arith.subf %13, %20 : vector<16x32xf32>
    %22 = arith.mulf %21, %21 : vector<16x32xf32>
    %cst_11 = arith.constant dense<0.000000e+00> : vector<16xf32>
    %23 = vector.multi_reduction <add>, %22, %cst_11 [1] : vector<16x32xf32> to vector<16xf32>
    %24 = vector.shape_cast %23 : vector<16xf32> to vector<16x1xf32>
    %cst_12 = arith.constant 3.200000e+01 : f32
    %25 = vector.broadcast %cst_12 : f32 to vector<16x1xf32>
    %26 = arith.divf %24, %25 : vector<16x1xf32>
    %27 = vector.broadcast %19 : vector<16x1xf32> to vector<16x32xf32>
    %28 = arith.subf %13, %27 : vector<16x32xf32>
    %cst_13 = arith.constant 9.99999974E-6 : f32
    %29 = vector.broadcast %cst_13 : f32 to vector<16x1xf32>
    %30 = arith.addf %26, %29 : vector<16x1xf32>
    %31 = math.rsqrt %30 : vector<16x1xf32>
    %32 = vector.broadcast %31 : vector<16x1xf32> to vector<16x32xf32>
    %33 = arith.mulf %28, %32 : vector<16x32xf32>
    %34 = vector.broadcast %14 : vector<1x32xf32> to vector<16x32xf32>
    %35 = arith.mulf %33, %34 : vector<16x32xf32>
    %36 = vector.broadcast %15 : vector<1x32xf32> to vector<16x32xf32>
    %37 = arith.addf %35, %36 : vector<16x32xf32>
    %c0_14 = arith.constant 0 : index
    %c0_15 = arith.constant 0 : index
    %38 = vector.load %arg1[%c0_14, %c0_15] : memref<2x8xi32, #tpu.memory_space<vmem>>, vector<2x8xi32>
    %39 = arith.sitofp %38 : vector<2x8xi32> to vector<2x8xf32>
    %cst_16 = arith.constant 1.000000e+00 : f32
    %40 = vector.broadcast %cst_16 : f32 to vector<2x8xf32>
    %41 = arith.subf %39, %40 : vector<2x8xf32>
    %cst_17 = arith.constant 1.000000e+09 : f32
    %42 = vector.broadcast %cst_17 : f32 to vector<2x8xf32>
    %43 = arith.mulf %41, %42 : vector<2x8xf32>
    %44 = vector.shape_cast %43 : vector<2x8xf32> to vector<2x1x8xf32>
    %45 = tpu.concatenate %44, %44 in 0 : vector<2x1x8xf32>, vector<2x1x8xf32> -> vector<4x1x8xf32>
    %c0_18 = arith.constant 0 : index
    %c0_19 = arith.constant 0 : index
    %c0_20 = arith.constant 0 : index
    %c0_21 = arith.constant 0 : index
    %46 = vector.load %arg6[%c0_18, %c0_19, %c0_20, %c0_21] : memref<4x2x32x16xf32, #tpu.memory_space<vmem>>, vector<1x2x32x16xf32>
    %47 = vector.shape_cast %46 : vector<1x2x32x16xf32> to vector<2x32x16xf32>
    %c0_22 = arith.constant 0 : index
    %c0_23 = arith.constant 0 : index
    %c0_24 = arith.constant 0 : index
    %c0_25 = arith.constant 0 : index
    %48 = vector.load %arg7[%c0_22, %c0_23, %c0_24, %c0_25] : memref<4x2x32x16xf32, #tpu.memory_space<vmem>>, vector<1x2x32x16xf32>
    %49 = vector.shape_cast %48 : vector<1x2x32x16xf32> to vector<2x32x16xf32>
    %c0_26 = arith.constant 0 : index
    %c0_27 = arith.constant 0 : index
    %c0_28 = arith.constant 0 : index
    %c0_29 = arith.constant 0 : index
    %50 = vector.load %arg8[%c0_26, %c0_27, %c0_28, %c0_29] : memref<4x2x32x16xf32, #tpu.memory_space<vmem>>, vector<1x2x32x16xf32>
    %51 = vector.shape_cast %50 : vector<1x2x32x16xf32> to vector<2x32x16xf32>
    %c0_30 = arith.constant 0 : index
    %c0_31 = arith.constant 0 : index
    %c0_32 = arith.constant 0 : index
    %c0_33 = arith.constant 0 : index
    %52 = vector.load %arg9[%c0_30, %c0_31, %c0_32, %c0_33] : memref<4x2x1x16xf32, #tpu.memory_space<vmem>>, vector<1x2x1x16xf32>
    %53 = vector.shape_cast %52 : vector<1x2x1x16xf32> to vector<2x1x16xf32>
    %c0_34 = arith.constant 0 : index
    %c0_35 = arith.constant 0 : index
    %c0_36 = arith.constant 0 : index
    %c0_37 = arith.constant 0 : index
    %54 = vector.load %arg10[%c0_34, %c0_35, %c0_36, %c0_37] : memref<4x2x1x16xf32, #tpu.memory_space<vmem>>, vector<1x2x1x16xf32>
    %55 = vector.shape_cast %54 : vector<1x2x1x16xf32> to vector<2x1x16xf32>
    %c0_38 = arith.constant 0 : index
    %c0_39 = arith.constant 0 : index
    %c0_40 = arith.constant 0 : index
    %c0_41 = arith.constant 0 : index
    %56 = vector.load %arg11[%c0_38, %c0_39, %c0_40, %c0_41] : memref<4x2x1x16xf32, #tpu.memory_space<vmem>>, vector<1x2x1x16xf32>
    %57 = vector.shape_cast %56 : vector<1x2x1x16xf32> to vector<2x1x16xf32>
    %c0_42 = arith.constant 0 : index
    %c0_43 = arith.constant 0 : index
    %c0_44 = arith.constant 0 : index
    %c0_45 = arith.constant 0 : index
    %58 = vector.load %arg12[%c0_42, %c0_43, %c0_44, %c0_45] : memref<4x2x16x32xf32, #tpu.memory_space<vmem>>, vector<1x2x16x32xf32>
    %59 = vector.shape_cast %58 : vector<1x2x16x32xf32> to vector<2x16x32xf32>
    %c0_46 = arith.constant 0 : index
    %c0_47 = arith.constant 0 : index
    %c0_48 = arith.constant 0 : index
    %60 = vector.load %arg13[%c0_46, %c0_47, %c0_48] : memref<4x1x32xf32, #tpu.memory_space<vmem>>, vector<1x1x32xf32>
    %61 = vector.shape_cast %60 : vector<1x1x32xf32> to vector<1x32xf32>
    %62 = vector.extract_strided_slice %47 {offsets = [0, 0, 0], sizes = [1, 32, 16], strides = [1, 1, 1]} : vector<2x32x16xf32> to vector<1x32x16xf32>
    %63 = vector.shape_cast %62 : vector<1x32x16xf32> to vector<32x16xf32>
    %cst_49 = arith.constant dense<0.000000e+00> : vector<16x16xf32>
    %64 = tpu.matmul %37, %63, %cst_49 {dimension_numbers = #tpu.dot_dimension_numbers<[1], [0], [0], [1], [0, 0, 1, 1], [], []>} : vector<16x32xf32>, vector<32x16xf32>, vector<16x16xf32> -> vector<16x16xf32>
    %65 = vector.extract_strided_slice %53 {offsets = [0, 0, 0], sizes = [1, 1, 16], strides = [1, 1, 1]} : vector<2x1x16xf32> to vector<1x1x16xf32>
    %66 = vector.shape_cast %65 : vector<1x1x16xf32> to vector<1x16xf32>
    %67 = vector.broadcast %66 : vector<1x16xf32> to vector<16x16xf32>
    %68 = arith.addf %64, %67 : vector<16x16xf32>
    %69 = vector.extract_strided_slice %49 {offsets = [0, 0, 0], sizes = [1, 32, 16], strides = [1, 1, 1]} : vector<2x32x16xf32> to vector<1x32x16xf32>
    %70 = vector.shape_cast %69 : vector<1x32x16xf32> to vector<32x16xf32>
    %cst_50 = arith.constant dense<0.000000e+00> : vector<16x16xf32>
    %71 = tpu.matmul %37, %70, %cst_50 {dimension_numbers = #tpu.dot_dimension_numbers<[1], [0], [0], [1], [0, 0, 1, 1], [], []>} : vector<16x32xf32>, vector<32x16xf32>, vector<16x16xf32> -> vector<16x16xf32>
    %72 = vector.extract_strided_slice %55 {offsets = [0, 0, 0], sizes = [1, 1, 16], strides = [1, 1, 1]} : vector<2x1x16xf32> to vector<1x1x16xf32>
    %73 = vector.shape_cast %72 : vector<1x1x16xf32> to vector<1x16xf32>
    %74 = vector.broadcast %73 : vector<1x16xf32> to vector<16x16xf32>
    %75 = arith.addf %71, %74 : vector<16x16xf32>
    %76 = vector.extract_strided_slice %51 {offsets = [0, 0, 0], sizes = [1, 32, 16], strides = [1, 1, 1]} : vector<2x32x16xf32> to vector<1x32x16xf32>
    %77 = vector.shape_cast %76 : vector<1x32x16xf32> to vector<32x16xf32>
    %cst_51 = arith.constant dense<0.000000e+00> : vector<16x16xf32>
    %78 = tpu.matmul %37, %77, %cst_51 {dimension_numbers = #tpu.dot_dimension_numbers<[1], [0], [0], [1], [0, 0, 1, 1], [], []>} : vector<16x32xf32>, vector<32x16xf32>, vector<16x16xf32> -> vector<16x16xf32>
    %79 = vector.extract_strided_slice %57 {offsets = [0, 0, 0], sizes = [1, 1, 16], strides = [1, 1, 1]} : vector<2x1x16xf32> to vector<1x1x16xf32>
    %80 = vector.shape_cast %79 : vector<1x1x16xf32> to vector<1x16xf32>
    %81 = vector.broadcast %80 : vector<1x16xf32> to vector<16x16xf32>
    %82 = arith.addf %78, %81 : vector<16x16xf32>
    %83 = vector.extract_strided_slice %47 {offsets = [1, 0, 0], sizes = [1, 32, 16], strides = [1, 1, 1]} : vector<2x32x16xf32> to vector<1x32x16xf32>
    %84 = vector.shape_cast %83 : vector<1x32x16xf32> to vector<32x16xf32>
    %cst_52 = arith.constant dense<0.000000e+00> : vector<16x16xf32>
    %85 = tpu.matmul %37, %84, %cst_52 {dimension_numbers = #tpu.dot_dimension_numbers<[1], [0], [0], [1], [0, 0, 1, 1], [], []>} : vector<16x32xf32>, vector<32x16xf32>, vector<16x16xf32> -> vector<16x16xf32>
    %86 = vector.extract_strided_slice %53 {offsets = [1, 0, 0], sizes = [1, 1, 16], strides = [1, 1, 1]} : vector<2x1x16xf32> to vector<1x1x16xf32>
    %87 = vector.shape_cast %86 : vector<1x1x16xf32> to vector<1x16xf32>
    %88 = vector.broadcast %87 : vector<1x16xf32> to vector<16x16xf32>
    %89 = arith.addf %85, %88 : vector<16x16xf32>
    %90 = vector.extract_strided_slice %49 {offsets = [1, 0, 0], sizes = [1, 32, 16], strides = [1, 1, 1]} : vector<2x32x16xf32> to vector<1x32x16xf32>
    %91 = vector.shape_cast %90 : vector<1x32x16xf32> to vector<32x16xf32>
    %cst_53 = arith.constant dense<0.000000e+00> : vector<16x16xf32>
    %92 = tpu.matmul %37, %91, %cst_53 {dimension_numbers = #tpu.dot_dimension_numbers<[1], [0], [0], [1], [0, 0, 1, 1], [], []>} : vector<16x32xf32>, vector<32x16xf32>, vector<16x16xf32> -> vector<16x16xf32>
    %93 = vector.extract_strided_slice %55 {offsets = [1, 0, 0], sizes = [1, 1, 16], strides = [1, 1, 1]} : vector<2x1x16xf32> to vector<1x1x16xf32>
    %94 = vector.shape_cast %93 : vector<1x1x16xf32> to vector<1x16xf32>
    %95 = vector.broadcast %94 : vector<1x16xf32> to vector<16x16xf32>
    %96 = arith.addf %92, %95 : vector<16x16xf32>
    %97 = vector.extract_strided_slice %51 {offsets = [1, 0, 0], sizes = [1, 32, 16], strides = [1, 1, 1]} : vector<2x32x16xf32> to vector<1x32x16xf32>
    %98 = vector.shape_cast %97 : vector<1x32x16xf32> to vector<32x16xf32>
    %cst_54 = arith.constant dense<0.000000e+00> : vector<16x16xf32>
    %99 = tpu.matmul %37, %98, %cst_54 {dimension_numbers = #tpu.dot_dimension_numbers<[1], [0], [0], [1], [0, 0, 1, 1], [], []>} : vector<16x32xf32>, vector<32x16xf32>, vector<16x16xf32> -> vector<16x16xf32>
    %100 = vector.extract_strided_slice %57 {offsets = [1, 0, 0], sizes = [1, 1, 16], strides = [1, 1, 1]} : vector<2x1x16xf32> to vector<1x1x16xf32>
    %101 = vector.shape_cast %100 : vector<1x1x16xf32> to vector<1x16xf32>
    %102 = vector.broadcast %101 : vector<1x16xf32> to vector<16x16xf32>
    %103 = arith.addf %99, %102 : vector<16x16xf32>
    %104 = vector.shape_cast %68 : vector<16x16xf32> to vector<1x16x16xf32>
    %105 = vector.shape_cast %89 : vector<16x16xf32> to vector<1x16x16xf32>
    %106 = tpu.concatenate %104, %105 in 0 : vector<1x16x16xf32>, vector<1x16x16xf32> -> vector<2x16x16xf32>
    %107 = vector.shape_cast %106 : vector<2x16x16xf32> to vector<4x8x16xf32>
    %cst_55 = arith.constant 2.500000e-01 : f32
    %108 = vector.broadcast %cst_55 : f32 to vector<4x8x16xf32>
    %109 = arith.mulf %107, %108 : vector<4x8x16xf32>
    %110 = vector.shape_cast %75 : vector<16x16xf32> to vector<1x16x16xf32>
    %111 = vector.shape_cast %96 : vector<16x16xf32> to vector<1x16x16xf32>
    %112 = tpu.concatenate %110, %111 in 0 : vector<1x16x16xf32>, vector<1x16x16xf32> -> vector<2x16x16xf32>
    %113 = vector.shape_cast %112 : vector<2x16x16xf32> to vector<4x8x16xf32>
    %114 = vector.shape_cast %82 : vector<16x16xf32> to vector<1x16x16xf32>
    %115 = vector.shape_cast %103 : vector<16x16xf32> to vector<1x16x16xf32>
    %116 = tpu.concatenate %114, %115 in 0 : vector<1x16x16xf32>, vector<1x16x16xf32> -> vector<2x16x16xf32>
    %117 = vector.shape_cast %116 : vector<2x16x16xf32> to vector<4x8x16xf32>
    "tpu.trace_start"() <{level = 10 : i32, message = "bqd,bkd->bqk"}> : () -> ()
    %cst_56 = arith.constant dense<0.000000e+00> : vector<4x8x8xf32>
    %118 = tpu.matmul %109, %113, %cst_56 {dimension_numbers = #tpu.dot_dimension_numbers<[2], [2], [1], [1], [0, 0, 0, 1, 1, 1], [0], [0]>} : vector<4x8x16xf32>, vector<4x8x16xf32>, vector<4x8x8xf32> -> vector<4x8x8xf32>
    "tpu.trace_stop"() : () -> ()
    %119 = vector.broadcast %45 : vector<4x1x8xf32> to vector<4x8x8xf32>
    %120 = arith.addf %118, %119 : vector<4x8x8xf32>
    %cst_57 = arith.constant dense<0xFF800000> : vector<4x8xf32>
    %121 = vector.multi_reduction <maximumf>, %120, %cst_57 [2] : vector<4x8x8xf32> to vector<4x8xf32>
    %122 = vector.shape_cast %121 : vector<4x8xf32> to vector<4x8x1xf32>
    %123 = vector.broadcast %122 : vector<4x8x1xf32> to vector<4x8x8xf32>
    %124 = arith.subf %120, %123 : vector<4x8x8xf32>
    %125 = math.exp %124 : vector<4x8x8xf32>
    %cst_58 = arith.constant dense<0.000000e+00> : vector<4x8xf32>
    %126 = vector.multi_reduction <add>, %125, %cst_58 [2] : vector<4x8x8xf32> to vector<4x8xf32>
    %127 = vector.shape_cast %126 : vector<4x8xf32> to vector<4x8x1xf32>
    %128 = tpu.reciprocal %127 {approx = true} : vector<4x8x1xf32> -> vector<4x8x1xf32>
    %129 = vector.broadcast %128 : vector<4x8x1xf32> to vector<4x8x8xf32>
    %130 = arith.mulf %125, %129 : vector<4x8x8xf32>
    "tpu.trace_start"() <{level = 10 : i32, message = "bqk,bkd->bqd"}> : () -> ()
    %cst_59 = arith.constant dense<0.000000e+00> : vector<4x8x16xf32>
    %131 = tpu.matmul %130, %117, %cst_59 {dimension_numbers = #tpu.dot_dimension_numbers<[2], [1], [1], [2], [0, 0, 0, 1, 1, 2], [0], [0]>} : vector<4x8x8xf32>, vector<4x8x16xf32>, vector<4x8x16xf32> -> vector<4x8x16xf32>
    "tpu.trace_stop"() : () -> ()
    %132 = vector.shape_cast %131 : vector<4x8x16xf32> to vector<2x16x16xf32>
    %133 = vector.extract_strided_slice %132 {offsets = [0, 0, 0], sizes = [1, 16, 16], strides = [1, 1, 1]} : vector<2x16x16xf32> to vector<1x16x16xf32>
    %134 = vector.shape_cast %133 : vector<1x16x16xf32> to vector<16x16xf32>
    %135 = vector.extract_strided_slice %59 {offsets = [0, 0, 0], sizes = [1, 16, 32], strides = [1, 1, 1]} : vector<2x16x32xf32> to vector<1x16x32xf32>
    %136 = vector.shape_cast %135 : vector<1x16x32xf32> to vector<16x32xf32>
    %cst_60 = arith.constant dense<0.000000e+00> : vector<16x32xf32>
    %137 = tpu.matmul %134, %136, %cst_60 {dimension_numbers = #tpu.dot_dimension_numbers<[1], [0], [0], [1], [0, 0, 1, 1], [], []>} : vector<16x16xf32>, vector<16x32xf32>, vector<16x32xf32> -> vector<16x32xf32>
    %138 = vector.broadcast %61 : vector<1x32xf32> to vector<16x32xf32>
    %139 = arith.addf %138, %137 : vector<16x32xf32>
    %140 = vector.extract_strided_slice %132 {offsets = [1, 0, 0], sizes = [1, 16, 16], strides = [1, 1, 1]} : vector<2x16x16xf32> to vector<1x16x16xf32>
    %141 = vector.shape_cast %140 : vector<1x16x16xf32> to vector<16x16xf32>
    %142 = vector.extract_strided_slice %59 {offsets = [1, 0, 0], sizes = [1, 16, 32], strides = [1, 1, 1]} : vector<2x16x32xf32> to vector<1x16x32xf32>
    %143 = vector.shape_cast %142 : vector<1x16x32xf32> to vector<16x32xf32>
    %cst_61 = arith.constant dense<0.000000e+00> : vector<16x32xf32>
    %144 = tpu.matmul %141, %143, %cst_61 {dimension_numbers = #tpu.dot_dimension_numbers<[1], [0], [0], [1], [0, 0, 1, 1], [], []>} : vector<16x16xf32>, vector<16x32xf32>, vector<16x32xf32> -> vector<16x32xf32>
    %145 = arith.addf %139, %144 : vector<16x32xf32>
    %146 = arith.addf %37, %145 : vector<16x32xf32>
    %c0_62 = arith.constant 0 : index
    %c0_63 = arith.constant 0 : index
    %c0_64 = arith.constant 0 : index
    %147 = vector.load %arg14[%c0_62, %c0_63, %c0_64] : memref<4x1x32xf32, #tpu.memory_space<vmem>>, vector<1x1x32xf32>
    %148 = vector.shape_cast %147 : vector<1x1x32xf32> to vector<1x32xf32>
    %c0_65 = arith.constant 0 : index
    %c0_66 = arith.constant 0 : index
    %c0_67 = arith.constant 0 : index
    %149 = vector.load %arg15[%c0_65, %c0_66, %c0_67] : memref<4x1x32xf32, #tpu.memory_space<vmem>>, vector<1x1x32xf32>
    %150 = vector.shape_cast %149 : vector<1x1x32xf32> to vector<1x32xf32>
    %cst_68 = arith.constant dense<0.000000e+00> : vector<16xf32>
    %151 = vector.multi_reduction <add>, %146, %cst_68 [1] : vector<16x32xf32> to vector<16xf32>
    %152 = vector.shape_cast %151 : vector<16xf32> to vector<16x1xf32>
    %cst_69 = arith.constant 3.200000e+01 : f32
    %153 = vector.broadcast %cst_69 : f32 to vector<16x1xf32>
    %154 = arith.divf %152, %153 : vector<16x1xf32>
    %155 = vector.broadcast %154 : vector<16x1xf32> to vector<16x32xf32>
    %156 = arith.subf %146, %155 : vector<16x32xf32>
    %157 = arith.mulf %156, %156 : vector<16x32xf32>
    %cst_70 = arith.constant dense<0.000000e+00> : vector<16xf32>
    %158 = vector.multi_reduction <add>, %157, %cst_70 [1] : vector<16x32xf32> to vector<16xf32>
    %159 = vector.shape_cast %158 : vector<16xf32> to vector<16x1xf32>
    %cst_71 = arith.constant 3.200000e+01 : f32
    %160 = vector.broadcast %cst_71 : f32 to vector<16x1xf32>
    %161 = arith.divf %159, %160 : vector<16x1xf32>
    %162 = vector.broadcast %154 : vector<16x1xf32> to vector<16x32xf32>
    %163 = arith.subf %146, %162 : vector<16x32xf32>
    %cst_72 = arith.constant 9.99999974E-6 : f32
    %164 = vector.broadcast %cst_72 : f32 to vector<16x1xf32>
    %165 = arith.addf %161, %164 : vector<16x1xf32>
    %166 = math.rsqrt %165 : vector<16x1xf32>
    %167 = vector.broadcast %166 : vector<16x1xf32> to vector<16x32xf32>
    %168 = arith.mulf %163, %167 : vector<16x32xf32>
    %169 = vector.broadcast %148 : vector<1x32xf32> to vector<16x32xf32>
    %170 = arith.mulf %168, %169 : vector<16x32xf32>
    %171 = vector.broadcast %150 : vector<1x32xf32> to vector<16x32xf32>
    %172 = arith.addf %170, %171 : vector<16x32xf32>
    %c0_73 = arith.constant 0 : index
    %c0_74 = arith.constant 0 : index
    %c0_75 = arith.constant 0 : index
    %173 = vector.load %arg16[%c0_73, %c0_74, %c0_75] : memref<4x32x64xf32, #tpu.memory_space<vmem>>, vector<1x32x64xf32>
    %174 = vector.shape_cast %173 : vector<1x32x64xf32> to vector<32x64xf32>
    %cst_76 = arith.constant dense<0.000000e+00> : vector<16x64xf32>
    %175 = tpu.matmul %172, %174, %cst_76 {dimension_numbers = #tpu.dot_dimension_numbers<[1], [0], [0], [1], [0, 0, 1, 1], [], []>} : vector<16x32xf32>, vector<32x64xf32>, vector<16x64xf32> -> vector<16x64xf32>
    %c0_77 = arith.constant 0 : index
    %c0_78 = arith.constant 0 : index
    %c0_79 = arith.constant 0 : index
    %176 = vector.load %arg17[%c0_77, %c0_78, %c0_79] : memref<4x1x64xf32, #tpu.memory_space<vmem>>, vector<1x1x64xf32>
    %177 = vector.shape_cast %176 : vector<1x1x64xf32> to vector<1x64xf32>
    %178 = vector.broadcast %177 : vector<1x64xf32> to vector<16x64xf32>
    %179 = arith.addf %175, %178 : vector<16x64xf32>
    %cst_80 = arith.constant 5.000000e-01 : f32
    %180 = vector.broadcast %cst_80 : f32 to vector<16x64xf32>
    %181 = arith.mulf %180, %179 : vector<16x64xf32>
    %cst_81 = arith.constant 4.471500e-02 : f32
    %182 = vector.broadcast %cst_81 : f32 to vector<16x64xf32>
    %183 = arith.mulf %182, %179 : vector<16x64xf32>
    %184 = arith.mulf %183, %179 : vector<16x64xf32>
    %185 = arith.mulf %184, %179 : vector<16x64xf32>
    %186 = arith.addf %179, %185 : vector<16x64xf32>
    %cst_82 = arith.constant 0.797884583 : f32
    %187 = vector.broadcast %cst_82 : f32 to vector<16x64xf32>
    %188 = arith.mulf %187, %186 : vector<16x64xf32>
    %189 = math.tanh %188 : vector<16x64xf32>
    %cst_83 = arith.constant 1.000000e+00 : f32
    %190 = vector.broadcast %cst_83 : f32 to vector<16x64xf32>
    %191 = arith.addf %190, %189 : vector<16x64xf32>
    %192 = arith.mulf %181, %191 : vector<16x64xf32>
    %c0_84 = arith.constant 0 : index
    %c0_85 = arith.constant 0 : index
    %c0_86 = arith.constant 0 : index
    %193 = vector.load %arg18[%c0_84, %c0_85, %c0_86] : memref<4x64x32xf32, #tpu.memory_space<vmem>>, vector<1x64x32xf32>
    %194 = vector.shape_cast %193 : vector<1x64x32xf32> to vector<64x32xf32>
    %cst_87 = arith.constant dense<0.000000e+00> : vector<16x32xf32>
    %195 = tpu.matmul %192, %194, %cst_87 {dimension_numbers = #tpu.dot_dimension_numbers<[1], [0], [0], [1], [0, 0, 1, 1], [], []>} : vector<16x64xf32>, vector<64x32xf32>, vector<16x32xf32> -> vector<16x32xf32>
    %c0_88 = arith.constant 0 : index
    %c0_89 = arith.constant 0 : index
    %c0_90 = arith.constant 0 : index
    %196 = vector.load %arg19[%c0_88, %c0_89, %c0_90] : memref<4x1x32xf32, #tpu.memory_space<vmem>>, vector<1x1x32xf32>
    %197 = vector.shape_cast %196 : vector<1x1x32xf32> to vector<1x32xf32>
    %198 = vector.broadcast %197 : vector<1x32xf32> to vector<16x32xf32>
    %199 = arith.addf %195, %198 : vector<16x32xf32>
    %200 = arith.addf %172, %199 : vector<16x32xf32>
    %c0_91 = arith.constant 0 : index
    %c0_92 = arith.constant 0 : index
    %c0_93 = arith.constant 0 : index
    %201 = vector.load %arg20[%c0_91, %c0_92, %c0_93] : memref<4x1x32xf32, #tpu.memory_space<vmem>>, vector<1x1x32xf32>
    %202 = vector.shape_cast %201 : vector<1x1x32xf32> to vector<1x32xf32>
    %c0_94 = arith.constant 0 : index
    %c0_95 = arith.constant 0 : index
    %c0_96 = arith.constant 0 : index
    %203 = vector.load %arg21[%c0_94, %c0_95, %c0_96] : memref<4x1x32xf32, #tpu.memory_space<vmem>>, vector<1x1x32xf32>
    %204 = vector.shape_cast %203 : vector<1x1x32xf32> to vector<1x32xf32>
    %cst_97 = arith.constant dense<0.000000e+00> : vector<16xf32>
    %205 = vector.multi_reduction <add>, %200, %cst_97 [1] : vector<16x32xf32> to vector<16xf32>
    %206 = vector.shape_cast %205 : vector<16xf32> to vector<16x1xf32>
    %cst_98 = arith.constant 3.200000e+01 : f32
    %207 = vector.broadcast %cst_98 : f32 to vector<16x1xf32>
    %208 = arith.divf %206, %207 : vector<16x1xf32>
    %209 = vector.broadcast %208 : vector<16x1xf32> to vector<16x32xf32>
    %210 = arith.subf %200, %209 : vector<16x32xf32>
    %211 = arith.mulf %210, %210 : vector<16x32xf32>
    %cst_99 = arith.constant dense<0.000000e+00> : vector<16xf32>
    %212 = vector.multi_reduction <add>, %211, %cst_99 [1] : vector<16x32xf32> to vector<16xf32>
    %213 = vector.shape_cast %212 : vector<16xf32> to vector<16x1xf32>
    %cst_100 = arith.constant 3.200000e+01 : f32
    %214 = vector.broadcast %cst_100 : f32 to vector<16x1xf32>
    %215 = arith.divf %213, %214 : vector<16x1xf32>
    %216 = vector.broadcast %208 : vector<16x1xf32> to vector<16x32xf32>
    %217 = arith.subf %200, %216 : vector<16x32xf32>
    %cst_101 = arith.constant 9.99999974E-6 : f32
    %218 = vector.broadcast %cst_101 : f32 to vector<16x1xf32>
    %219 = arith.addf %215, %218 : vector<16x1xf32>
    %220 = math.rsqrt %219 : vector<16x1xf32>
    %221 = vector.broadcast %220 : vector<16x1xf32> to vector<16x32xf32>
    %222 = arith.mulf %217, %221 : vector<16x32xf32>
    %223 = vector.broadcast %202 : vector<1x32xf32> to vector<16x32xf32>
    %224 = arith.mulf %222, %223 : vector<16x32xf32>
    %225 = vector.broadcast %204 : vector<1x32xf32> to vector<16x32xf32>
    %226 = arith.addf %224, %225 : vector<16x32xf32>
    %227 = vector.shape_cast %226 : vector<16x32xf32> to vector<2x8x32xf32>
    %228 = vector.extract_strided_slice %227 {offsets = [0, 0, 0], sizes = [2, 1, 32], strides = [1, 1, 1]} : vector<2x8x32xf32> to vector<2x1x32xf32>
    %229 = vector.shape_cast %228 : vector<2x1x32xf32> to vector<2x32xf32>
    %c1 = arith.constant 1 : index
    %c0_102 = arith.constant 0 : index
    %c0_103 = arith.constant 0 : index
    %c0_104 = arith.constant 0 : index
    %230 = vector.load %arg6[%c1, %c0_102, %c0_103, %c0_104] : memref<4x2x32x16xf32, #tpu.memory_space<vmem>>, vector<1x2x32x16xf32>
    %231 = vector.shape_cast %230 : vector<1x2x32x16xf32> to vector<2x32x16xf32>
    %c1_105 = arith.constant 1 : index
    %c0_106 = arith.constant 0 : index
    %c0_107 = arith.constant 0 : index
    %c0_108 = arith.constant 0 : index
    %232 = vector.load %arg7[%c1_105, %c0_106, %c0_107, %c0_108] : memref<4x2x32x16xf32, #tpu.memory_space<vmem>>, vector<1x2x32x16xf32>
    %233 = vector.shape_cast %232 : vector<1x2x32x16xf32> to vector<2x32x16xf32>
    %c1_109 = arith.constant 1 : index
    %c0_110 = arith.constant 0 : index
    %c0_111 = arith.constant 0 : index
    %c0_112 = arith.constant 0 : index
    %234 = vector.load %arg8[%c1_109, %c0_110, %c0_111, %c0_112] : memref<4x2x32x16xf32, #tpu.memory_space<vmem>>, vector<1x2x32x16xf32>
    %235 = vector.shape_cast %234 : vector<1x2x32x16xf32> to vector<2x32x16xf32>
    %c1_113 = arith.constant 1 : index
    %c0_114 = arith.constant 0 : index
    %c0_115 = arith.constant 0 : index
    %c0_116 = arith.constant 0 : index
    %236 = vector.load %arg9[%c1_113, %c0_114, %c0_115, %c0_116] : memref<4x2x1x16xf32, #tpu.memory_space<vmem>>, vector<1x2x1x16xf32>
    %237 = vector.shape_cast %236 : vector<1x2x1x16xf32> to vector<2x1x16xf32>
    %c1_117 = arith.constant 1 : index
    %c0_118 = arith.constant 0 : index
    %c0_119 = arith.constant 0 : index
    %c0_120 = arith.constant 0 : index
    %238 = vector.load %arg10[%c1_117, %c0_118, %c0_119, %c0_120] : memref<4x2x1x16xf32, #tpu.memory_space<vmem>>, vector<1x2x1x16xf32>
    %239 = vector.shape_cast %238 : vector<1x2x1x16xf32> to vector<2x1x16xf32>
    %c1_121 = arith.constant 1 : index
    %c0_122 = arith.constant 0 : index
    %c0_123 = arith.constant 0 : index
    %c0_124 = arith.constant 0 : index
    %240 = vector.load %arg11[%c1_121, %c0_122, %c0_123, %c0_124] : memref<4x2x1x16xf32, #tpu.memory_space<vmem>>, vector<1x2x1x16xf32>
    %241 = vector.shape_cast %240 : vector<1x2x1x16xf32> to vector<2x1x16xf32>
    %c1_125 = arith.constant 1 : index
    %c0_126 = arith.constant 0 : index
    %c0_127 = arith.constant 0 : index
    %c0_128 = arith.constant 0 : index
    %242 = vector.load %arg12[%c1_125, %c0_126, %c0_127, %c0_128] : memref<4x2x16x32xf32, #tpu.memory_space<vmem>>, vector<1x2x16x32xf32>
    %243 = vector.shape_cast %242 : vector<1x2x16x32xf32> to vector<2x16x32xf32>
    %c1_129 = arith.constant 1 : index
    %c0_130 = arith.constant 0 : index
    %c0_131 = arith.constant 0 : index
    %244 = vector.load %arg13[%c1_129, %c0_130, %c0_131] : memref<4x1x32xf32, #tpu.memory_space<vmem>>, vector<1x1x32xf32>
    %245 = vector.shape_cast %244 : vector<1x1x32xf32> to vector<1x32xf32>
    %246 = vector.extract_strided_slice %231 {offsets = [0, 0, 0], sizes = [1, 32, 16], strides = [1, 1, 1]} : vector<2x32x16xf32> to vector<1x32x16xf32>
    %247 = vector.shape_cast %246 : vector<1x32x16xf32> to vector<32x16xf32>
    %cst_132 = arith.constant dense<0.000000e+00> : vector<16x16xf32>
    %248 = tpu.matmul %226, %247, %cst_132 {dimension_numbers = #tpu.dot_dimension_numbers<[1], [0], [0], [1], [0, 0, 1, 1], [], []>} : vector<16x32xf32>, vector<32x16xf32>, vector<16x16xf32> -> vector<16x16xf32>
    %249 = vector.extract_strided_slice %237 {offsets = [0, 0, 0], sizes = [1, 1, 16], strides = [1, 1, 1]} : vector<2x1x16xf32> to vector<1x1x16xf32>
    %250 = vector.shape_cast %249 : vector<1x1x16xf32> to vector<1x16xf32>
    %251 = vector.broadcast %250 : vector<1x16xf32> to vector<16x16xf32>
    %252 = arith.addf %248, %251 : vector<16x16xf32>
    %253 = vector.extract_strided_slice %233 {offsets = [0, 0, 0], sizes = [1, 32, 16], strides = [1, 1, 1]} : vector<2x32x16xf32> to vector<1x32x16xf32>
    %254 = vector.shape_cast %253 : vector<1x32x16xf32> to vector<32x16xf32>
    %cst_133 = arith.constant dense<0.000000e+00> : vector<16x16xf32>
    %255 = tpu.matmul %226, %254, %cst_133 {dimension_numbers = #tpu.dot_dimension_numbers<[1], [0], [0], [1], [0, 0, 1, 1], [], []>} : vector<16x32xf32>, vector<32x16xf32>, vector<16x16xf32> -> vector<16x16xf32>
    %256 = vector.extract_strided_slice %239 {offsets = [0, 0, 0], sizes = [1, 1, 16], strides = [1, 1, 1]} : vector<2x1x16xf32> to vector<1x1x16xf32>
    %257 = vector.shape_cast %256 : vector<1x1x16xf32> to vector<1x16xf32>
    %258 = vector.broadcast %257 : vector<1x16xf32> to vector<16x16xf32>
    %259 = arith.addf %255, %258 : vector<16x16xf32>
    %260 = vector.extract_strided_slice %235 {offsets = [0, 0, 0], sizes = [1, 32, 16], strides = [1, 1, 1]} : vector<2x32x16xf32> to vector<1x32x16xf32>
    %261 = vector.shape_cast %260 : vector<1x32x16xf32> to vector<32x16xf32>
    %cst_134 = arith.constant dense<0.000000e+00> : vector<16x16xf32>
    %262 = tpu.matmul %226, %261, %cst_134 {dimension_numbers = #tpu.dot_dimension_numbers<[1], [0], [0], [1], [0, 0, 1, 1], [], []>} : vector<16x32xf32>, vector<32x16xf32>, vector<16x16xf32> -> vector<16x16xf32>
    %263 = vector.extract_strided_slice %241 {offsets = [0, 0, 0], sizes = [1, 1, 16], strides = [1, 1, 1]} : vector<2x1x16xf32> to vector<1x1x16xf32>
    %264 = vector.shape_cast %263 : vector<1x1x16xf32> to vector<1x16xf32>
    %265 = vector.broadcast %264 : vector<1x16xf32> to vector<16x16xf32>
    %266 = arith.addf %262, %265 : vector<16x16xf32>
    %267 = vector.extract_strided_slice %231 {offsets = [1, 0, 0], sizes = [1, 32, 16], strides = [1, 1, 1]} : vector<2x32x16xf32> to vector<1x32x16xf32>
    %268 = vector.shape_cast %267 : vector<1x32x16xf32> to vector<32x16xf32>
    %cst_135 = arith.constant dense<0.000000e+00> : vector<16x16xf32>
    %269 = tpu.matmul %226, %268, %cst_135 {dimension_numbers = #tpu.dot_dimension_numbers<[1], [0], [0], [1], [0, 0, 1, 1], [], []>} : vector<16x32xf32>, vector<32x16xf32>, vector<16x16xf32> -> vector<16x16xf32>
    %270 = vector.extract_strided_slice %237 {offsets = [1, 0, 0], sizes = [1, 1, 16], strides = [1, 1, 1]} : vector<2x1x16xf32> to vector<1x1x16xf32>
    %271 = vector.shape_cast %270 : vector<1x1x16xf32> to vector<1x16xf32>
    %272 = vector.broadcast %271 : vector<1x16xf32> to vector<16x16xf32>
    %273 = arith.addf %269, %272 : vector<16x16xf32>
    %274 = vector.extract_strided_slice %233 {offsets = [1, 0, 0], sizes = [1, 32, 16], strides = [1, 1, 1]} : vector<2x32x16xf32> to vector<1x32x16xf32>
    %275 = vector.shape_cast %274 : vector<1x32x16xf32> to vector<32x16xf32>
    %cst_136 = arith.constant dense<0.000000e+00> : vector<16x16xf32>
    %276 = tpu.matmul %226, %275, %cst_136 {dimension_numbers = #tpu.dot_dimension_numbers<[1], [0], [0], [1], [0, 0, 1, 1], [], []>} : vector<16x32xf32>, vector<32x16xf32>, vector<16x16xf32> -> vector<16x16xf32>
    %277 = vector.extract_strided_slice %239 {offsets = [1, 0, 0], sizes = [1, 1, 16], strides = [1, 1, 1]} : vector<2x1x16xf32> to vector<1x1x16xf32>
    %278 = vector.shape_cast %277 : vector<1x1x16xf32> to vector<1x16xf32>
    %279 = vector.broadcast %278 : vector<1x16xf32> to vector<16x16xf32>
    %280 = arith.addf %276, %279 : vector<16x16xf32>
    %281 = vector.extract_strided_slice %235 {offsets = [1, 0, 0], sizes = [1, 32, 16], strides = [1, 1, 1]} : vector<2x32x16xf32> to vector<1x32x16xf32>
    %282 = vector.shape_cast %281 : vector<1x32x16xf32> to vector<32x16xf32>
    %cst_137 = arith.constant dense<0.000000e+00> : vector<16x16xf32>
    %283 = tpu.matmul %226, %282, %cst_137 {dimension_numbers = #tpu.dot_dimension_numbers<[1], [0], [0], [1], [0, 0, 1, 1], [], []>} : vector<16x32xf32>, vector<32x16xf32>, vector<16x16xf32> -> vector<16x16xf32>
    %284 = vector.extract_strided_slice %241 {offsets = [1, 0, 0], sizes = [1, 1, 16], strides = [1, 1, 1]} : vector<2x1x16xf32> to vector<1x1x16xf32>
    %285 = vector.shape_cast %284 : vector<1x1x16xf32> to vector<1x16xf32>
    %286 = vector.broadcast %285 : vector<1x16xf32> to vector<16x16xf32>
    %287 = arith.addf %283, %286 : vector<16x16xf32>
    %288 = vector.shape_cast %252 : vector<16x16xf32> to vector<1x16x16xf32>
    %289 = vector.shape_cast %273 : vector<16x16xf32> to vector<1x16x16xf32>
    %290 = tpu.concatenate %288, %289 in 0 : vector<1x16x16xf32>, vector<1x16x16xf32> -> vector<2x16x16xf32>
    %291 = vector.shape_cast %290 : vector<2x16x16xf32> to vector<4x8x16xf32>
    %cst_138 = arith.constant 2.500000e-01 : f32
    %292 = vector.broadcast %cst_138 : f32 to vector<4x8x16xf32>
    %293 = arith.mulf %291, %292 : vector<4x8x16xf32>
    %294 = vector.shape_cast %259 : vector<16x16xf32> to vector<1x16x16xf32>
    %295 = vector.shape_cast %280 : vector<16x16xf32> to vector<1x16x16xf32>
    %296 = tpu.concatenate %294, %295 in 0 : vector<1x16x16xf32>, vector<1x16x16xf32> -> vector<2x16x16xf32>
    %297 = vector.shape_cast %296 : vector<2x16x16xf32> to vector<4x8x16xf32>
    %298 = vector.shape_cast %266 : vector<16x16xf32> to vector<1x16x16xf32>
    %299 = vector.shape_cast %287 : vector<16x16xf32> to vector<1x16x16xf32>
    %300 = tpu.concatenate %298, %299 in 0 : vector<1x16x16xf32>, vector<1x16x16xf32> -> vector<2x16x16xf32>
    %301 = vector.shape_cast %300 : vector<2x16x16xf32> to vector<4x8x16xf32>
    "tpu.trace_start"() <{level = 10 : i32, message = "bqd,bkd->bqk"}> : () -> ()
    %cst_139 = arith.constant dense<0.000000e+00> : vector<4x8x8xf32>
    %302 = tpu.matmul %293, %297, %cst_139 {dimension_numbers = #tpu.dot_dimension_numbers<[2], [2], [1], [1], [0, 0, 0, 1, 1, 1], [0], [0]>} : vector<4x8x16xf32>, vector<4x8x16xf32>, vector<4x8x8xf32> -> vector<4x8x8xf32>
    "tpu.trace_stop"() : () -> ()
    %303 = vector.broadcast %45 : vector<4x1x8xf32> to vector<4x8x8xf32>
    %304 = arith.addf %302, %303 : vector<4x8x8xf32>
    %cst_140 = arith.constant dense<0xFF800000> : vector<4x8xf32>
    %305 = vector.multi_reduction <maximumf>, %304, %cst_140 [2] : vector<4x8x8xf32> to vector<4x8xf32>
    %306 = vector.shape_cast %305 : vector<4x8xf32> to vector<4x8x1xf32>
    %307 = vector.broadcast %306 : vector<4x8x1xf32> to vector<4x8x8xf32>
    %308 = arith.subf %304, %307 : vector<4x8x8xf32>
    %309 = math.exp %308 : vector<4x8x8xf32>
    %cst_141 = arith.constant dense<0.000000e+00> : vector<4x8xf32>
    %310 = vector.multi_reduction <add>, %309, %cst_141 [2] : vector<4x8x8xf32> to vector<4x8xf32>
    %311 = vector.shape_cast %310 : vector<4x8xf32> to vector<4x8x1xf32>
    %312 = tpu.reciprocal %311 {approx = true} : vector<4x8x1xf32> -> vector<4x8x1xf32>
    %313 = vector.broadcast %312 : vector<4x8x1xf32> to vector<4x8x8xf32>
    %314 = arith.mulf %309, %313 : vector<4x8x8xf32>
    "tpu.trace_start"() <{level = 10 : i32, message = "bqk,bkd->bqd"}> : () -> ()
    %cst_142 = arith.constant dense<0.000000e+00> : vector<4x8x16xf32>
    %315 = tpu.matmul %314, %301, %cst_142 {dimension_numbers = #tpu.dot_dimension_numbers<[2], [1], [1], [2], [0, 0, 0, 1, 1, 2], [0], [0]>} : vector<4x8x8xf32>, vector<4x8x16xf32>, vector<4x8x16xf32> -> vector<4x8x16xf32>
    "tpu.trace_stop"() : () -> ()
    %316 = vector.shape_cast %315 : vector<4x8x16xf32> to vector<2x16x16xf32>
    %317 = vector.extract_strided_slice %316 {offsets = [0, 0, 0], sizes = [1, 16, 16], strides = [1, 1, 1]} : vector<2x16x16xf32> to vector<1x16x16xf32>
    %318 = vector.shape_cast %317 : vector<1x16x16xf32> to vector<16x16xf32>
    %319 = vector.extract_strided_slice %243 {offsets = [0, 0, 0], sizes = [1, 16, 32], strides = [1, 1, 1]} : vector<2x16x32xf32> to vector<1x16x32xf32>
    %320 = vector.shape_cast %319 : vector<1x16x32xf32> to vector<16x32xf32>
    %cst_143 = arith.constant dense<0.000000e+00> : vector<16x32xf32>
    %321 = tpu.matmul %318, %320, %cst_143 {dimension_numbers = #tpu.dot_dimension_numbers<[1], [0], [0], [1], [0, 0, 1, 1], [], []>} : vector<16x16xf32>, vector<16x32xf32>, vector<16x32xf32> -> vector<16x32xf32>
    %322 = vector.broadcast %245 : vector<1x32xf32> to vector<16x32xf32>
    %323 = arith.addf %322, %321 : vector<16x32xf32>
    %324 = vector.extract_strided_slice %316 {offsets = [1, 0, 0], sizes = [1, 16, 16], strides = [1, 1, 1]} : vector<2x16x16xf32> to vector<1x16x16xf32>
    %325 = vector.shape_cast %324 : vector<1x16x16xf32> to vector<16x16xf32>
    %326 = vector.extract_strided_slice %243 {offsets = [1, 0, 0], sizes = [1, 16, 32], strides = [1, 1, 1]} : vector<2x16x32xf32> to vector<1x16x32xf32>
    %327 = vector.shape_cast %326 : vector<1x16x32xf32> to vector<16x32xf32>
    %cst_144 = arith.constant dense<0.000000e+00> : vector<16x32xf32>
    %328 = tpu.matmul %325, %327, %cst_144 {dimension_numbers = #tpu.dot_dimension_numbers<[1], [0], [0], [1], [0, 0, 1, 1], [], []>} : vector<16x16xf32>, vector<16x32xf32>, vector<16x32xf32> -> vector<16x32xf32>
    %329 = arith.addf %323, %328 : vector<16x32xf32>
    %330 = arith.addf %226, %329 : vector<16x32xf32>
    %c1_145 = arith.constant 1 : index
    %c0_146 = arith.constant 0 : index
    %c0_147 = arith.constant 0 : index
    %331 = vector.load %arg14[%c1_145, %c0_146, %c0_147] : memref<4x1x32xf32, #tpu.memory_space<vmem>>, vector<1x1x32xf32>
    %332 = vector.shape_cast %331 : vector<1x1x32xf32> to vector<1x32xf32>
    %c1_148 = arith.constant 1 : index
    %c0_149 = arith.constant 0 : index
    %c0_150 = arith.constant 0 : index
    %333 = vector.load %arg15[%c1_148, %c0_149, %c0_150] : memref<4x1x32xf32, #tpu.memory_space<vmem>>, vector<1x1x32xf32>
    %334 = vector.shape_cast %333 : vector<1x1x32xf32> to vector<1x32xf32>
    %cst_151 = arith.constant dense<0.000000e+00> : vector<16xf32>
    %335 = vector.multi_reduction <add>, %330, %cst_151 [1] : vector<16x32xf32> to vector<16xf32>
    %336 = vector.shape_cast %335 : vector<16xf32> to vector<16x1xf32>
    %cst_152 = arith.constant 3.200000e+01 : f32
    %337 = vector.broadcast %cst_152 : f32 to vector<16x1xf32>
    %338 = arith.divf %336, %337 : vector<16x1xf32>
    %339 = vector.broadcast %338 : vector<16x1xf32> to vector<16x32xf32>
    %340 = arith.subf %330, %339 : vector<16x32xf32>
    %341 = arith.mulf %340, %340 : vector<16x32xf32>
    %cst_153 = arith.constant dense<0.000000e+00> : vector<16xf32>
    %342 = vector.multi_reduction <add>, %341, %cst_153 [1] : vector<16x32xf32> to vector<16xf32>
    %343 = vector.shape_cast %342 : vector<16xf32> to vector<16x1xf32>
    %cst_154 = arith.constant 3.200000e+01 : f32
    %344 = vector.broadcast %cst_154 : f32 to vector<16x1xf32>
    %345 = arith.divf %343, %344 : vector<16x1xf32>
    %346 = vector.broadcast %338 : vector<16x1xf32> to vector<16x32xf32>
    %347 = arith.subf %330, %346 : vector<16x32xf32>
    %cst_155 = arith.constant 9.99999974E-6 : f32
    %348 = vector.broadcast %cst_155 : f32 to vector<16x1xf32>
    %349 = arith.addf %345, %348 : vector<16x1xf32>
    %350 = math.rsqrt %349 : vector<16x1xf32>
    %351 = vector.broadcast %350 : vector<16x1xf32> to vector<16x32xf32>
    %352 = arith.mulf %347, %351 : vector<16x32xf32>
    %353 = vector.broadcast %332 : vector<1x32xf32> to vector<16x32xf32>
    %354 = arith.mulf %352, %353 : vector<16x32xf32>
    %355 = vector.broadcast %334 : vector<1x32xf32> to vector<16x32xf32>
    %356 = arith.addf %354, %355 : vector<16x32xf32>
    %c1_156 = arith.constant 1 : index
    %c0_157 = arith.constant 0 : index
    %c0_158 = arith.constant 0 : index
    %357 = vector.load %arg16[%c1_156, %c0_157, %c0_158] : memref<4x32x64xf32, #tpu.memory_space<vmem>>, vector<1x32x64xf32>
    %358 = vector.shape_cast %357 : vector<1x32x64xf32> to vector<32x64xf32>
    %cst_159 = arith.constant dense<0.000000e+00> : vector<16x64xf32>
    %359 = tpu.matmul %356, %358, %cst_159 {dimension_numbers = #tpu.dot_dimension_numbers<[1], [0], [0], [1], [0, 0, 1, 1], [], []>} : vector<16x32xf32>, vector<32x64xf32>, vector<16x64xf32> -> vector<16x64xf32>
    %c1_160 = arith.constant 1 : index
    %c0_161 = arith.constant 0 : index
    %c0_162 = arith.constant 0 : index
    %360 = vector.load %arg17[%c1_160, %c0_161, %c0_162] : memref<4x1x64xf32, #tpu.memory_space<vmem>>, vector<1x1x64xf32>
    %361 = vector.shape_cast %360 : vector<1x1x64xf32> to vector<1x64xf32>
    %362 = vector.broadcast %361 : vector<1x64xf32> to vector<16x64xf32>
    %363 = arith.addf %359, %362 : vector<16x64xf32>
    %cst_163 = arith.constant 5.000000e-01 : f32
    %364 = vector.broadcast %cst_163 : f32 to vector<16x64xf32>
    %365 = arith.mulf %364, %363 : vector<16x64xf32>
    %cst_164 = arith.constant 4.471500e-02 : f32
    %366 = vector.broadcast %cst_164 : f32 to vector<16x64xf32>
    %367 = arith.mulf %366, %363 : vector<16x64xf32>
    %368 = arith.mulf %367, %363 : vector<16x64xf32>
    %369 = arith.mulf %368, %363 : vector<16x64xf32>
    %370 = arith.addf %363, %369 : vector<16x64xf32>
    %cst_165 = arith.constant 0.797884583 : f32
    %371 = vector.broadcast %cst_165 : f32 to vector<16x64xf32>
    %372 = arith.mulf %371, %370 : vector<16x64xf32>
    %373 = math.tanh %372 : vector<16x64xf32>
    %cst_166 = arith.constant 1.000000e+00 : f32
    %374 = vector.broadcast %cst_166 : f32 to vector<16x64xf32>
    %375 = arith.addf %374, %373 : vector<16x64xf32>
    %376 = arith.mulf %365, %375 : vector<16x64xf32>
    %c1_167 = arith.constant 1 : index
    %c0_168 = arith.constant 0 : index
    %c0_169 = arith.constant 0 : index
    %377 = vector.load %arg18[%c1_167, %c0_168, %c0_169] : memref<4x64x32xf32, #tpu.memory_space<vmem>>, vector<1x64x32xf32>
    %378 = vector.shape_cast %377 : vector<1x64x32xf32> to vector<64x32xf32>
    %cst_170 = arith.constant dense<0.000000e+00> : vector<16x32xf32>
    %379 = tpu.matmul %376, %378, %cst_170 {dimension_numbers = #tpu.dot_dimension_numbers<[1], [0], [0], [1], [0, 0, 1, 1], [], []>} : vector<16x64xf32>, vector<64x32xf32>, vector<16x32xf32> -> vector<16x32xf32>
    %c1_171 = arith.constant 1 : index
    %c0_172 = arith.constant 0 : index
    %c0_173 = arith.constant 0 : index
    %380 = vector.load %arg19[%c1_171, %c0_172, %c0_173] : memref<4x1x32xf32, #tpu.memory_space<vmem>>, vector<1x1x32xf32>
    %381 = vector.shape_cast %380 : vector<1x1x32xf32> to vector<1x32xf32>
    %382 = vector.broadcast %381 : vector<1x32xf32> to vector<16x32xf32>
    %383 = arith.addf %379, %382 : vector<16x32xf32>
    %384 = arith.addf %356, %383 : vector<16x32xf32>
    %c1_174 = arith.constant 1 : index
    %c0_175 = arith.constant 0 : index
    %c0_176 = arith.constant 0 : index
    %385 = vector.load %arg20[%c1_174, %c0_175, %c0_176] : memref<4x1x32xf32, #tpu.memory_space<vmem>>, vector<1x1x32xf32>
    %386 = vector.shape_cast %385 : vector<1x1x32xf32> to vector<1x32xf32>
    %c1_177 = arith.constant 1 : index
    %c0_178 = arith.constant 0 : index
    %c0_179 = arith.constant 0 : index
    %387 = vector.load %arg21[%c1_177, %c0_178, %c0_179] : memref<4x1x32xf32, #tpu.memory_space<vmem>>, vector<1x1x32xf32>
    %388 = vector.shape_cast %387 : vector<1x1x32xf32> to vector<1x32xf32>
    %cst_180 = arith.constant dense<0.000000e+00> : vector<16xf32>
    %389 = vector.multi_reduction <add>, %384, %cst_180 [1] : vector<16x32xf32> to vector<16xf32>
    %390 = vector.shape_cast %389 : vector<16xf32> to vector<16x1xf32>
    %cst_181 = arith.constant 3.200000e+01 : f32
    %391 = vector.broadcast %cst_181 : f32 to vector<16x1xf32>
    %392 = arith.divf %390, %391 : vector<16x1xf32>
    %393 = vector.broadcast %392 : vector<16x1xf32> to vector<16x32xf32>
    %394 = arith.subf %384, %393 : vector<16x32xf32>
    %395 = arith.mulf %394, %394 : vector<16x32xf32>
    %cst_182 = arith.constant dense<0.000000e+00> : vector<16xf32>
    %396 = vector.multi_reduction <add>, %395, %cst_182 [1] : vector<16x32xf32> to vector<16xf32>
    %397 = vector.shape_cast %396 : vector<16xf32> to vector<16x1xf32>
    %cst_183 = arith.constant 3.200000e+01 : f32
    %398 = vector.broadcast %cst_183 : f32 to vector<16x1xf32>
    %399 = arith.divf %397, %398 : vector<16x1xf32>
    %400 = vector.broadcast %392 : vector<16x1xf32> to vector<16x32xf32>
    %401 = arith.subf %384, %400 : vector<16x32xf32>
    %cst_184 = arith.constant 9.99999974E-6 : f32
    %402 = vector.broadcast %cst_184 : f32 to vector<16x1xf32>
    %403 = arith.addf %399, %402 : vector<16x1xf32>
    %404 = math.rsqrt %403 : vector<16x1xf32>
    %405 = vector.broadcast %404 : vector<16x1xf32> to vector<16x32xf32>
    %406 = arith.mulf %401, %405 : vector<16x32xf32>
    %407 = vector.broadcast %386 : vector<1x32xf32> to vector<16x32xf32>
    %408 = arith.mulf %406, %407 : vector<16x32xf32>
    %409 = vector.broadcast %388 : vector<1x32xf32> to vector<16x32xf32>
    %410 = arith.addf %408, %409 : vector<16x32xf32>
    %411 = vector.shape_cast %410 : vector<16x32xf32> to vector<2x8x32xf32>
    %412 = vector.extract_strided_slice %411 {offsets = [0, 0, 0], sizes = [2, 1, 32], strides = [1, 1, 1]} : vector<2x8x32xf32> to vector<2x1x32xf32>
    %413 = vector.shape_cast %412 : vector<2x1x32xf32> to vector<2x32xf32>
    %c2 = arith.constant 2 : index
    %c0_185 = arith.constant 0 : index
    %c0_186 = arith.constant 0 : index
    %c0_187 = arith.constant 0 : index
    %414 = vector.load %arg6[%c2, %c0_185, %c0_186, %c0_187] : memref<4x2x32x16xf32, #tpu.memory_space<vmem>>, vector<1x2x32x16xf32>
    %415 = vector.shape_cast %414 : vector<1x2x32x16xf32> to vector<2x32x16xf32>
    %c2_188 = arith.constant 2 : index
    %c0_189 = arith.constant 0 : index
    %c0_190 = arith.constant 0 : index
    %c0_191 = arith.constant 0 : index
    %416 = vector.load %arg7[%c2_188, %c0_189, %c0_190, %c0_191] : memref<4x2x32x16xf32, #tpu.memory_space<vmem>>, vector<1x2x32x16xf32>
    %417 = vector.shape_cast %416 : vector<1x2x32x16xf32> to vector<2x32x16xf32>
    %c2_192 = arith.constant 2 : index
    %c0_193 = arith.constant 0 : index
    %c0_194 = arith.constant 0 : index
    %c0_195 = arith.constant 0 : index
    %418 = vector.load %arg8[%c2_192, %c0_193, %c0_194, %c0_195] : memref<4x2x32x16xf32, #tpu.memory_space<vmem>>, vector<1x2x32x16xf32>
    %419 = vector.shape_cast %418 : vector<1x2x32x16xf32> to vector<2x32x16xf32>
    %c2_196 = arith.constant 2 : index
    %c0_197 = arith.constant 0 : index
    %c0_198 = arith.constant 0 : index
    %c0_199 = arith.constant 0 : index
    %420 = vector.load %arg9[%c2_196, %c0_197, %c0_198, %c0_199] : memref<4x2x1x16xf32, #tpu.memory_space<vmem>>, vector<1x2x1x16xf32>
    %421 = vector.shape_cast %420 : vector<1x2x1x16xf32> to vector<2x1x16xf32>
    %c2_200 = arith.constant 2 : index
    %c0_201 = arith.constant 0 : index
    %c0_202 = arith.constant 0 : index
    %c0_203 = arith.constant 0 : index
    %422 = vector.load %arg10[%c2_200, %c0_201, %c0_202, %c0_203] : memref<4x2x1x16xf32, #tpu.memory_space<vmem>>, vector<1x2x1x16xf32>
    %423 = vector.shape_cast %422 : vector<1x2x1x16xf32> to vector<2x1x16xf32>
    %c2_204 = arith.constant 2 : index
    %c0_205 = arith.constant 0 : index
    %c0_206 = arith.constant 0 : index
    %c0_207 = arith.constant 0 : index
    %424 = vector.load %arg11[%c2_204, %c0_205, %c0_206, %c0_207] : memref<4x2x1x16xf32, #tpu.memory_space<vmem>>, vector<1x2x1x16xf32>
    %425 = vector.shape_cast %424 : vector<1x2x1x16xf32> to vector<2x1x16xf32>
    %c2_208 = arith.constant 2 : index
    %c0_209 = arith.constant 0 : index
    %c0_210 = arith.constant 0 : index
    %c0_211 = arith.constant 0 : index
    %426 = vector.load %arg12[%c2_208, %c0_209, %c0_210, %c0_211] : memref<4x2x16x32xf32, #tpu.memory_space<vmem>>, vector<1x2x16x32xf32>
    %427 = vector.shape_cast %426 : vector<1x2x16x32xf32> to vector<2x16x32xf32>
    %c2_212 = arith.constant 2 : index
    %c0_213 = arith.constant 0 : index
    %c0_214 = arith.constant 0 : index
    %428 = vector.load %arg13[%c2_212, %c0_213, %c0_214] : memref<4x1x32xf32, #tpu.memory_space<vmem>>, vector<1x1x32xf32>
    %429 = vector.shape_cast %428 : vector<1x1x32xf32> to vector<1x32xf32>
    %430 = vector.extract_strided_slice %415 {offsets = [0, 0, 0], sizes = [1, 32, 16], strides = [1, 1, 1]} : vector<2x32x16xf32> to vector<1x32x16xf32>
    %431 = vector.shape_cast %430 : vector<1x32x16xf32> to vector<32x16xf32>
    %cst_215 = arith.constant dense<0.000000e+00> : vector<16x16xf32>
    %432 = tpu.matmul %410, %431, %cst_215 {dimension_numbers = #tpu.dot_dimension_numbers<[1], [0], [0], [1], [0, 0, 1, 1], [], []>} : vector<16x32xf32>, vector<32x16xf32>, vector<16x16xf32> -> vector<16x16xf32>
    %433 = vector.extract_strided_slice %421 {offsets = [0, 0, 0], sizes = [1, 1, 16], strides = [1, 1, 1]} : vector<2x1x16xf32> to vector<1x1x16xf32>
    %434 = vector.shape_cast %433 : vector<1x1x16xf32> to vector<1x16xf32>
    %435 = vector.broadcast %434 : vector<1x16xf32> to vector<16x16xf32>
    %436 = arith.addf %432, %435 : vector<16x16xf32>
    %437 = vector.extract_strided_slice %417 {offsets = [0, 0, 0], sizes = [1, 32, 16], strides = [1, 1, 1]} : vector<2x32x16xf32> to vector<1x32x16xf32>
    %438 = vector.shape_cast %437 : vector<1x32x16xf32> to vector<32x16xf32>
    %cst_216 = arith.constant dense<0.000000e+00> : vector<16x16xf32>
    %439 = tpu.matmul %410, %438, %cst_216 {dimension_numbers = #tpu.dot_dimension_numbers<[1], [0], [0], [1], [0, 0, 1, 1], [], []>} : vector<16x32xf32>, vector<32x16xf32>, vector<16x16xf32> -> vector<16x16xf32>
    %440 = vector.extract_strided_slice %423 {offsets = [0, 0, 0], sizes = [1, 1, 16], strides = [1, 1, 1]} : vector<2x1x16xf32> to vector<1x1x16xf32>
    %441 = vector.shape_cast %440 : vector<1x1x16xf32> to vector<1x16xf32>
    %442 = vector.broadcast %441 : vector<1x16xf32> to vector<16x16xf32>
    %443 = arith.addf %439, %442 : vector<16x16xf32>
    %444 = vector.extract_strided_slice %419 {offsets = [0, 0, 0], sizes = [1, 32, 16], strides = [1, 1, 1]} : vector<2x32x16xf32> to vector<1x32x16xf32>
    %445 = vector.shape_cast %444 : vector<1x32x16xf32> to vector<32x16xf32>
    %cst_217 = arith.constant dense<0.000000e+00> : vector<16x16xf32>
    %446 = tpu.matmul %410, %445, %cst_217 {dimension_numbers = #tpu.dot_dimension_numbers<[1], [0], [0], [1], [0, 0, 1, 1], [], []>} : vector<16x32xf32>, vector<32x16xf32>, vector<16x16xf32> -> vector<16x16xf32>
    %447 = vector.extract_strided_slice %425 {offsets = [0, 0, 0], sizes = [1, 1, 16], strides = [1, 1, 1]} : vector<2x1x16xf32> to vector<1x1x16xf32>
    %448 = vector.shape_cast %447 : vector<1x1x16xf32> to vector<1x16xf32>
    %449 = vector.broadcast %448 : vector<1x16xf32> to vector<16x16xf32>
    %450 = arith.addf %446, %449 : vector<16x16xf32>
    %451 = vector.extract_strided_slice %415 {offsets = [1, 0, 0], sizes = [1, 32, 16], strides = [1, 1, 1]} : vector<2x32x16xf32> to vector<1x32x16xf32>
    %452 = vector.shape_cast %451 : vector<1x32x16xf32> to vector<32x16xf32>
    %cst_218 = arith.constant dense<0.000000e+00> : vector<16x16xf32>
    %453 = tpu.matmul %410, %452, %cst_218 {dimension_numbers = #tpu.dot_dimension_numbers<[1], [0], [0], [1], [0, 0, 1, 1], [], []>} : vector<16x32xf32>, vector<32x16xf32>, vector<16x16xf32> -> vector<16x16xf32>
    %454 = vector.extract_strided_slice %421 {offsets = [1, 0, 0], sizes = [1, 1, 16], strides = [1, 1, 1]} : vector<2x1x16xf32> to vector<1x1x16xf32>
    %455 = vector.shape_cast %454 : vector<1x1x16xf32> to vector<1x16xf32>
    %456 = vector.broadcast %455 : vector<1x16xf32> to vector<16x16xf32>
    %457 = arith.addf %453, %456 : vector<16x16xf32>
    %458 = vector.extract_strided_slice %417 {offsets = [1, 0, 0], sizes = [1, 32, 16], strides = [1, 1, 1]} : vector<2x32x16xf32> to vector<1x32x16xf32>
    %459 = vector.shape_cast %458 : vector<1x32x16xf32> to vector<32x16xf32>
    %cst_219 = arith.constant dense<0.000000e+00> : vector<16x16xf32>
    %460 = tpu.matmul %410, %459, %cst_219 {dimension_numbers = #tpu.dot_dimension_numbers<[1], [0], [0], [1], [0, 0, 1, 1], [], []>} : vector<16x32xf32>, vector<32x16xf32>, vector<16x16xf32> -> vector<16x16xf32>
    %461 = vector.extract_strided_slice %423 {offsets = [1, 0, 0], sizes = [1, 1, 16], strides = [1, 1, 1]} : vector<2x1x16xf32> to vector<1x1x16xf32>
    %462 = vector.shape_cast %461 : vector<1x1x16xf32> to vector<1x16xf32>
    %463 = vector.broadcast %462 : vector<1x16xf32> to vector<16x16xf32>
    %464 = arith.addf %460, %463 : vector<16x16xf32>
    %465 = vector.extract_strided_slice %419 {offsets = [1, 0, 0], sizes = [1, 32, 16], strides = [1, 1, 1]} : vector<2x32x16xf32> to vector<1x32x16xf32>
    %466 = vector.shape_cast %465 : vector<1x32x16xf32> to vector<32x16xf32>
    %cst_220 = arith.constant dense<0.000000e+00> : vector<16x16xf32>
    %467 = tpu.matmul %410, %466, %cst_220 {dimension_numbers = #tpu.dot_dimension_numbers<[1], [0], [0], [1], [0, 0, 1, 1], [], []>} : vector<16x32xf32>, vector<32x16xf32>, vector<16x16xf32> -> vector<16x16xf32>
    %468 = vector.extract_strided_slice %425 {offsets = [1, 0, 0], sizes = [1, 1, 16], strides = [1, 1, 1]} : vector<2x1x16xf32> to vector<1x1x16xf32>
    %469 = vector.shape_cast %468 : vector<1x1x16xf32> to vector<1x16xf32>
    %470 = vector.broadcast %469 : vector<1x16xf32> to vector<16x16xf32>
    %471 = arith.addf %467, %470 : vector<16x16xf32>
    %472 = vector.shape_cast %436 : vector<16x16xf32> to vector<1x16x16xf32>
    %473 = vector.shape_cast %457 : vector<16x16xf32> to vector<1x16x16xf32>
    %474 = tpu.concatenate %472, %473 in 0 : vector<1x16x16xf32>, vector<1x16x16xf32> -> vector<2x16x16xf32>
    %475 = vector.shape_cast %474 : vector<2x16x16xf32> to vector<4x8x16xf32>
    %cst_221 = arith.constant 2.500000e-01 : f32
    %476 = vector.broadcast %cst_221 : f32 to vector<4x8x16xf32>
    %477 = arith.mulf %475, %476 : vector<4x8x16xf32>
    %478 = vector.shape_cast %443 : vector<16x16xf32> to vector<1x16x16xf32>
    %479 = vector.shape_cast %464 : vector<16x16xf32> to vector<1x16x16xf32>
    %480 = tpu.concatenate %478, %479 in 0 : vector<1x16x16xf32>, vector<1x16x16xf32> -> vector<2x16x16xf32>
    %481 = vector.shape_cast %480 : vector<2x16x16xf32> to vector<4x8x16xf32>
    %482 = vector.shape_cast %450 : vector<16x16xf32> to vector<1x16x16xf32>
    %483 = vector.shape_cast %471 : vector<16x16xf32> to vector<1x16x16xf32>
    %484 = tpu.concatenate %482, %483 in 0 : vector<1x16x16xf32>, vector<1x16x16xf32> -> vector<2x16x16xf32>
    %485 = vector.shape_cast %484 : vector<2x16x16xf32> to vector<4x8x16xf32>
    "tpu.trace_start"() <{level = 10 : i32, message = "bqd,bkd->bqk"}> : () -> ()
    %cst_222 = arith.constant dense<0.000000e+00> : vector<4x8x8xf32>
    %486 = tpu.matmul %477, %481, %cst_222 {dimension_numbers = #tpu.dot_dimension_numbers<[2], [2], [1], [1], [0, 0, 0, 1, 1, 1], [0], [0]>} : vector<4x8x16xf32>, vector<4x8x16xf32>, vector<4x8x8xf32> -> vector<4x8x8xf32>
    "tpu.trace_stop"() : () -> ()
    %487 = vector.broadcast %45 : vector<4x1x8xf32> to vector<4x8x8xf32>
    %488 = arith.addf %486, %487 : vector<4x8x8xf32>
    %cst_223 = arith.constant dense<0xFF800000> : vector<4x8xf32>
    %489 = vector.multi_reduction <maximumf>, %488, %cst_223 [2] : vector<4x8x8xf32> to vector<4x8xf32>
    %490 = vector.shape_cast %489 : vector<4x8xf32> to vector<4x8x1xf32>
    %491 = vector.broadcast %490 : vector<4x8x1xf32> to vector<4x8x8xf32>
    %492 = arith.subf %488, %491 : vector<4x8x8xf32>
    %493 = math.exp %492 : vector<4x8x8xf32>
    %cst_224 = arith.constant dense<0.000000e+00> : vector<4x8xf32>
    %494 = vector.multi_reduction <add>, %493, %cst_224 [2] : vector<4x8x8xf32> to vector<4x8xf32>
    %495 = vector.shape_cast %494 : vector<4x8xf32> to vector<4x8x1xf32>
    %496 = tpu.reciprocal %495 {approx = true} : vector<4x8x1xf32> -> vector<4x8x1xf32>
    %497 = vector.broadcast %496 : vector<4x8x1xf32> to vector<4x8x8xf32>
    %498 = arith.mulf %493, %497 : vector<4x8x8xf32>
    "tpu.trace_start"() <{level = 10 : i32, message = "bqk,bkd->bqd"}> : () -> ()
    %cst_225 = arith.constant dense<0.000000e+00> : vector<4x8x16xf32>
    %499 = tpu.matmul %498, %485, %cst_225 {dimension_numbers = #tpu.dot_dimension_numbers<[2], [1], [1], [2], [0, 0, 0, 1, 1, 2], [0], [0]>} : vector<4x8x8xf32>, vector<4x8x16xf32>, vector<4x8x16xf32> -> vector<4x8x16xf32>
    "tpu.trace_stop"() : () -> ()
    %500 = vector.shape_cast %499 : vector<4x8x16xf32> to vector<2x16x16xf32>
    %501 = vector.extract_strided_slice %500 {offsets = [0, 0, 0], sizes = [1, 16, 16], strides = [1, 1, 1]} : vector<2x16x16xf32> to vector<1x16x16xf32>
    %502 = vector.shape_cast %501 : vector<1x16x16xf32> to vector<16x16xf32>
    %503 = vector.extract_strided_slice %427 {offsets = [0, 0, 0], sizes = [1, 16, 32], strides = [1, 1, 1]} : vector<2x16x32xf32> to vector<1x16x32xf32>
    %504 = vector.shape_cast %503 : vector<1x16x32xf32> to vector<16x32xf32>
    %cst_226 = arith.constant dense<0.000000e+00> : vector<16x32xf32>
    %505 = tpu.matmul %502, %504, %cst_226 {dimension_numbers = #tpu.dot_dimension_numbers<[1], [0], [0], [1], [0, 0, 1, 1], [], []>} : vector<16x16xf32>, vector<16x32xf32>, vector<16x32xf32> -> vector<16x32xf32>
    %506 = vector.broadcast %429 : vector<1x32xf32> to vector<16x32xf32>
    %507 = arith.addf %506, %505 : vector<16x32xf32>
    %508 = vector.extract_strided_slice %500 {offsets = [1, 0, 0], sizes = [1, 16, 16], strides = [1, 1, 1]} : vector<2x16x16xf32> to vector<1x16x16xf32>
    %509 = vector.shape_cast %508 : vector<1x16x16xf32> to vector<16x16xf32>
    %510 = vector.extract_strided_slice %427 {offsets = [1, 0, 0], sizes = [1, 16, 32], strides = [1, 1, 1]} : vector<2x16x32xf32> to vector<1x16x32xf32>
    %511 = vector.shape_cast %510 : vector<1x16x32xf32> to vector<16x32xf32>
    %cst_227 = arith.constant dense<0.000000e+00> : vector<16x32xf32>
    %512 = tpu.matmul %509, %511, %cst_227 {dimension_numbers = #tpu.dot_dimension_numbers<[1], [0], [0], [1], [0, 0, 1, 1], [], []>} : vector<16x16xf32>, vector<16x32xf32>, vector<16x32xf32> -> vector<16x32xf32>
    %513 = arith.addf %507, %512 : vector<16x32xf32>
    %514 = arith.addf %410, %513 : vector<16x32xf32>
    %c2_228 = arith.constant 2 : index
    %c0_229 = arith.constant 0 : index
    %c0_230 = arith.constant 0 : index
    %515 = vector.load %arg14[%c2_228, %c0_229, %c0_230] : memref<4x1x32xf32, #tpu.memory_space<vmem>>, vector<1x1x32xf32>
    %516 = vector.shape_cast %515 : vector<1x1x32xf32> to vector<1x32xf32>
    %c2_231 = arith.constant 2 : index
    %c0_232 = arith.constant 0 : index
    %c0_233 = arith.constant 0 : index
    %517 = vector.load %arg15[%c2_231, %c0_232, %c0_233] : memref<4x1x32xf32, #tpu.memory_space<vmem>>, vector<1x1x32xf32>
    %518 = vector.shape_cast %517 : vector<1x1x32xf32> to vector<1x32xf32>
    %cst_234 = arith.constant dense<0.000000e+00> : vector<16xf32>
    %519 = vector.multi_reduction <add>, %514, %cst_234 [1] : vector<16x32xf32> to vector<16xf32>
    %520 = vector.shape_cast %519 : vector<16xf32> to vector<16x1xf32>
    %cst_235 = arith.constant 3.200000e+01 : f32
    %521 = vector.broadcast %cst_235 : f32 to vector<16x1xf32>
    %522 = arith.divf %520, %521 : vector<16x1xf32>
    %523 = vector.broadcast %522 : vector<16x1xf32> to vector<16x32xf32>
    %524 = arith.subf %514, %523 : vector<16x32xf32>
    %525 = arith.mulf %524, %524 : vector<16x32xf32>
    %cst_236 = arith.constant dense<0.000000e+00> : vector<16xf32>
    %526 = vector.multi_reduction <add>, %525, %cst_236 [1] : vector<16x32xf32> to vector<16xf32>
    %527 = vector.shape_cast %526 : vector<16xf32> to vector<16x1xf32>
    %cst_237 = arith.constant 3.200000e+01 : f32
    %528 = vector.broadcast %cst_237 : f32 to vector<16x1xf32>
    %529 = arith.divf %527, %528 : vector<16x1xf32>
    %530 = vector.broadcast %522 : vector<16x1xf32> to vector<16x32xf32>
    %531 = arith.subf %514, %530 : vector<16x32xf32>
    %cst_238 = arith.constant 9.99999974E-6 : f32
    %532 = vector.broadcast %cst_238 : f32 to vector<16x1xf32>
    %533 = arith.addf %529, %532 : vector<16x1xf32>
    %534 = math.rsqrt %533 : vector<16x1xf32>
    %535 = vector.broadcast %534 : vector<16x1xf32> to vector<16x32xf32>
    %536 = arith.mulf %531, %535 : vector<16x32xf32>
    %537 = vector.broadcast %516 : vector<1x32xf32> to vector<16x32xf32>
    %538 = arith.mulf %536, %537 : vector<16x32xf32>
    %539 = vector.broadcast %518 : vector<1x32xf32> to vector<16x32xf32>
    %540 = arith.addf %538, %539 : vector<16x32xf32>
    %c2_239 = arith.constant 2 : index
    %c0_240 = arith.constant 0 : index
    %c0_241 = arith.constant 0 : index
    %541 = vector.load %arg16[%c2_239, %c0_240, %c0_241] : memref<4x32x64xf32, #tpu.memory_space<vmem>>, vector<1x32x64xf32>
    %542 = vector.shape_cast %541 : vector<1x32x64xf32> to vector<32x64xf32>
    %cst_242 = arith.constant dense<0.000000e+00> : vector<16x64xf32>
    %543 = tpu.matmul %540, %542, %cst_242 {dimension_numbers = #tpu.dot_dimension_numbers<[1], [0], [0], [1], [0, 0, 1, 1], [], []>} : vector<16x32xf32>, vector<32x64xf32>, vector<16x64xf32> -> vector<16x64xf32>
    %c2_243 = arith.constant 2 : index
    %c0_244 = arith.constant 0 : index
    %c0_245 = arith.constant 0 : index
    %544 = vector.load %arg17[%c2_243, %c0_244, %c0_245] : memref<4x1x64xf32, #tpu.memory_space<vmem>>, vector<1x1x64xf32>
    %545 = vector.shape_cast %544 : vector<1x1x64xf32> to vector<1x64xf32>
    %546 = vector.broadcast %545 : vector<1x64xf32> to vector<16x64xf32>
    %547 = arith.addf %543, %546 : vector<16x64xf32>
    %cst_246 = arith.constant 5.000000e-01 : f32
    %548 = vector.broadcast %cst_246 : f32 to vector<16x64xf32>
    %549 = arith.mulf %548, %547 : vector<16x64xf32>
    %cst_247 = arith.constant 4.471500e-02 : f32
    %550 = vector.broadcast %cst_247 : f32 to vector<16x64xf32>
    %551 = arith.mulf %550, %547 : vector<16x64xf32>
    %552 = arith.mulf %551, %547 : vector<16x64xf32>
    %553 = arith.mulf %552, %547 : vector<16x64xf32>
    %554 = arith.addf %547, %553 : vector<16x64xf32>
    %cst_248 = arith.constant 0.797884583 : f32
    %555 = vector.broadcast %cst_248 : f32 to vector<16x64xf32>
    %556 = arith.mulf %555, %554 : vector<16x64xf32>
    %557 = math.tanh %556 : vector<16x64xf32>
    %cst_249 = arith.constant 1.000000e+00 : f32
    %558 = vector.broadcast %cst_249 : f32 to vector<16x64xf32>
    %559 = arith.addf %558, %557 : vector<16x64xf32>
    %560 = arith.mulf %549, %559 : vector<16x64xf32>
    %c2_250 = arith.constant 2 : index
    %c0_251 = arith.constant 0 : index
    %c0_252 = arith.constant 0 : index
    %561 = vector.load %arg18[%c2_250, %c0_251, %c0_252] : memref<4x64x32xf32, #tpu.memory_space<vmem>>, vector<1x64x32xf32>
    %562 = vector.shape_cast %561 : vector<1x64x32xf32> to vector<64x32xf32>
    %cst_253 = arith.constant dense<0.000000e+00> : vector<16x32xf32>
    %563 = tpu.matmul %560, %562, %cst_253 {dimension_numbers = #tpu.dot_dimension_numbers<[1], [0], [0], [1], [0, 0, 1, 1], [], []>} : vector<16x64xf32>, vector<64x32xf32>, vector<16x32xf32> -> vector<16x32xf32>
    %c2_254 = arith.constant 2 : index
    %c0_255 = arith.constant 0 : index
    %c0_256 = arith.constant 0 : index
    %564 = vector.load %arg19[%c2_254, %c0_255, %c0_256] : memref<4x1x32xf32, #tpu.memory_space<vmem>>, vector<1x1x32xf32>
    %565 = vector.shape_cast %564 : vector<1x1x32xf32> to vector<1x32xf32>
    %566 = vector.broadcast %565 : vector<1x32xf32> to vector<16x32xf32>
    %567 = arith.addf %563, %566 : vector<16x32xf32>
    %568 = arith.addf %540, %567 : vector<16x32xf32>
    %c2_257 = arith.constant 2 : index
    %c0_258 = arith.constant 0 : index
    %c0_259 = arith.constant 0 : index
    %569 = vector.load %arg20[%c2_257, %c0_258, %c0_259] : memref<4x1x32xf32, #tpu.memory_space<vmem>>, vector<1x1x32xf32>
    %570 = vector.shape_cast %569 : vector<1x1x32xf32> to vector<1x32xf32>
    %c2_260 = arith.constant 2 : index
    %c0_261 = arith.constant 0 : index
    %c0_262 = arith.constant 0 : index
    %571 = vector.load %arg21[%c2_260, %c0_261, %c0_262] : memref<4x1x32xf32, #tpu.memory_space<vmem>>, vector<1x1x32xf32>
    %572 = vector.shape_cast %571 : vector<1x1x32xf32> to vector<1x32xf32>
    %cst_263 = arith.constant dense<0.000000e+00> : vector<16xf32>
    %573 = vector.multi_reduction <add>, %568, %cst_263 [1] : vector<16x32xf32> to vector<16xf32>
    %574 = vector.shape_cast %573 : vector<16xf32> to vector<16x1xf32>
    %cst_264 = arith.constant 3.200000e+01 : f32
    %575 = vector.broadcast %cst_264 : f32 to vector<16x1xf32>
    %576 = arith.divf %574, %575 : vector<16x1xf32>
    %577 = vector.broadcast %576 : vector<16x1xf32> to vector<16x32xf32>
    %578 = arith.subf %568, %577 : vector<16x32xf32>
    %579 = arith.mulf %578, %578 : vector<16x32xf32>
    %cst_265 = arith.constant dense<0.000000e+00> : vector<16xf32>
    %580 = vector.multi_reduction <add>, %579, %cst_265 [1] : vector<16x32xf32> to vector<16xf32>
    %581 = vector.shape_cast %580 : vector<16xf32> to vector<16x1xf32>
    %cst_266 = arith.constant 3.200000e+01 : f32
    %582 = vector.broadcast %cst_266 : f32 to vector<16x1xf32>
    %583 = arith.divf %581, %582 : vector<16x1xf32>
    %584 = vector.broadcast %576 : vector<16x1xf32> to vector<16x32xf32>
    %585 = arith.subf %568, %584 : vector<16x32xf32>
    %cst_267 = arith.constant 9.99999974E-6 : f32
    %586 = vector.broadcast %cst_267 : f32 to vector<16x1xf32>
    %587 = arith.addf %583, %586 : vector<16x1xf32>
    %588 = math.rsqrt %587 : vector<16x1xf32>
    %589 = vector.broadcast %588 : vector<16x1xf32> to vector<16x32xf32>
    %590 = arith.mulf %585, %589 : vector<16x32xf32>
    %591 = vector.broadcast %570 : vector<1x32xf32> to vector<16x32xf32>
    %592 = arith.mulf %590, %591 : vector<16x32xf32>
    %593 = vector.broadcast %572 : vector<1x32xf32> to vector<16x32xf32>
    %594 = arith.addf %592, %593 : vector<16x32xf32>
    %595 = vector.shape_cast %594 : vector<16x32xf32> to vector<2x8x32xf32>
    %596 = vector.extract_strided_slice %595 {offsets = [0, 0, 0], sizes = [2, 1, 32], strides = [1, 1, 1]} : vector<2x8x32xf32> to vector<2x1x32xf32>
    %597 = vector.shape_cast %596 : vector<2x1x32xf32> to vector<2x32xf32>
    %c3 = arith.constant 3 : index
    %c0_268 = arith.constant 0 : index
    %c0_269 = arith.constant 0 : index
    %c0_270 = arith.constant 0 : index
    %598 = vector.load %arg6[%c3, %c0_268, %c0_269, %c0_270] : memref<4x2x32x16xf32, #tpu.memory_space<vmem>>, vector<1x2x32x16xf32>
    %599 = vector.shape_cast %598 : vector<1x2x32x16xf32> to vector<2x32x16xf32>
    %c3_271 = arith.constant 3 : index
    %c0_272 = arith.constant 0 : index
    %c0_273 = arith.constant 0 : index
    %c0_274 = arith.constant 0 : index
    %600 = vector.load %arg7[%c3_271, %c0_272, %c0_273, %c0_274] : memref<4x2x32x16xf32, #tpu.memory_space<vmem>>, vector<1x2x32x16xf32>
    %601 = vector.shape_cast %600 : vector<1x2x32x16xf32> to vector<2x32x16xf32>
    %c3_275 = arith.constant 3 : index
    %c0_276 = arith.constant 0 : index
    %c0_277 = arith.constant 0 : index
    %c0_278 = arith.constant 0 : index
    %602 = vector.load %arg8[%c3_275, %c0_276, %c0_277, %c0_278] : memref<4x2x32x16xf32, #tpu.memory_space<vmem>>, vector<1x2x32x16xf32>
    %603 = vector.shape_cast %602 : vector<1x2x32x16xf32> to vector<2x32x16xf32>
    %c3_279 = arith.constant 3 : index
    %c0_280 = arith.constant 0 : index
    %c0_281 = arith.constant 0 : index
    %c0_282 = arith.constant 0 : index
    %604 = vector.load %arg9[%c3_279, %c0_280, %c0_281, %c0_282] : memref<4x2x1x16xf32, #tpu.memory_space<vmem>>, vector<1x2x1x16xf32>
    %605 = vector.shape_cast %604 : vector<1x2x1x16xf32> to vector<2x1x16xf32>
    %c3_283 = arith.constant 3 : index
    %c0_284 = arith.constant 0 : index
    %c0_285 = arith.constant 0 : index
    %c0_286 = arith.constant 0 : index
    %606 = vector.load %arg10[%c3_283, %c0_284, %c0_285, %c0_286] : memref<4x2x1x16xf32, #tpu.memory_space<vmem>>, vector<1x2x1x16xf32>
    %607 = vector.shape_cast %606 : vector<1x2x1x16xf32> to vector<2x1x16xf32>
    %c3_287 = arith.constant 3 : index
    %c0_288 = arith.constant 0 : index
    %c0_289 = arith.constant 0 : index
    %c0_290 = arith.constant 0 : index
    %608 = vector.load %arg11[%c3_287, %c0_288, %c0_289, %c0_290] : memref<4x2x1x16xf32, #tpu.memory_space<vmem>>, vector<1x2x1x16xf32>
    %609 = vector.shape_cast %608 : vector<1x2x1x16xf32> to vector<2x1x16xf32>
    %c3_291 = arith.constant 3 : index
    %c0_292 = arith.constant 0 : index
    %c0_293 = arith.constant 0 : index
    %c0_294 = arith.constant 0 : index
    %610 = vector.load %arg12[%c3_291, %c0_292, %c0_293, %c0_294] : memref<4x2x16x32xf32, #tpu.memory_space<vmem>>, vector<1x2x16x32xf32>
    %611 = vector.shape_cast %610 : vector<1x2x16x32xf32> to vector<2x16x32xf32>
    %c3_295 = arith.constant 3 : index
    %c0_296 = arith.constant 0 : index
    %c0_297 = arith.constant 0 : index
    %612 = vector.load %arg13[%c3_295, %c0_296, %c0_297] : memref<4x1x32xf32, #tpu.memory_space<vmem>>, vector<1x1x32xf32>
    %613 = vector.shape_cast %612 : vector<1x1x32xf32> to vector<1x32xf32>
    %614 = vector.extract_strided_slice %599 {offsets = [0, 0, 0], sizes = [1, 32, 16], strides = [1, 1, 1]} : vector<2x32x16xf32> to vector<1x32x16xf32>
    %615 = vector.shape_cast %614 : vector<1x32x16xf32> to vector<32x16xf32>
    %cst_298 = arith.constant dense<0.000000e+00> : vector<16x16xf32>
    %616 = tpu.matmul %594, %615, %cst_298 {dimension_numbers = #tpu.dot_dimension_numbers<[1], [0], [0], [1], [0, 0, 1, 1], [], []>} : vector<16x32xf32>, vector<32x16xf32>, vector<16x16xf32> -> vector<16x16xf32>
    %617 = vector.extract_strided_slice %605 {offsets = [0, 0, 0], sizes = [1, 1, 16], strides = [1, 1, 1]} : vector<2x1x16xf32> to vector<1x1x16xf32>
    %618 = vector.shape_cast %617 : vector<1x1x16xf32> to vector<1x16xf32>
    %619 = vector.broadcast %618 : vector<1x16xf32> to vector<16x16xf32>
    %620 = arith.addf %616, %619 : vector<16x16xf32>
    %621 = vector.extract_strided_slice %601 {offsets = [0, 0, 0], sizes = [1, 32, 16], strides = [1, 1, 1]} : vector<2x32x16xf32> to vector<1x32x16xf32>
    %622 = vector.shape_cast %621 : vector<1x32x16xf32> to vector<32x16xf32>
    %cst_299 = arith.constant dense<0.000000e+00> : vector<16x16xf32>
    %623 = tpu.matmul %594, %622, %cst_299 {dimension_numbers = #tpu.dot_dimension_numbers<[1], [0], [0], [1], [0, 0, 1, 1], [], []>} : vector<16x32xf32>, vector<32x16xf32>, vector<16x16xf32> -> vector<16x16xf32>
    %624 = vector.extract_strided_slice %607 {offsets = [0, 0, 0], sizes = [1, 1, 16], strides = [1, 1, 1]} : vector<2x1x16xf32> to vector<1x1x16xf32>
    %625 = vector.shape_cast %624 : vector<1x1x16xf32> to vector<1x16xf32>
    %626 = vector.broadcast %625 : vector<1x16xf32> to vector<16x16xf32>
    %627 = arith.addf %623, %626 : vector<16x16xf32>
    %628 = vector.extract_strided_slice %603 {offsets = [0, 0, 0], sizes = [1, 32, 16], strides = [1, 1, 1]} : vector<2x32x16xf32> to vector<1x32x16xf32>
    %629 = vector.shape_cast %628 : vector<1x32x16xf32> to vector<32x16xf32>
    %cst_300 = arith.constant dense<0.000000e+00> : vector<16x16xf32>
    %630 = tpu.matmul %594, %629, %cst_300 {dimension_numbers = #tpu.dot_dimension_numbers<[1], [0], [0], [1], [0, 0, 1, 1], [], []>} : vector<16x32xf32>, vector<32x16xf32>, vector<16x16xf32> -> vector<16x16xf32>
    %631 = vector.extract_strided_slice %609 {offsets = [0, 0, 0], sizes = [1, 1, 16], strides = [1, 1, 1]} : vector<2x1x16xf32> to vector<1x1x16xf32>
    %632 = vector.shape_cast %631 : vector<1x1x16xf32> to vector<1x16xf32>
    %633 = vector.broadcast %632 : vector<1x16xf32> to vector<16x16xf32>
    %634 = arith.addf %630, %633 : vector<16x16xf32>
    %635 = vector.extract_strided_slice %599 {offsets = [1, 0, 0], sizes = [1, 32, 16], strides = [1, 1, 1]} : vector<2x32x16xf32> to vector<1x32x16xf32>
    %636 = vector.shape_cast %635 : vector<1x32x16xf32> to vector<32x16xf32>
    %cst_301 = arith.constant dense<0.000000e+00> : vector<16x16xf32>
    %637 = tpu.matmul %594, %636, %cst_301 {dimension_numbers = #tpu.dot_dimension_numbers<[1], [0], [0], [1], [0, 0, 1, 1], [], []>} : vector<16x32xf32>, vector<32x16xf32>, vector<16x16xf32> -> vector<16x16xf32>
    %638 = vector.extract_strided_slice %605 {offsets = [1, 0, 0], sizes = [1, 1, 16], strides = [1, 1, 1]} : vector<2x1x16xf32> to vector<1x1x16xf32>
    %639 = vector.shape_cast %638 : vector<1x1x16xf32> to vector<1x16xf32>
    %640 = vector.broadcast %639 : vector<1x16xf32> to vector<16x16xf32>
    %641 = arith.addf %637, %640 : vector<16x16xf32>
    %642 = vector.extract_strided_slice %601 {offsets = [1, 0, 0], sizes = [1, 32, 16], strides = [1, 1, 1]} : vector<2x32x16xf32> to vector<1x32x16xf32>
    %643 = vector.shape_cast %642 : vector<1x32x16xf32> to vector<32x16xf32>
    %cst_302 = arith.constant dense<0.000000e+00> : vector<16x16xf32>
    %644 = tpu.matmul %594, %643, %cst_302 {dimension_numbers = #tpu.dot_dimension_numbers<[1], [0], [0], [1], [0, 0, 1, 1], [], []>} : vector<16x32xf32>, vector<32x16xf32>, vector<16x16xf32> -> vector<16x16xf32>
    %645 = vector.extract_strided_slice %607 {offsets = [1, 0, 0], sizes = [1, 1, 16], strides = [1, 1, 1]} : vector<2x1x16xf32> to vector<1x1x16xf32>
    %646 = vector.shape_cast %645 : vector<1x1x16xf32> to vector<1x16xf32>
    %647 = vector.broadcast %646 : vector<1x16xf32> to vector<16x16xf32>
    %648 = arith.addf %644, %647 : vector<16x16xf32>
    %649 = vector.extract_strided_slice %603 {offsets = [1, 0, 0], sizes = [1, 32, 16], strides = [1, 1, 1]} : vector<2x32x16xf32> to vector<1x32x16xf32>
    %650 = vector.shape_cast %649 : vector<1x32x16xf32> to vector<32x16xf32>
    %cst_303 = arith.constant dense<0.000000e+00> : vector<16x16xf32>
    %651 = tpu.matmul %594, %650, %cst_303 {dimension_numbers = #tpu.dot_dimension_numbers<[1], [0], [0], [1], [0, 0, 1, 1], [], []>} : vector<16x32xf32>, vector<32x16xf32>, vector<16x16xf32> -> vector<16x16xf32>
    %652 = vector.extract_strided_slice %609 {offsets = [1, 0, 0], sizes = [1, 1, 16], strides = [1, 1, 1]} : vector<2x1x16xf32> to vector<1x1x16xf32>
    %653 = vector.shape_cast %652 : vector<1x1x16xf32> to vector<1x16xf32>
    %654 = vector.broadcast %653 : vector<1x16xf32> to vector<16x16xf32>
    %655 = arith.addf %651, %654 : vector<16x16xf32>
    %656 = vector.shape_cast %620 : vector<16x16xf32> to vector<1x16x16xf32>
    %657 = vector.shape_cast %641 : vector<16x16xf32> to vector<1x16x16xf32>
    %658 = tpu.concatenate %656, %657 in 0 : vector<1x16x16xf32>, vector<1x16x16xf32> -> vector<2x16x16xf32>
    %659 = vector.shape_cast %658 : vector<2x16x16xf32> to vector<4x8x16xf32>
    %cst_304 = arith.constant 2.500000e-01 : f32
    %660 = vector.broadcast %cst_304 : f32 to vector<4x8x16xf32>
    %661 = arith.mulf %659, %660 : vector<4x8x16xf32>
    %662 = vector.shape_cast %627 : vector<16x16xf32> to vector<1x16x16xf32>
    %663 = vector.shape_cast %648 : vector<16x16xf32> to vector<1x16x16xf32>
    %664 = tpu.concatenate %662, %663 in 0 : vector<1x16x16xf32>, vector<1x16x16xf32> -> vector<2x16x16xf32>
    %665 = vector.shape_cast %664 : vector<2x16x16xf32> to vector<4x8x16xf32>
    %666 = vector.shape_cast %634 : vector<16x16xf32> to vector<1x16x16xf32>
    %667 = vector.shape_cast %655 : vector<16x16xf32> to vector<1x16x16xf32>
    %668 = tpu.concatenate %666, %667 in 0 : vector<1x16x16xf32>, vector<1x16x16xf32> -> vector<2x16x16xf32>
    %669 = vector.shape_cast %668 : vector<2x16x16xf32> to vector<4x8x16xf32>
    "tpu.trace_start"() <{level = 10 : i32, message = "bqd,bkd->bqk"}> : () -> ()
    %cst_305 = arith.constant dense<0.000000e+00> : vector<4x8x8xf32>
    %670 = tpu.matmul %661, %665, %cst_305 {dimension_numbers = #tpu.dot_dimension_numbers<[2], [2], [1], [1], [0, 0, 0, 1, 1, 1], [0], [0]>} : vector<4x8x16xf32>, vector<4x8x16xf32>, vector<4x8x8xf32> -> vector<4x8x8xf32>
    "tpu.trace_stop"() : () -> ()
    %671 = vector.broadcast %45 : vector<4x1x8xf32> to vector<4x8x8xf32>
    %672 = arith.addf %670, %671 : vector<4x8x8xf32>
    %cst_306 = arith.constant dense<0xFF800000> : vector<4x8xf32>
    %673 = vector.multi_reduction <maximumf>, %672, %cst_306 [2] : vector<4x8x8xf32> to vector<4x8xf32>
    %674 = vector.shape_cast %673 : vector<4x8xf32> to vector<4x8x1xf32>
    %675 = vector.broadcast %674 : vector<4x8x1xf32> to vector<4x8x8xf32>
    %676 = arith.subf %672, %675 : vector<4x8x8xf32>
    %677 = math.exp %676 : vector<4x8x8xf32>
    %cst_307 = arith.constant dense<0.000000e+00> : vector<4x8xf32>
    %678 = vector.multi_reduction <add>, %677, %cst_307 [2] : vector<4x8x8xf32> to vector<4x8xf32>
    %679 = vector.shape_cast %678 : vector<4x8xf32> to vector<4x8x1xf32>
    %680 = tpu.reciprocal %679 {approx = true} : vector<4x8x1xf32> -> vector<4x8x1xf32>
    %681 = vector.broadcast %680 : vector<4x8x1xf32> to vector<4x8x8xf32>
    %682 = arith.mulf %677, %681 : vector<4x8x8xf32>
    "tpu.trace_start"() <{level = 10 : i32, message = "bqk,bkd->bqd"}> : () -> ()
    %cst_308 = arith.constant dense<0.000000e+00> : vector<4x8x16xf32>
    %683 = tpu.matmul %682, %669, %cst_308 {dimension_numbers = #tpu.dot_dimension_numbers<[2], [1], [1], [2], [0, 0, 0, 1, 1, 2], [0], [0]>} : vector<4x8x8xf32>, vector<4x8x16xf32>, vector<4x8x16xf32> -> vector<4x8x16xf32>
    "tpu.trace_stop"() : () -> ()
    %684 = vector.shape_cast %683 : vector<4x8x16xf32> to vector<2x16x16xf32>
    %685 = vector.extract_strided_slice %684 {offsets = [0, 0, 0], sizes = [1, 16, 16], strides = [1, 1, 1]} : vector<2x16x16xf32> to vector<1x16x16xf32>
    %686 = vector.shape_cast %685 : vector<1x16x16xf32> to vector<16x16xf32>
    %687 = vector.extract_strided_slice %611 {offsets = [0, 0, 0], sizes = [1, 16, 32], strides = [1, 1, 1]} : vector<2x16x32xf32> to vector<1x16x32xf32>
    %688 = vector.shape_cast %687 : vector<1x16x32xf32> to vector<16x32xf32>
    %cst_309 = arith.constant dense<0.000000e+00> : vector<16x32xf32>
    %689 = tpu.matmul %686, %688, %cst_309 {dimension_numbers = #tpu.dot_dimension_numbers<[1], [0], [0], [1], [0, 0, 1, 1], [], []>} : vector<16x16xf32>, vector<16x32xf32>, vector<16x32xf32> -> vector<16x32xf32>
    %690 = vector.broadcast %613 : vector<1x32xf32> to vector<16x32xf32>
    %691 = arith.addf %690, %689 : vector<16x32xf32>
    %692 = vector.extract_strided_slice %684 {offsets = [1, 0, 0], sizes = [1, 16, 16], strides = [1, 1, 1]} : vector<2x16x16xf32> to vector<1x16x16xf32>
    %693 = vector.shape_cast %692 : vector<1x16x16xf32> to vector<16x16xf32>
    %694 = vector.extract_strided_slice %611 {offsets = [1, 0, 0], sizes = [1, 16, 32], strides = [1, 1, 1]} : vector<2x16x32xf32> to vector<1x16x32xf32>
    %695 = vector.shape_cast %694 : vector<1x16x32xf32> to vector<16x32xf32>
    %cst_310 = arith.constant dense<0.000000e+00> : vector<16x32xf32>
    %696 = tpu.matmul %693, %695, %cst_310 {dimension_numbers = #tpu.dot_dimension_numbers<[1], [0], [0], [1], [0, 0, 1, 1], [], []>} : vector<16x16xf32>, vector<16x32xf32>, vector<16x32xf32> -> vector<16x32xf32>
    %697 = arith.addf %691, %696 : vector<16x32xf32>
    %698 = arith.addf %594, %697 : vector<16x32xf32>
    %c3_311 = arith.constant 3 : index
    %c0_312 = arith.constant 0 : index
    %c0_313 = arith.constant 0 : index
    %699 = vector.load %arg14[%c3_311, %c0_312, %c0_313] : memref<4x1x32xf32, #tpu.memory_space<vmem>>, vector<1x1x32xf32>
    %700 = vector.shape_cast %699 : vector<1x1x32xf32> to vector<1x32xf32>
    %c3_314 = arith.constant 3 : index
    %c0_315 = arith.constant 0 : index
    %c0_316 = arith.constant 0 : index
    %701 = vector.load %arg15[%c3_314, %c0_315, %c0_316] : memref<4x1x32xf32, #tpu.memory_space<vmem>>, vector<1x1x32xf32>
    %702 = vector.shape_cast %701 : vector<1x1x32xf32> to vector<1x32xf32>
    %cst_317 = arith.constant dense<0.000000e+00> : vector<16xf32>
    %703 = vector.multi_reduction <add>, %698, %cst_317 [1] : vector<16x32xf32> to vector<16xf32>
    %704 = vector.shape_cast %703 : vector<16xf32> to vector<16x1xf32>
    %cst_318 = arith.constant 3.200000e+01 : f32
    %705 = vector.broadcast %cst_318 : f32 to vector<16x1xf32>
    %706 = arith.divf %704, %705 : vector<16x1xf32>
    %707 = vector.broadcast %706 : vector<16x1xf32> to vector<16x32xf32>
    %708 = arith.subf %698, %707 : vector<16x32xf32>
    %709 = arith.mulf %708, %708 : vector<16x32xf32>
    %cst_319 = arith.constant dense<0.000000e+00> : vector<16xf32>
    %710 = vector.multi_reduction <add>, %709, %cst_319 [1] : vector<16x32xf32> to vector<16xf32>
    %711 = vector.shape_cast %710 : vector<16xf32> to vector<16x1xf32>
    %cst_320 = arith.constant 3.200000e+01 : f32
    %712 = vector.broadcast %cst_320 : f32 to vector<16x1xf32>
    %713 = arith.divf %711, %712 : vector<16x1xf32>
    %714 = vector.broadcast %706 : vector<16x1xf32> to vector<16x32xf32>
    %715 = arith.subf %698, %714 : vector<16x32xf32>
    %cst_321 = arith.constant 9.99999974E-6 : f32
    %716 = vector.broadcast %cst_321 : f32 to vector<16x1xf32>
    %717 = arith.addf %713, %716 : vector<16x1xf32>
    %718 = math.rsqrt %717 : vector<16x1xf32>
    %719 = vector.broadcast %718 : vector<16x1xf32> to vector<16x32xf32>
    %720 = arith.mulf %715, %719 : vector<16x32xf32>
    %721 = vector.broadcast %700 : vector<1x32xf32> to vector<16x32xf32>
    %722 = arith.mulf %720, %721 : vector<16x32xf32>
    %723 = vector.broadcast %702 : vector<1x32xf32> to vector<16x32xf32>
    %724 = arith.addf %722, %723 : vector<16x32xf32>
    %c3_322 = arith.constant 3 : index
    %c0_323 = arith.constant 0 : index
    %c0_324 = arith.constant 0 : index
    %725 = vector.load %arg16[%c3_322, %c0_323, %c0_324] : memref<4x32x64xf32, #tpu.memory_space<vmem>>, vector<1x32x64xf32>
    %726 = vector.shape_cast %725 : vector<1x32x64xf32> to vector<32x64xf32>
    %cst_325 = arith.constant dense<0.000000e+00> : vector<16x64xf32>
    %727 = tpu.matmul %724, %726, %cst_325 {dimension_numbers = #tpu.dot_dimension_numbers<[1], [0], [0], [1], [0, 0, 1, 1], [], []>} : vector<16x32xf32>, vector<32x64xf32>, vector<16x64xf32> -> vector<16x64xf32>
    %c3_326 = arith.constant 3 : index
    %c0_327 = arith.constant 0 : index
    %c0_328 = arith.constant 0 : index
    %728 = vector.load %arg17[%c3_326, %c0_327, %c0_328] : memref<4x1x64xf32, #tpu.memory_space<vmem>>, vector<1x1x64xf32>
    %729 = vector.shape_cast %728 : vector<1x1x64xf32> to vector<1x64xf32>
    %730 = vector.broadcast %729 : vector<1x64xf32> to vector<16x64xf32>
    %731 = arith.addf %727, %730 : vector<16x64xf32>
    %cst_329 = arith.constant 5.000000e-01 : f32
    %732 = vector.broadcast %cst_329 : f32 to vector<16x64xf32>
    %733 = arith.mulf %732, %731 : vector<16x64xf32>
    %cst_330 = arith.constant 4.471500e-02 : f32
    %734 = vector.broadcast %cst_330 : f32 to vector<16x64xf32>
    %735 = arith.mulf %734, %731 : vector<16x64xf32>
    %736 = arith.mulf %735, %731 : vector<16x64xf32>
    %737 = arith.mulf %736, %731 : vector<16x64xf32>
    %738 = arith.addf %731, %737 : vector<16x64xf32>
    %cst_331 = arith.constant 0.797884583 : f32
    %739 = vector.broadcast %cst_331 : f32 to vector<16x64xf32>
    %740 = arith.mulf %739, %738 : vector<16x64xf32>
    %741 = math.tanh %740 : vector<16x64xf32>
    %cst_332 = arith.constant 1.000000e+00 : f32
    %742 = vector.broadcast %cst_332 : f32 to vector<16x64xf32>
    %743 = arith.addf %742, %741 : vector<16x64xf32>
    %744 = arith.mulf %733, %743 : vector<16x64xf32>
    %c3_333 = arith.constant 3 : index
    %c0_334 = arith.constant 0 : index
    %c0_335 = arith.constant 0 : index
    %745 = vector.load %arg18[%c3_333, %c0_334, %c0_335] : memref<4x64x32xf32, #tpu.memory_space<vmem>>, vector<1x64x32xf32>
    %746 = vector.shape_cast %745 : vector<1x64x32xf32> to vector<64x32xf32>
    %cst_336 = arith.constant dense<0.000000e+00> : vector<16x32xf32>
    %747 = tpu.matmul %744, %746, %cst_336 {dimension_numbers = #tpu.dot_dimension_numbers<[1], [0], [0], [1], [0, 0, 1, 1], [], []>} : vector<16x64xf32>, vector<64x32xf32>, vector<16x32xf32> -> vector<16x32xf32>
    %c3_337 = arith.constant 3 : index
    %c0_338 = arith.constant 0 : index
    %c0_339 = arith.constant 0 : index
    %748 = vector.load %arg19[%c3_337, %c0_338, %c0_339] : memref<4x1x32xf32, #tpu.memory_space<vmem>>, vector<1x1x32xf32>
    %749 = vector.shape_cast %748 : vector<1x1x32xf32> to vector<1x32xf32>
    %750 = vector.broadcast %749 : vector<1x32xf32> to vector<16x32xf32>
    %751 = arith.addf %747, %750 : vector<16x32xf32>
    %752 = arith.addf %724, %751 : vector<16x32xf32>
    %c3_340 = arith.constant 3 : index
    %c0_341 = arith.constant 0 : index
    %c0_342 = arith.constant 0 : index
    %753 = vector.load %arg20[%c3_340, %c0_341, %c0_342] : memref<4x1x32xf32, #tpu.memory_space<vmem>>, vector<1x1x32xf32>
    %754 = vector.shape_cast %753 : vector<1x1x32xf32> to vector<1x32xf32>
    %c3_343 = arith.constant 3 : index
    %c0_344 = arith.constant 0 : index
    %c0_345 = arith.constant 0 : index
    %755 = vector.load %arg21[%c3_343, %c0_344, %c0_345] : memref<4x1x32xf32, #tpu.memory_space<vmem>>, vector<1x1x32xf32>
    %756 = vector.shape_cast %755 : vector<1x1x32xf32> to vector<1x32xf32>
    %cst_346 = arith.constant dense<0.000000e+00> : vector<16xf32>
    %757 = vector.multi_reduction <add>, %752, %cst_346 [1] : vector<16x32xf32> to vector<16xf32>
    %758 = vector.shape_cast %757 : vector<16xf32> to vector<16x1xf32>
    %cst_347 = arith.constant 3.200000e+01 : f32
    %759 = vector.broadcast %cst_347 : f32 to vector<16x1xf32>
    %760 = arith.divf %758, %759 : vector<16x1xf32>
    %761 = vector.broadcast %760 : vector<16x1xf32> to vector<16x32xf32>
    %762 = arith.subf %752, %761 : vector<16x32xf32>
    %763 = arith.mulf %762, %762 : vector<16x32xf32>
    %cst_348 = arith.constant dense<0.000000e+00> : vector<16xf32>
    %764 = vector.multi_reduction <add>, %763, %cst_348 [1] : vector<16x32xf32> to vector<16xf32>
    %765 = vector.shape_cast %764 : vector<16xf32> to vector<16x1xf32>
    %cst_349 = arith.constant 3.200000e+01 : f32
    %766 = vector.broadcast %cst_349 : f32 to vector<16x1xf32>
    %767 = arith.divf %765, %766 : vector<16x1xf32>
    %768 = vector.broadcast %760 : vector<16x1xf32> to vector<16x32xf32>
    %769 = arith.subf %752, %768 : vector<16x32xf32>
    %cst_350 = arith.constant 9.99999974E-6 : f32
    %770 = vector.broadcast %cst_350 : f32 to vector<16x1xf32>
    %771 = arith.addf %767, %770 : vector<16x1xf32>
    %772 = math.rsqrt %771 : vector<16x1xf32>
    %773 = vector.broadcast %772 : vector<16x1xf32> to vector<16x32xf32>
    %774 = arith.mulf %769, %773 : vector<16x32xf32>
    %775 = vector.broadcast %754 : vector<1x32xf32> to vector<16x32xf32>
    %776 = arith.mulf %774, %775 : vector<16x32xf32>
    %777 = vector.broadcast %756 : vector<1x32xf32> to vector<16x32xf32>
    %778 = arith.addf %776, %777 : vector<16x32xf32>
    %779 = vector.shape_cast %778 : vector<16x32xf32> to vector<2x8x32xf32>
    %780 = vector.extract_strided_slice %779 {offsets = [0, 0, 0], sizes = [2, 1, 32], strides = [1, 1, 1]} : vector<2x8x32xf32> to vector<2x1x32xf32>
    %781 = vector.shape_cast %780 : vector<2x1x32xf32> to vector<2x32xf32>
    %782 = tpu.concatenate %229, %413, %597, %781 in 1 : vector<2x32xf32>, vector<2x32xf32>, vector<2x32xf32>, vector<2x32xf32> -> vector<2x128xf32>
    %c0_351 = arith.constant 0 : index
    %c0_352 = arith.constant 0 : index
    %783 = vector.load %arg22[%c0_351, %c0_352] : memref<128x12xf32, #tpu.memory_space<vmem>>, vector<128x12xf32>
    %cst_353 = arith.constant dense<0.000000e+00> : vector<2x12xf32>
    %784 = tpu.matmul %782, %783, %cst_353 {dimension_numbers = #tpu.dot_dimension_numbers<[1], [0], [0], [1], [0, 0, 1, 1], [], []>} : vector<2x128xf32>, vector<128x12xf32>, vector<2x12xf32> -> vector<2x12xf32>
    %c0_354 = arith.constant 0 : index
    %c0_355 = arith.constant 0 : index
    %785 = vector.load %arg23[%c0_354, %c0_355] : memref<1x12xf32, #tpu.memory_space<vmem>>, vector<1x12xf32>
    %786 = vector.broadcast %785 : vector<1x12xf32> to vector<2x12xf32>
    %787 = arith.addf %784, %786 : vector<2x12xf32>
    %788 = vector.extract_strided_slice %787 {offsets = [0, 0], sizes = [2, 4], strides = [1, 1]} : vector<2x12xf32> to vector<2x4xf32>
    %cst_356 = arith.constant dense<0xFF800000> : vector<2xf32>
    %789 = vector.multi_reduction <maximumf>, %788, %cst_356 [1] : vector<2x4xf32> to vector<2xf32>
    %790 = vector.shape_cast %789 : vector<2xf32> to vector<2x1xf32>
    %791 = vector.broadcast %790 : vector<2x1xf32> to vector<2x4xf32>
    %792 = arith.subf %788, %791 : vector<2x4xf32>
    %793 = math.exp %792 : vector<2x4xf32>
    %cst_357 = arith.constant dense<0.000000e+00> : vector<2xf32>
    %794 = vector.multi_reduction <add>, %793, %cst_357 [1] : vector<2x4xf32> to vector<2xf32>
    %795 = vector.shape_cast %794 : vector<2xf32> to vector<2x1xf32>
    %796 = vector.broadcast %795 : vector<2x1xf32> to vector<2x4xf32>
    %797 = arith.divf %793, %796 : vector<2x4xf32>
    %798 = vector.extract_strided_slice %787 {offsets = [0, 4], sizes = [2, 4], strides = [1, 1]} : vector<2x12xf32> to vector<2x4xf32>
    %cst_358 = arith.constant dense<0xFF800000> : vector<2xf32>
    %799 = vector.multi_reduction <maximumf>, %798, %cst_358 [1] : vector<2x4xf32> to vector<2xf32>
    %800 = vector.shape_cast %799 : vector<2xf32> to vector<2x1xf32>
    %801 = vector.broadcast %800 : vector<2x1xf32> to vector<2x4xf32>
    %802 = arith.subf %798, %801 : vector<2x4xf32>
    %803 = math.exp %802 : vector<2x4xf32>
    %cst_359 = arith.constant dense<0.000000e+00> : vector<2xf32>
    %804 = vector.multi_reduction <add>, %803, %cst_359 [1] : vector<2x4xf32> to vector<2xf32>
    %805 = vector.shape_cast %804 : vector<2xf32> to vector<2x1xf32>
    %806 = vector.broadcast %805 : vector<2x1xf32> to vector<2x4xf32>
    %807 = arith.divf %803, %806 : vector<2x4xf32>
    %808 = vector.extract_strided_slice %787 {offsets = [0, 8], sizes = [2, 4], strides = [1, 1]} : vector<2x12xf32> to vector<2x4xf32>
    %cst_360 = arith.constant dense<0xFF800000> : vector<2xf32>
    %809 = vector.multi_reduction <maximumf>, %808, %cst_360 [1] : vector<2x4xf32> to vector<2xf32>
    %810 = vector.shape_cast %809 : vector<2xf32> to vector<2x1xf32>
    %811 = vector.broadcast %810 : vector<2x1xf32> to vector<2x4xf32>
    %812 = arith.subf %808, %811 : vector<2x4xf32>
    %813 = math.exp %812 : vector<2x4xf32>
    %cst_361 = arith.constant dense<0.000000e+00> : vector<2xf32>
    %814 = vector.multi_reduction <add>, %813, %cst_361 [1] : vector<2x4xf32> to vector<2xf32>
    %815 = vector.shape_cast %814 : vector<2xf32> to vector<2x1xf32>
    %816 = vector.broadcast %815 : vector<2x1xf32> to vector<2x4xf32>
    %817 = arith.divf %813, %816 : vector<2x4xf32>
    %818 = tpu.concatenate %797, %807, %817 in 1 : vector<2x4xf32>, vector<2x4xf32>, vector<2x4xf32> -> vector<2x12xf32>
    %c0_362 = arith.constant 0 : index
    %c0_363 = arith.constant 0 : index
    %819 = vector.load %arg24[%c0_362, %c0_363] : memref<2x12xf32, #tpu.memory_space<vmem>>, vector<2x12xf32>
    tpu.vector_store %arg24[%c0_362, %c0_363], %818 {strides = array<i32>} : memref<2x12xf32, #tpu.memory_space<vmem>>, vector<2x12xf32>,
    return
  }
}

</mosaic_0001>

<bundles_post_ra>
// kernel: vlsp2018_forward.1
= control target key start
LH: loop header
LB: loop body
LE: loop exit
PB: predicated region body
PF: predicated region fallthrough
CT: control target
= control target key end

     0   :  { %s5106_s0 = inlined_call_operand.vmem [shape: s32[16,1], index: 0, kind: input, shape index: {}]   ;;  %s5107_s1 = inlined_call_operand.vmem [shape: s32[2,8], index: 1, kind: input, shape index: {}]   ;;  %s5108_s2 = inlined_call_operand.vmem [shape: f32[128,32], index: 2, kind: input, shape index: {}]   ;;  %s5109_s3 = inlined_call_operand.vmem [shape: f32[64,32], index: 3, kind: input, shape index: {}]   ;;  %s5110_s4 = inlined_call_operand.vmem [shape: f32[1,32], index: 4, kind: input, shape index: {}]   ;;  %s5111_s5 = inlined_call_operand.vmem [shape: f32[1,32], index: 5, kind: input, shape index: {}]   ;;  %s5112_s6 = inlined_call_operand.vmem [shape: f32[4,2,32,16], index: 6, kind: input, shape index: {}]   ;;  %s5113_s7 = inlined_call_operand.vmem [shape: f32[4,2,32,16], index: 7, kind: input, shape index: {}]   ;;  %s5114_s8 = inlined_call_operand.vmem [shape: f32[4,2,32,16], index: 8, kind: input, shape index: {}]   ;;  %s5115_s9 = inlined_call_operand.vmem [shape: f32[4,2,1,16], index: 9, kind: input, shape index: {}]   ;;  %s5116_s10 = inlined_call_operand.vmem [shape: f32[4,2,1,16], index: 10, kind: input, shape index: {}]   ;;  %s5117_s11 = inlined_call_operand.vmem [shape: f32[4,2,1,16], index: 11, kind: input, shape index: {}]   ;;  %s5118_s12 = inlined_call_operand.vmem [shape: f32[4,2,16,32], index: 12, kind: input, shape index: {}]   ;;  %s5119_s13 = inlined_call_operand.vmem [shape: f32[4,1,32], index: 13, kind: input, shape index: {}]   ;;  %s5120_s14 = inlined_call_operand.vmem [shape: f32[4,1,32], index: 14, kind: input, shape index: {}]   ;;  %s5121_s15 = inlined_call_operand.vmem [shape: f32[4,1,32], index: 15, kind: input, shape index: {}]   ;;  %s5122_s16 = inlined_call_operand.vmem [shape: f32[4,32,64], index: 16, kind: input, shape index: {}]   ;;  %s5123_s17 = inlined_call_operand.vmem [shape: f32[4,1,64], index: 17, kind: input, shape index: {}]   ;;  %s5124_s18 = inlined_call_operand.vmem [shape: f32[4,64,32], index: 18, kind: input, shape index: {}]   ;;  %s5125_s19 = inlined_call_operand.vmem [shape: f32[4,1,32], index: 19, kind: input, shape index: {}]   ;;  %s5126_s20 = inlined_call_operand.vmem [shape: f32[4,1,32], index: 20, kind: input, shape index: {}]   ;;  %s5127_s21 = inlined_call_operand.vmem [shape: f32[4,1,32], index: 21, kind: input, shape index: {}]   ;;  %s5128_s22 = inlined_call_operand.vmem [shape: f32[128,12], index: 22, kind: input, shape index: {}]   ;;  %s5129_s23 = inlined_call_operand.vmem [shape: f32[1,12], index: 23, kind: input, shape index: {}]   ;;  %s5130_s24 = inlined_call_operand.hbm [shape: f32[2,12], index: 24, kind: output, shape index: {}]  }
   0x1   :  { %5137 = sst [smem:[#allocation5_spill]] %s5106_s0 }
   0x2   :  { %5138 = sst [smem:[#allocation6_spill]] %s5107_s1 }
   0x3   :  { %5139 = sst [smem:[#allocation7_spill]] %s5108_s2 }
   0x4   :  { %5140 = sst [smem:[#allocation8_spill]] %s5109_s3 }
   0x5   :  { %5141 = sst [smem:[#allocation9_spill]] %s5110_s4 }
   0x6   :  { %5142 = sst [smem:[#allocation10_spill]] %s5111_s5 }
   0x7   :  { %5143 = sst [smem:[#allocation11_spill]] %s5112_s6 }
   0x8   :  { %5144 = sst [smem:[#allocation12_spill]] %s5113_s7 }
   0x9   :  { %5145 = sst [smem:[#allocation13_spill]] %s5114_s8 }
   0xa   :  { %5146 = sst [smem:[#allocation14_spill]] %s5125_s19 }
   0xb   :  { %s5147_s27 = sld [smem:[#allocation5_spill]]  ;;  %v3815_v2 = vmov 0  }
   0xc   :  { %s5148_s19 = sld [smem:[#allocation7_spill]]  ;;  %3603 = vset.pattern.permute.xlu0 %v3815_v2 }
  0x11   :  { %v80_v0 = vld [vmem:[%s5147_s27] sm:$0xff]  ;;  %v81_v6 = vld [vmem:[%s5147_s27 + $0x8] sm:$0xff] }
  0x12   :  { %v109_v1 = vld [vmem:[%s5148_s19 + $0x78] sm:$0xff]  ;;  %v108_v3 = vld [vmem:[%s5148_s19 + $0x70] sm:$0xff]  ;;  %83 = vperm.xlu0 %3603, %v80_v0   ;;  %v107_v4 = vld [vmem:[%s5148_s19 + $0x68] sm:$0xff] }
  0x13   :  { %110 = vmatpush.msra.mxu0 %v109_v1  ;;  %v106_v5 = vld [vmem:[%s5148_s19 + $0x60] sm:$0xff]  ;;  %v105_v7 = vld [vmem:[%s5148_s19 + $0x58] sm:$0xff]  ;;  %v104_v8 = vld [vmem:[%s5148_s19 + $0x50] sm:$0xff] }
  0x14   :  { %v103_v9 = vld [vmem:[%s5148_s19 + $0x48] sm:$0xff]  ;;  %v102_v10 = vld [vmem:[%s5148_s19 + $0x40] sm:$0xff]  ;;  %v101_v11 = vld [vmem:[%s5148_s19 + $0x38] sm:$0xff] }
  0x15   :  { %111 = vmatpush.msra.mxu0 %v108_v3  ;;  %v100_v12 = vld [vmem:[%s5148_s19 + $0x30] sm:$0xff]  ;;  %v99_v13 = vld [vmem:[%s5148_s19 + $0x28] sm:$0xff]  ;;  %v98_v14 = vld [vmem:[%s5148_s19 + $0x20] sm:$0xff] }
  0x16   :  { %v97_v15 = vld [vmem:[%s5148_s19 + $0x18] sm:$0xff]  ;;  %v96_v16 = vld [vmem:[%s5148_s19 + $0x10] sm:$0xff] }
  0x17   :  { %112 = vmatpush.msra.mxu0 %v107_v4 }
  0x19   :  { %113 = vmatpush.msra.mxu0 %v106_v5 }
  0x1a   :  { %86 = vperm.xlu0 %3603, %v81_v6  }
  0x1b   :  { %114 = vmatpush.msra.mxu0 %v105_v7 }
  0x1d   :  { %115 = vmatpush.msra.mxu0 %v104_v8 }
  0x1f   :  { %116 = vmatpush.msra.mxu0 %v103_v9 }
  0x21   :  { %117 = vmatpush.msra.mxu0 %v102_v10 }
  0x23   :  { %118 = vmatpush.msra.mxu0 %v101_v11 }
  0x25   :  { %119 = vmatpush.msra.mxu0 %v100_v12 }
  0x27   :  { %120 = vmatpush.msra.mxu0 %v99_v13 }
  0x29   :  { %121 = vmatpush.msra.mxu0 %v98_v14 }
  0x2a   :  { %29 = vsyncpa [#allocation3], 0  ;;  %v95_v17 = vld [vmem:[%s5148_s19 + $0x8] sm:$0xff]  ;;  %v94_v18 = vld [vmem:[%s5148_s19] sm:$0xff]  ;;  %v78_v19 = vlaneseq  ;;  %v3816_v22 = vmov 1.0   ;;  %s5149_s30 = sld [smem:[#allocation8_spill]] }
  0x2b   :  { %122 = vmatpush.msra.mxu0 %v97_v15  ;;  %vm138_vm2 = vcmask 261120   ;;  %v3817_v31 = vmov 32.0   ;;  %s5150_s25 = sld [smem:[#allocation11_spill]]  ;;  %vm411_vm10 = vcmask 130048   ;;  %vm516_vm11 = vcmask 64512   ;;  %s3818_s19 = smov 32  }
  0x2c   :  { %v79_v20 = vand.u32 127, %v78_v19  ;;  %3659 = vrcp.f32 %v3817_v31  ;;  %s5151_s1 = sld [smem:[#allocation12_spill]] }
  0x2d   :  { %123 = vmatpush.msra.mxu0 %v96_v16  ;;  %s5152_s28 = sld [smem:[#allocation13_spill]] }
  0x2e   :  { %s5153_s7 = sld [smem:[#allocation9_spill]] }
  0x2f   :  { %124 = vmatpush.msra.mxu0 %v95_v17  ;;  %s5154_s3 = sld [smem:[#allocation10_spill]] }
  0x30   :  { %v133_v24 = vld [vmem:[%s5149_s30] sm:$0xff]  ;;  %s5155_s4 = sld [smem:[#allocation6_spill]] }
  0x31   :  { %125 = vmatpush.msra.mxu0 %v94_v18  ;;  %v209_v48 = vld [vmem:[%s5150_s25 + $0x18] sm:$0xff]  ;;  %v208_v51 = vld [vmem:[%s5150_s25 + $0x10] sm:$0xff]  ;;  %v207_v54 = vld [vmem:[%s5150_s25 + $0x8] sm:$0xff]  ;;  %s5156_s2 = sld [smem:[#allocation14_spill]] }
  0x32   :  { %v3660_v32 = vpop.eup %3659  ;;  %v217_v49 = vld [vmem:[%s5151_s1 + $0x18] sm:$0xff]  ;;  %262 = vmatpush.msra.mxu1 %v209_v48  ;;  %v216_v52 = vld [vmem:[%s5151_s1 + $0x10] sm:$0xff]  ;;  %v215_v55 = vld [vmem:[%s5151_s1 + $0x8] sm:$0xff] }
  0x33   :  { %v146_v33 = vmul.f32 32.0, %v3660_v32  ;;  %vm150_vm3 = vweird.f32 %v3660_v32  ;;  %v225_v50 = vld [vmem:[%s5152_s28 + $0x18] sm:$0xff]  ;;  %288 = vmatpush.msra.mxu2 %v217_v49  ;;  %v224_v53 = vld [vmem:[%s5152_s28 + $0x10] sm:$0xff]  ;;  %v223_v56 = vld [vmem:[%s5152_s28 + $0x8] sm:$0xff] }
  0x34   :  { %314 = vmatpush.msra.mxu3 %v225_v50  ;;  %263 = vmatpush.msra.mxu1 %v208_v51  ;;  %v206_v57 = vld [vmem:[%s5150_s25] sm:$0xff]  ;;  %v213_v63 = vld [vmem:[%s5150_s25 + $0x38] sm:$0xff]  ;;  %v212_v2 = vld [vmem:[%s5150_s25 + $0x30] sm:$0xff] }
  0x35   :  { %v147_v34 = vsub.f32 1.0, %v146_v33  ;;  %289 = vmatpush.msra.mxu2 %v216_v52  ;;  %v214_v58 = vld [vmem:[%s5151_s1] sm:$0xff]  ;;  %v221_v0 = vld [vmem:[%s5151_s1 + $0x38] sm:$0xff]  ;;  %v220_v3 = vld [vmem:[%s5151_s1 + $0x30] sm:$0xff] }
  0x36   :  { %315 = vmatpush.msra.mxu3 %v224_v53  ;;  %264 = vmatpush.msra.mxu1 %v207_v54  ;;  %v222_v59 = vld [vmem:[%s5152_s28] sm:$0xff]  ;;  %v229_v1 = vld [vmem:[%s5152_s28 + $0x38] sm:$0xff]  ;;  %v228_v4 = vld [vmem:[%s5152_s28 + $0x30] sm:$0xff] }
  0x37   :  { %v148_v35 = vmul.f32 %v3660_v32, %v147_v34  ;;  %290 = vmatpush.msra.mxu2 %v215_v55  ;;  %v211_v6 = vld [vmem:[%s5150_s25 + $0x28] sm:$0xff]  ;;  %v210_v10 = vld [vmem:[%s5150_s25 + $0x20] sm:$0xff] }
  0x38   :  { %316 = vmatpush.msra.mxu3 %v223_v56  ;;  %265 = vmatpush.msra.mxu1 %v206_v57  ;;  %v219_v7 = vld [vmem:[%s5151_s1 + $0x28] sm:$0xff]  ;;  %v218_v11 = vld [vmem:[%s5151_s1 + $0x20] sm:$0xff] }
  0x39   :  { %v149_v36 = vadd.f32 %v3660_v32, %v148_v35  ;;  %291 = vmatpush.msra.mxu2 %v214_v58  ;;  %v227_v9 = vld [vmem:[%s5152_s28 + $0x28] sm:$0xff]  ;;  %v226_v14 = vld [vmem:[%s5152_s28 + $0x20] sm:$0xff] }
  0x3a   :  { %317 = vmatpush.msra.mxu3 %v222_v59  ;;  %340 = vmatpush.msrb.mxu1 %v213_v63  ;;  %v3609_v55 = vld [vmem:[%s5115_s9 + $0x1] ss:$0 sm:$0xff] }
  0x3b   :  { %v4008_v37 = vsel %vm150_vm3, %v3660_v32, %v149_v36  ;;  %366 = vmatpush.msrb.mxu2 %v221_v0  ;;  %v3610_v56 = vld [vmem:[%s5116_s10 + $0x1] ss:$0 sm:$0xff]  ;;  %vm843_vm3 = vcmask 523264  }
  0x3c   :  { %392 = vmatpush.msrb.mxu3 %v229_v1  ;;  %341 = vmatpush.msrb.mxu1 %v212_v2  ;;  %v3611_v57 = vld [vmem:[%s5117_s11 + $0x1] ss:$0 sm:$0xff] }
  0x3d   :  { %367 = vmatpush.msrb.mxu2 %v220_v3 }
  0x3e   :  { %393 = vmatpush.msrb.mxu3 %v228_v4  ;;  %342 = vmatpush.msrb.mxu1 %v211_v6 }
  0x3f   :  { %368 = vmatpush.msrb.mxu2 %v219_v7  ;;  %v200_v7 = vld [vmem:[%s5155_s4] sm:$0x3] }
  0x40   :  { %394 = vmatpush.msrb.mxu3 %v227_v9  ;;  %343 = vmatpush.msrb.mxu1 %v210_v10 }
  0x41   :  { %369 = vmatpush.msrb.mxu2 %v218_v11 }
  0x42   :  { %395 = vmatpush.msrb.mxu3 %v226_v14 }
  0x84   :  { %v84_v21 = vpop.permute.xlu0 %83 }
  0x85   :  { %vm88_vm0 = vcmp.eq.s32.totalorder %v79_v20, %v84_v21 }
  0x86   :  { %3304 = vmatmul.msk.f32.vlgmr.msra.gmra.mxu0 %vm88_vm0, %v3816_v22 }
  0x8c   :  { %v87_v23 = vpop.permute.xlu0 %86 }
  0x8d   :  { %vm89_vm1 = vcmp.eq.s32.totalorder %v79_v20, %v87_v23 }
  0x8e   :  { %3305 = vmatmul.msk.f32.gmra.mxu0 %vm89_vm1, %v3816_v22  ;;  %v3604_v22 = vld [vmem:[%s5153_s7] ss:$0 sm:$0xff] }
 0x103   :  { %v127_v25 = vpop.f32.mrf.mxu0 }
 0x104   :  { %v134_v26 = vadd.f32 %v133_v24, %v127_v25  ;;  %v3605_v25 = vld [vmem:[%s5154_s3] ss:$0 sm:$0xff] }
 0x106   :  { %v139_v27 = vsel %vm138_vm2, %v134_v26, 0.0 }
 0x107   :  { %140 = vadd.xlane.f32.xlu1 %v139_v27 }
 0x10b   :  { %v130_v28 = vpop.f32.mrf.mxu0 }
 0x10c   :  { %v135_v29 = vadd.f32 %v133_v24, %v130_v28 }
 0x10e   :  { %v142_v30 = vsel %vm138_vm2, %v135_v29, 0.0 }
 0x10f   :  { %143 = vadd.xlane.f32.xlu1 %v142_v30 }
 0x17a   :  { %v141_v38 = vpop.xlane.xlu1 %140 }
 0x17b   :  { %v152_v39 = vmul.f32 %v4008_v37, %v141_v38  ;;  %v3606_v38 = vld [vmem:[%s5115_s9] ss:$0 sm:$0xff] }
 0x17d   :  { %v4011_v40 = vsub.f32 %v134_v26, %v152_v39  ;;  %v3607_v39 = vld [vmem:[%s5116_s10] ss:$0 sm:$0xff] }
 0x17f   :  { %v156_v41 = vmul.f32 %v4011_v40, %v4011_v40 }
 0x181   :  { %v158_v42 = vsel %vm138_vm2, %v156_v41, 0.0 }
 0x182   :  { %159 = vadd.xlane.f32.xlu2 %v158_v42  ;;  %v144_v43 = vpop.xlane.xlu1 %143 }
 0x183   :  { %v153_v44 = vmul.f32 %v4008_v37, %v144_v43 }
 0x185   :  { %v4017_v45 = vsub.f32 %v135_v29, %v153_v44 }
 0x187   :  { %v157_v46 = vmul.f32 %v4017_v45, %v4017_v45 }
 0x189   :  { %v161_v47 = vsel %vm138_vm2, %v157_v46, 0.0 }
 0x18a   :  { %162 = vadd.xlane.f32.xlu2 %v161_v47 }
 0x1f5   :  { %v160_v60 = vpop.xlane.xlu2 %159 }
 0x1f6   :  { %v164_v61 = vmul.f32 %v160_v60, %v4008_v37 }
 0x1f8   :  { %v166_v62 = vadd.f32 1e-05, %v164_v61 }
 0x1fa   :  { %3661 = vrsqrt.f32 %v166_v62  ;;  %vm174_vm5 = vweird.f32 %v166_v62 }
 0x1fd   :  { %v163_v5 = vpop.xlane.xlu2 %162 }
 0x1fe   :  { %v165_v8 = vmul.f32 %v163_v5, %v4008_v37 }
 0x200   :  { %v3662_v12 = vpop.eup %3661  ;;  %v167_v13 = vadd.f32 1e-05, %v165_v8  ;;  %v201_v8 = vcvt.s32.f32 %v200_v7 }
 0x201   :  { %v169_v15 = vmul.f32 %v3662_v12, %v166_v62  ;;  %vm175_vm4 = vweird.f32 %v3662_v12 }
 0x202   :  { %3663 = vrsqrt.f32 %v167_v13  ;;  %vm176_vm6 = vmor %vm174_vm5, %vm175_vm4  ;;  %vm184_vm8 = vweird.f32 %v167_v13  ;;  %v3306_v9 = vadd.f32 -1.0, %v201_v8 }
 0x203   :  { %v170_v16 = vmul.f32 %v3662_v12, %v169_v15 }
 0x204   :  { %v203_v10 = vmul.f32 1e+09, %v3306_v9 }
 0x205   :  { %v171_v17 = vmul.f32 0.5, %v170_v16 }
 0x206   :  { %v4161_v11 = vperm.slane %v203_v10, 0  ;;  %v205_v15 = vrot.slane %v203_v10, 1 }
 0x207   :  { %v172_v18 = vsub.f32 1.5, %v171_v17 }
 0x208   :  { %v3664_v19 = vpop.eup %3663  ;;  %v4165_v16 = vperm.slane %v205_v15, 0 }
 0x209   :  { %v173_v20 = vmul.f32 %v3662_v12, %v172_v18  ;;  %v179_v21 = vmul.f32 %v3664_v19, %v167_v13  ;;  %vm185_vm7 = vweird.f32 %v3664_v19 }
 0x20a   :  { %vm186_vm9 = vmor %vm184_vm8, %vm185_vm7 }
 0x20b   :  { %v177_v23 = vsel %vm176_vm6, %v3662_v12, %v173_v20  ;;  %v180_v24 = vmul.f32 %v3664_v19, %v179_v21 }
 0x20c   :  { %v188_v26 = vmul.f32 %v177_v23, %v4011_v40  ;;  %v3608_v40 = vld [vmem:[%s5117_s11] ss:$0 sm:$0xff] }
 0x20d   :  { %v181_v27 = vmul.f32 0.5, %v180_v24 }
 0x20e   :  { %v193_v28 = vmul.f32 %v3604_v22, %v188_v26 }
 0x20f   :  { %v182_v29 = vsub.f32 1.5, %v181_v27 }
 0x210   :  { %v4103_v30 = vadd.f32 %v3605_v25, %v193_v28 }
 0x211   :  { %v183_v31 = vmul.f32 %v3664_v19, %v182_v29 }
 0x212   :  { %3307 = vmatmul.msk.f32.vlgmr.msra.gmra.mxu1 %vm138_vm2, %v4103_v30  ;;  %3309 = vmatmul.msk.f32.vlgmr.msra.gmra.mxu2 %vm138_vm2, %v4103_v30 }
 0x213   :  { %v187_v32 = vsel %vm186_vm9, %v3664_v19, %v183_v31  ;;  %3311 = vmatmul.msk.f32.vlgmr.msra.gmra.mxu3 %vm138_vm2, %v4103_v30 }
 0x214   :  { %v189_v33 = vmul.f32 %v187_v32, %v4017_v45 }
 0x216   :  { %v194_v34 = vmul.f32 %v3604_v22, %v189_v33 }
 0x218   :  { %v4112_v35 = vadd.f32 %v3605_v25, %v194_v34 }
 0x21a   :  { %3308 = vmatmul.msk.f32.gmra.mxu1 %vm138_vm2, %v4112_v35  ;;  %3310 = vmatmul.msk.f32.gmra.mxu2 %vm138_vm2, %v4112_v35 }
 0x21b   :  { %3312 = vmatmul.msk.f32.gmra.mxu3 %vm138_vm2, %v4112_v35 }
 0x222   :  { %3313 = vmatmul.msk.f32.vlgmr.msrb.gmra.mxu1 %vm138_vm2, %v4103_v30  ;;  %3315 = vmatmul.msk.f32.vlgmr.msrb.gmra.mxu2 %vm138_vm2, %v4103_v30 }
 0x223   :  { %3317 = vmatmul.msk.f32.vlgmr.msrb.gmra.mxu3 %vm138_vm2, %v4103_v30 }
 0x22a   :  { %3314 = vmatmul.msk.f32.gmra.mxu1 %vm138_vm2, %v4112_v35  ;;  %3316 = vmatmul.msk.f32.gmra.mxu2 %vm138_vm2, %v4112_v35 }
 0x22b   :  { %3318 = vmatmul.msk.f32.gmra.mxu3 %vm138_vm2, %v4112_v35 }
 0x28f   :  { %v267_v36 = vpop.f32.mrf.mxu1 }
 0x290   :  { %v268_v41 = vadd.f32 %v3606_v38, %v267_v36 }
 0x292   :  { %v403_v47 = vmul.f32 0.25, %v268_v41 }
 0x295   :  { %v293_v42 = vpop.f32.mrf.mxu2 }
 0x296   :  { %v294_v43 = vadd.f32 %v3607_v39, %v293_v42  ;;  %v319_v44 = vpop.f32.mrf.mxu3 }
 0x297   :  { %v320_v45 = vadd.f32 %v3608_v40, %v319_v44  ;;  %v270_v46 = vpop.f32.mrf.mxu1 }
 0x298   :  { %3319 = vmatpush.xpose.msk.msra.mxu1 %vm411_vm10, %v294_v43  ;;  %v271_v48 = vadd.f32 %v3606_v38, %v270_v46 }
 0x29a   :  { %v404_v54 = vmul.f32 0.25, %v271_v48 }
 0x29b   :  { %3320 = vmatmul.msk.f32.vlgmr.msra.gmra.mxu1 %vm411_vm10, %v403_v47 }
 0x29c   :  { %579 = vmatpush.msrb.mxu1 %v320_v45 }
 0x29d   :  { %v296_v49 = vpop.f32.mrf.mxu2 }
 0x29e   :  { %v297_v50 = vadd.f32 %v3607_v39, %v296_v49  ;;  %v322_v51 = vpop.f32.mrf.mxu3 }
 0x29f   :  { %v323_v52 = vadd.f32 %v3608_v40, %v322_v51  ;;  %v345_v53 = vpop.f32.mrf.mxu1 }
 0x2a0   :  { %3321 = vmatpush.xpose.msk.msra.mxu2 %vm411_vm10, %v297_v50  ;;  %v346_v58 = vadd.f32 %v3609_v55, %v345_v53 }
 0x2a2   :  { %v405_v63 = vmul.f32 0.25, %v346_v58 }
 0x2a3   :  { %3322 = vmatmul.msk.f32.vlgmr.msra.gmra.mxu2 %vm411_vm10, %v404_v54 }
 0x2a4   :  { %602 = vmatpush.msrb.mxu2 %v323_v52  ;;  %v237_v52 = vld [vmem:[%s5118_s12 + $0x8] sm:$0xff] }
 0x2a5   :  { %v371_v59 = vpop.f32.mrf.mxu2  ;;  %673 = vmatpush.msra.mxu1 %v237_v52 }
 0x2a6   :  { %v372_v60 = vadd.f32 %v3610_v56, %v371_v59  ;;  %v397_v61 = vpop.f32.mrf.mxu3 }
 0x2a7   :  { %v398_v62 = vadd.f32 %v3611_v57, %v397_v61  ;;  %v348_v0 = vpop.f32.mrf.mxu1 }
 0x2a8   :  { %3323 = vmatpush.xpose.msk.msra.mxu3 %vm411_vm10, %v372_v60  ;;  %v349_v1 = vadd.f32 %v3609_v55, %v348_v0  ;;  %v238_v0 = vld [vmem:[%s5118_s12 + $0x10] sm:$0xff] }
 0x2aa   :  { %v406_v6 = vmul.f32 0.25, %v349_v1 }
 0x2ab   :  { %3324 = vmatmul.msk.f32.vlgmr.msra.gmra.mxu3 %vm411_vm10, %v405_v63  ;;  %v239_v63 = vld [vmem:[%s5118_s12 + $0x18] sm:$0xff] }
 0x2ac   :  { %625 = vmatpush.msrb.mxu3 %v398_v62  ;;  %v236_v62 = vld [vmem:[%s5118_s12] sm:$0xff]  ;;  %707 = vmatpush.msra.mxu2 %v239_v63  ;;  %v838_v63 = vld [vmem:[%s5124_s18 + $0x38] sm:$0xff] }
 0x2ad   :  { %v374_v2 = vpop.f32.mrf.mxu2  ;;  %674 = vmatpush.msra.mxu1 %v236_v62 }
 0x2ae   :  { %v375_v3 = vadd.f32 %v3610_v56, %v374_v2  ;;  %v400_v4 = vpop.f32.mrf.mxu3  ;;  %708 = vmatpush.msra.mxu2 %v238_v0  ;;  %v837_v0 = vld [vmem:[%s5124_s18 + $0x30] sm:$0xff] }
 0x2af   :  { %v401_v5 = vadd.f32 %v3611_v57, %v400_v4 }
 0x2b0   :  { %3325 = vmatpush.xpose.msk.msrb.mxu0 %vm411_vm10, %v375_v3 }
 0x2b3   :  { %3326 = vmatmul.msk.f32.vlgmr.msrb.gmra.mxu0 %vm411_vm10, %v406_v6 }
 0x2b4   :  { %648 = vmatpush.msra.mxu0 %v401_v5  ;;  %v3612_v5 = vld [vmem:[%s5119_s13] ss:$0 sm:$0xff] }
 0x2b6   :  { %858 = vmatpush.msrb.mxu0 %v838_v63  ;;  %v3344_v63 = vld [vmem:[%s5150_s25 + $0x68] sm:$0xff] }
 0x2b8   :  { %859 = vmatpush.msrb.mxu0 %v837_v0  ;;  %v3339_v0 = vld [vmem:[%s5150_s25 + $0x40] sm:$0xff] }
 0x318   :  { %v435_v12 = vpop.f32.mrf.mxu1 }
 0x319   :  { %v436_v13 = vadd.f32 %v435_v12, %v4161_v11 }
 0x31b   :  { %v517_v14 = vsel %vm516_vm11, %v436_v13, -inf }
 0x31c   :  { %518 = vmax.xlane.f32.xlu1 %v517_v14 }
 0x326   :  { %v461_v17 = vpop.f32.mrf.mxu2 }
 0x327   :  { %v462_v18 = vadd.f32 %v461_v17, %v4165_v16 }
 0x329   :  { %v520_v19 = vsel %vm516_vm11, %v462_v18, -inf }
 0x32a   :  { %521 = vmax.xlane.f32.xlu2 %v520_v19 }
 0x32e   :  { %v487_v20 = vpop.f32.mrf.mxu3 }
 0x32f   :  { %v488_v21 = vadd.f32 %v487_v20, %v4161_v11 }
 0x330   :  { %v513_v22 = vpop.f32.mrf.mxu0 }
 0x331   :  { %v514_v23 = vadd.f32 %v513_v22, %v4165_v16  ;;  %v523_v24 = vsel %vm516_vm11, %v488_v21, -inf }
 0x332   :  { %524 = vmax.xlane.f32.xlu0 %v523_v24 }
 0x333   :  { %v526_v25 = vsel %vm516_vm11, %v514_v23, -inf }
 0x334   :  { %527 = vmax.xlane.f32.xlu1 %v526_v25 }
 0x38f   :  { %v519_v26 = vpop.xlane.xlu1 %518 }
 0x390   :  { %v529_v27 = vsub.f32 %v436_v13, %v519_v26 }
 0x392   :  { %v533_v28 = vmul.f32 1.442695, %v529_v27 }
 0x394   :  { %3665 = vpow2.f32 %v533_v28 }
 0x39a   :  { %v3666_v29 = vpop.eup %3665 }
 0x39b   :  { %v541_v31 = vsel %vm516_vm11, %v3666_v29, 0.0 }
 0x39c   :  { %542 = vadd.xlane.f32.xlu1 %v541_v31  ;;  %v777_v31 = vld [vmem:[%s5122_s16 + $0x8] sm:$0xff] }
 0x39d   :  { %v522_v32 = vpop.xlane.xlu2 %521 }
 0x39e   :  { %v530_v38 = vsub.f32 %v462_v18, %v522_v32  ;;  %v776_v32 = vld [vmem:[%s5122_s16] sm:$0xff] }
 0x3a0   :  { %v535_v42 = vmul.f32 1.442695, %v530_v38 }
 0x3a5   :  { %v525_v33 = vpop.xlane.xlu0 %524 }
 0x3a6   :  { %v531_v34 = vsub.f32 %v488_v21, %v525_v33 }
 0x3a7   :  { %v528_v36 = vpop.xlane.xlu1 %527 }
 0x3a8   :  { %v537_v39 = vmul.f32 1.442695, %v531_v34  ;;  %v532_v40 = vsub.f32 %v514_v23, %v528_v36 }
 0x3aa   :  { %3667 = vpow2.f32 %v537_v39  ;;  %v539_v41 = vmul.f32 1.442695, %v532_v40 }
 0x3ac   :  { %3669 = vpow2.f32 %v539_v41 }
 0x3ad   :  { %3671 = vpow2.f32 %v535_v42 }
 0x3b0   :  { %v3668_v43 = vpop.eup %3667 }
 0x3b1   :  { %v547_v44 = vsel %vm516_vm11, %v3668_v43, 0.0 }
 0x3b2   :  { %v3670_v45 = vpop.eup %3669  ;;  %548 = vadd.xlane.f32.xlu2 %v547_v44 }
 0x3b3   :  { %v550_v46 = vsel %vm516_vm11, %v3670_v45, 0.0  ;;  %v3672_v47 = vpop.eup %3671 }
 0x3b4   :  { %551 = vadd.xlane.f32.xlu1 %v550_v46  ;;  %v544_v48 = vsel %vm516_vm11, %v3672_v47, 0.0 }
 0x3ba   :  { %545 = vadd.xlane.f32.xlu2 %v544_v48 }
 0x40f   :  { %v543_v49 = vpop.xlane.xlu1 %542 }
 0x410   :  { %3673 = vrcp.f32 %v543_v49  ;;  %v3613_v49 = vld [vmem:[%s5120_s14] ss:$0 sm:$0xff] }
 0x416   :  { %v3674_v50 = vpop.eup %3673 }
 0x417   :  { %v557_v51 = vmul.f32 %v3674_v50, %v3666_v29  ;;  %v778_v29 = vld [vmem:[%s5122_s16 + $0x10] sm:$0xff] }
 0x419   :  { %3327 = vmatmul.msk.f32.vlgmr.msrb.gmra.mxu1 %vm516_vm11, %v557_v51 }
 0x425   :  { %v549_v53 = vpop.xlane.xlu2 %548 }
 0x426   :  { %3675 = vrcp.f32 %v549_v53  ;;  %v3614_v53 = vld [vmem:[%s5121_s15] ss:$0 sm:$0xff] }
 0x427   :  { %v552_v54 = vpop.xlane.xlu1 %551 }
 0x428   :  { %3677 = vrcp.f32 %v552_v54 }
 0x42c   :  { %v3676_v55 = vpop.eup %3675 }
 0x42d   :  { %v559_v56 = vmul.f32 %v3676_v55, %v3668_v43  ;;  %v546_v57 = vpop.xlane.xlu2 %545 }
 0x42e   :  { %v3678_v58 = vpop.eup %3677  ;;  %3679 = vrcp.f32 %v546_v57 }
 0x42f   :  { %v560_v59 = vmul.f32 %v3678_v58, %v3670_v45  ;;  %3329 = vmatmul.msk.f32.vlgmr.msrb.gmra.mxu3 %vm516_vm11, %v559_v56 }
 0x431   :  { %3330 = vmatmul.msk.f32.vlgmr.msra.gmra.mxu0 %vm516_vm11, %v560_v59 }
 0x434   :  { %v3680_v60 = vpop.eup %3679 }
 0x435   :  { %v558_v61 = vmul.f32 %v3680_v60, %v3672_v47 }
 0x437   :  { %3328 = vmatmul.msk.f32.vlgmr.msrb.gmra.mxu2 %vm516_vm11, %v558_v61 }
 0x496   :  { %v581_v1 = vpop.f32.mrf.mxu1 }
 0x497   :  { %3331 = vmatmul.msk.f32.vlgmr.msra.gmra.mxu1 %vm411_vm10, %v581_v1  ;;  %v836_v1 = vld [vmem:[%s5124_s18 + $0x28] sm:$0xff] }
 0x498   :  { %860 = vmatpush.msrb.mxu0 %v836_v1  ;;  %v3347_v1 = vld [vmem:[%s5151_s1 + $0x40] sm:$0xff] }
 0x4ae   :  { %v650_v3 = vpop.f32.mrf.mxu0 }
 0x4b2   :  { %v627_v2 = vpop.f32.mrf.mxu3 }
 0x4b3   :  { %3333 = vmatmul.msk.f32.vlgmr.msra.gmra.mxu2 %vm411_vm10, %v627_v2  ;;  %v835_v2 = vld [vmem:[%s5124_s18 + $0x20] sm:$0xff] }
 0x4b4   :  { %861 = vmatpush.msrb.mxu0 %v835_v2  ;;  %v3355_v2 = vld [vmem:[%s5152_s28 + $0x40] sm:$0xff] }
 0x4ba   :  { %v604_v4 = vpop.f32.mrf.mxu2 }
 0x4bb   :  { %3332 = vmatmul.msk.f32.gmra.mxu1 %vm411_vm10, %v604_v4  ;;  %3334 = vmatmul.msk.f32.gmra.mxu2 %vm411_vm10, %v650_v3  ;;  %v834_v3 = vld [vmem:[%s5124_s18 + $0x18] sm:$0xff]  ;;  %v833_v4 = vld [vmem:[%s5124_s18 + $0x10] sm:$0xff] }
 0x4bc   :  { %862 = vmatpush.msrb.mxu0 %v834_v3  ;;  %v3343_v3 = vld [vmem:[%s5150_s25 + $0x60] sm:$0xff] }
 0x4be   :  { %863 = vmatpush.msrb.mxu0 %v833_v4 }
 0x514   :  { %v676_v6 = vpop.f32.mrf.mxu1 }
 0x515   :  { %v685_v7 = vadd.f32 %v3612_v5, %v676_v6  ;;  %v831_v6 = vld [vmem:[%s5124_s18] sm:$0xff] }
 0x536   :  { %v710_v8 = vpop.f32.mrf.mxu2 }
 0x537   :  { %v716_v9 = vadd.f32 %v710_v8, %v685_v7  ;;  %v3615_v7 = vld [vmem:[%s5123_s17] ss:$0 sm:$0xff] }
 0x538   :  { %v679_v12 = vpop.f32.mrf.mxu1 }
 0x539   :  { %v718_v10 = vadd.f32 %v716_v9, %v4103_v30  ;;  %v686_v14 = vadd.f32 %v3612_v5, %v679_v12  ;;  %v832_v5 = vld [vmem:[%s5124_s18 + $0x8] sm:$0xff] }
 0x53a   :  { %864 = vmatpush.msrb.mxu0 %v832_v5 }
 0x53b   :  { %v722_v13 = vsel %vm138_vm2, %v718_v10, 0.0 }
 0x53c   :  { %723 = vadd.xlane.f32.xlu2 %v722_v13  ;;  %865 = vmatpush.msrb.mxu0 %v831_v6 }
 0x53e   :  { %v713_v15 = vpop.f32.mrf.mxu2 }
 0x53f   :  { %v717_v17 = vadd.f32 %v713_v15, %v686_v14 }
 0x541   :  { %v719_v18 = vadd.f32 %v717_v17, %v4112_v35  ;;  %v779_v35 = vld [vmem:[%s5122_s16 + $0x18] sm:$0xff] }
 0x542   :  { %802 = vmatpush.msra.mxu3 %v779_v35 }
 0x543   :  { %v725_v19 = vsel %vm138_vm2, %v719_v18, 0.0 }
 0x544   :  { %726 = vadd.xlane.f32.xlu1 %v725_v19  ;;  %803 = vmatpush.msra.mxu3 %v778_v29 }
 0x546   :  { %804 = vmatpush.msra.mxu3 %v777_v31  ;;  %v3616_v31 = vld [vmem:[%s5156_s2] ss:$0 sm:$0xff] }
 0x548   :  { %805 = vmatpush.msra.mxu3 %v776_v32 }
 0x5af   :  { %v724_v20 = vpop.xlane.xlu2 %723 }
 0x5b0   :  { %v728_v21 = vmul.f32 %v724_v20, %v4008_v37 }
 0x5b2   :  { %v730_v22 = vsub.f32 %v718_v10, %v728_v21 }
 0x5b4   :  { %v732_v23 = vmul.f32 %v730_v22, %v730_v22 }
 0x5b6   :  { %v734_v24 = vsel %vm138_vm2, %v732_v23, 0.0 }
 0x5b7   :  { %735 = vadd.xlane.f32.xlu2 %v734_v24  ;;  %v727_v30 = vpop.xlane.xlu1 %726 }
 0x5b8   :  { %v729_v25 = vmul.f32 %v727_v30, %v4008_v37 }
 0x5ba   :  { %v731_v26 = vsub.f32 %v719_v18, %v729_v25 }
 0x5bc   :  { %v733_v27 = vmul.f32 %v731_v26, %v731_v26 }
 0x5be   :  { %v737_v28 = vsel %vm138_vm2, %v733_v27, 0.0 }
 0x5bf   :  { %738 = vadd.xlane.f32.xlu1 %v737_v28 }
 0x62a   :  { %v736_v33 = vpop.xlane.xlu2 %735 }
 0x62b   :  { %v740_v34 = vmul.f32 %v736_v33, %v4008_v37 }
 0x62d   :  { %v742_v36 = vadd.f32 1e-05, %v740_v34 }
 0x62f   :  { %3681 = vrsqrt.f32 %v742_v36  ;;  %vm750_vm13 = vweird.f32 %v742_v36 }
 0x632   :  { %v739_v38 = vpop.xlane.xlu1 %738 }
 0x633   :  { %v741_v39 = vmul.f32 %v739_v38, %v4008_v37 }
 0x635   :  { %v3682_v40 = vpop.eup %3681  ;;  %v743_v41 = vadd.f32 1e-05, %v741_v39 }
 0x636   :  { %v745_v42 = vmul.f32 %v3682_v40, %v742_v36  ;;  %vm751_vm12 = vweird.f32 %v3682_v40 }
 0x637   :  { %3683 = vrsqrt.f32 %v743_v41  ;;  %vm752_vm14 = vmor %vm750_vm13, %vm751_vm12  ;;  %vm760_vm0 = vweird.f32 %v743_v41 }
 0x638   :  { %v746_v43 = vmul.f32 %v3682_v40, %v745_v42 }
 0x63a   :  { %v747_v44 = vmul.f32 0.5, %v746_v43 }
 0x63c   :  { %v748_v45 = vsub.f32 1.5, %v747_v44 }
 0x63d   :  { %v3684_v46 = vpop.eup %3683 }
 0x63e   :  { %v749_v47 = vmul.f32 %v3682_v40, %v748_v45  ;;  %v755_v48 = vmul.f32 %v3684_v46, %v743_v41  ;;  %vm761_vm15 = vweird.f32 %v3684_v46 }
 0x63f   :  { %vm762_vm1 = vmor %vm760_vm0, %vm761_vm15 }
 0x640   :  { %v753_v50 = vsel %vm752_vm14, %v3682_v40, %v749_v47  ;;  %v756_v51 = vmul.f32 %v3684_v46, %v755_v48 }
 0x641   :  { %v764_v52 = vmul.f32 %v753_v50, %v730_v22 }
 0x642   :  { %v757_v54 = vmul.f32 0.5, %v756_v51 }
 0x643   :  { %v769_v55 = vmul.f32 %v3613_v49, %v764_v52  ;;  %v3342_v52 = vld [vmem:[%s5150_s25 + $0x58] sm:$0xff] }
 0x644   :  { %v758_v56 = vsub.f32 1.5, %v757_v54  ;;  %v3358_v54 = vld [vmem:[%s5152_s28 + $0x58] sm:$0xff]  ;;  %995 = vmatpush.msrb.mxu1 %v3342_v52 }
 0x645   :  { %v774_v57 = vadd.f32 %v3614_v53, %v769_v55  ;;  %v3346_v55 = vld [vmem:[%s5150_s25 + $0x78] sm:$0xff]  ;;  %1047 = vmatpush.msrb.mxu3 %v3358_v54 }
 0x646   :  { %v759_v58 = vmul.f32 %v3684_v46, %v758_v56  ;;  %1073 = vmatpush.msra.mxu0 %v3346_v55  ;;  %v3341_v56 = vld [vmem:[%s5150_s25 + $0x50] sm:$0xff]  ;;  %v3620_v55 = vld [vmem:[%s5115_s9 + $0x3] ss:$0 sm:$0xff] }
 0x647   :  { %3335 = vmatmul.msk.f32.vlgmr.msra.gmra.mxu3 %vm138_vm2, %v774_v57  ;;  %996 = vmatpush.msrb.mxu1 %v3341_v56  ;;  %v3623_v56 = vld [vmem:[%s5116_s10 + $0x3] ss:$0 sm:$0xff] }
 0x648   :  { %v763_v59 = vsel %vm762_vm1, %v3684_v46, %v759_v58  ;;  %v3357_v58 = vld [vmem:[%s5152_s28 + $0x50] sm:$0xff] }
 0x649   :  { %v765_v60 = vmul.f32 %v763_v59, %v731_v26  ;;  %v3345_v59 = vld [vmem:[%s5150_s25 + $0x70] sm:$0xff]  ;;  %1048 = vmatpush.msrb.mxu3 %v3357_v58 }
 0x64a   :  { %1074 = vmatpush.msra.mxu0 %v3345_v59 }
 0x64b   :  { %v770_v61 = vmul.f32 %v3613_v49, %v765_v60  ;;  %v3340_v60 = vld [vmem:[%s5150_s25 + $0x48] sm:$0xff] }
 0x64c   :  { %997 = vmatpush.msrb.mxu1 %v3340_v60  ;;  %1075 = vmatpush.msra.mxu0 %v3344_v63 }
 0x64d   :  { %v775_v62 = vadd.f32 %v3614_v53, %v770_v61  ;;  %v3350_v53 = vld [vmem:[%s5151_s1 + $0x58] sm:$0xff]  ;;  %v3348_v61 = vld [vmem:[%s5151_s1 + $0x48] sm:$0xff] }
 0x64e   :  { %1021 = vmatpush.msrb.mxu2 %v3350_v53  ;;  %998 = vmatpush.msrb.mxu1 %v3339_v0 }
 0x64f   :  { %3336 = vmatmul.msk.f32.gmra.mxu3 %vm138_vm2, %v775_v62  ;;  %1076 = vmatpush.msra.mxu0 %v3343_v3 }
 0x6ca   :  { %v807_v8 = vpop.f32.mrf.mxu3 }
 0x6cb   :  { %v808_v9 = vadd.f32 %v3615_v7, %v807_v8  ;;  %v3362_v8 = vld [vmem:[%s5152_s28 + $0x78] sm:$0xff] }
 0x6cd   :  { %v815_v10 = vmul.f32 0.044715, %v808_v9  ;;  %v813_v30 = vmul.f32 0.5, %v808_v9 }
 0x6cf   :  { %v817_v12 = vmul.f32 %v815_v10, %v808_v9  ;;  %v3361_v10 = vld [vmem:[%s5152_s28 + $0x70] sm:$0xff] }
 0x6d1   :  { %v819_v13 = vmul.f32 %v817_v12, %v808_v9 }
 0x6d2   :  { %v810_v14 = vpop.f32.mrf.mxu3 }
 0x6d3   :  { %v821_v15 = vadd.f32 %v819_v13, %v808_v9  ;;  %v811_v17 = vadd.f32 %v3615_v7, %v810_v14  ;;  %v3354_v7 = vld [vmem:[%s5151_s1 + $0x78] sm:$0xff]  ;;  %v3353_v9 = vld [vmem:[%s5151_s1 + $0x70] sm:$0xff]  ;;  %v3352_v13 = vld [vmem:[%s5151_s1 + $0x68] sm:$0xff] }
 0x6d4   :  { %1099 = vmatpush.msra.mxu1 %v3354_v7  ;;  %v3360_v14 = vld [vmem:[%s5152_s28 + $0x68] sm:$0xff] }
 0x6d5   :  { %v823_v18 = vmul.f32 0.7978846, %v821_v15  ;;  %v816_v19 = vmul.f32 0.044715, %v811_v17  ;;  %v814_v28 = vmul.f32 0.5, %v811_v17 }
 0x6d6   :  { %1100 = vmatpush.msra.mxu1 %v3353_v9 }
 0x6d7   :  { %3685 = vtanh.f32 %v823_v18  ;;  %v818_v20 = vmul.f32 %v816_v19, %v811_v17  ;;  %v3359_v18 = vld [vmem:[%s5152_s28 + $0x60] sm:$0xff] }
 0x6d8   :  { %1101 = vmatpush.msra.mxu1 %v3352_v13 }
 0x6d9   :  { %v820_v21 = vmul.f32 %v818_v20, %v811_v17 }
 0x6db   :  { %v822_v22 = vadd.f32 %v820_v21, %v811_v17  ;;  %v3351_v17 = vld [vmem:[%s5151_s1 + $0x60] sm:$0xff] }
 0x6dc   :  { %1102 = vmatpush.msra.mxu1 %v3351_v17 }
 0x6dd   :  { %v3686_v23 = vpop.eup %3685  ;;  %v824_v24 = vmul.f32 0.7978846, %v822_v22 }
 0x6de   :  { %v827_v25 = vadd.f32 1.0, %v3686_v23 }
 0x6df   :  { %3687 = vtanh.f32 %v824_v24 }
 0x6e0   :  { %v829_v26 = vmul.f32 %v827_v25, %v813_v30 }
 0x6e2   :  { %3337 = vmatmul.msk.f32.vlgmr.msrb.gmra.mxu0 %vm843_vm3, %v829_v26 }
 0x6e5   :  { %v3688_v27 = vpop.eup %3687 }
 0x6e6   :  { %v828_v35 = vadd.f32 1.0, %v3688_v27  ;;  %v3617_v27 = vld [vmem:[%s5126_s20] ss:$0 sm:$0xff] }
 0x6e8   :  { %v830_v29 = vmul.f32 %v828_v35, %v814_v28 }
 0x6ea   :  { %3338 = vmatmul.msk.f32.gmra.mxu0 %vm843_vm3, %v830_v29  ;;  %v3618_v29 = vld [vmem:[%s5127_s21] ss:$0 sm:$0xff] }
 0x75f   :  { %v867_v32 = vpop.f32.mrf.mxu0 }
 0x760   :  { %v868_v33 = vadd.f32 %v3616_v31, %v867_v32 }
 0x762   :  { %v873_v34 = vadd.f32 %v868_v33, %v774_v57  ;;  %v3349_v57 = vld [vmem:[%s5151_s1 + $0x50] sm:$0xff] }
 0x763   :  { %1022 = vmatpush.msrb.mxu2 %v3349_v57 }
 0x764   :  { %v877_v36 = vsel %vm138_vm2, %v873_v34, 0.0 }
 0x765   :  { %878 = vadd.xlane.f32.xlu2 %v877_v36  ;;  %1023 = vmatpush.msrb.mxu2 %v3348_v61 }
 0x767   :  { %v870_v38 = vpop.f32.mrf.mxu0  ;;  %1024 = vmatpush.msrb.mxu2 %v3347_v1 }
 0x768   :  { %v871_v39 = vadd.f32 %v3616_v31, %v870_v38 }
 0x769   :  { %1125 = vmatpush.msra.mxu2 %v3362_v8 }
 0x76a   :  { %v874_v40 = vadd.f32 %v871_v39, %v775_v62  ;;  %v3356_v62 = vld [vmem:[%s5152_s28 + $0x48] sm:$0xff] }
 0x76b   :  { %1049 = vmatpush.msrb.mxu3 %v3356_v62  ;;  %1126 = vmatpush.msra.mxu2 %v3361_v10 }
 0x76c   :  { %v880_v41 = vsel %vm138_vm2, %v874_v40, 0.0 }
 0x76d   :  { %881 = vadd.xlane.f32.xlu0 %v880_v41  ;;  %1050 = vmatpush.msrb.mxu3 %v3355_v2  ;;  %v3624_v2 = vld [vmem:[%s5117_s11 + $0x3] ss:$0 sm:$0xff] }
 0x76e   :  { %1127 = vmatpush.msra.mxu2 %v3360_v14 }
 0x770   :  { %1128 = vmatpush.msra.mxu2 %v3359_v18 }
 0x7d8   :  { %v879_v42 = vpop.xlane.xlu2 %878 }
 0x7d9   :  { %v883_v43 = vmul.f32 %v879_v42, %v4008_v37 }
 0x7db   :  { %v4265_v44 = vsub.f32 %v873_v34, %v883_v43 }
 0x7dd   :  { %v887_v45 = vmul.f32 %v4265_v44, %v4265_v44 }
 0x7df   :  { %v889_v46 = vsel %vm138_vm2, %v887_v45, 0.0  ;;  %v3621_v45 = vld [vmem:[%s5116_s10 + $0x2] ss:$0 sm:$0xff] }
 0x7e0   :  { %890 = vadd.xlane.f32.xlu1 %v889_v46  ;;  %v882_v47 = vpop.xlane.xlu0 %881  ;;  %v3622_v46 = vld [vmem:[%s5117_s11 + $0x2] ss:$0 sm:$0xff] }
 0x7e1   :  { %v884_v48 = vmul.f32 %v882_v47, %v4008_v37 }
 0x7e3   :  { %v4271_v49 = vsub.f32 %v874_v40, %v884_v48 }
 0x7e5   :  { %v888_v50 = vmul.f32 %v4271_v49, %v4271_v49 }
 0x7e7   :  { %v892_v51 = vsel %vm138_vm2, %v888_v50, 0.0 }
 0x7e8   :  { %893 = vadd.xlane.f32.xlu2 %v892_v51 }
 0x853   :  { %v891_v4 = vpop.xlane.xlu1 %890 }
 0x854   :  { %v895_v5 = vmul.f32 %v891_v4, %v4008_v37 }
 0x856   :  { %v897_v6 = vadd.f32 1e-05, %v895_v5 }
 0x858   :  { %3689 = vrsqrt.f32 %v897_v6  ;;  %vm905_vm5 = vweird.f32 %v897_v6 }
 0x85b   :  { %v894_v12 = vpop.xlane.xlu2 %893 }
 0x85c   :  { %v896_v15 = vmul.f32 %v894_v12, %v4008_v37 }
 0x85e   :  { %v3690_v19 = vpop.eup %3689  ;;  %v898_v20 = vadd.f32 1e-05, %v896_v15 }
 0x85f   :  { %v900_v21 = vmul.f32 %v3690_v19, %v897_v6  ;;  %vm906_vm4 = vweird.f32 %v3690_v19 }
 0x860   :  { %3691 = vrsqrt.f32 %v898_v20  ;;  %vm907_vm6 = vmor %vm905_vm5, %vm906_vm4  ;;  %vm915_vm8 = vweird.f32 %v898_v20 }
 0x861   :  { %v901_v22 = vmul.f32 %v3690_v19, %v900_v21 }
 0x863   :  { %v902_v23 = vmul.f32 0.5, %v901_v22 }
 0x865   :  { %v903_v24 = vsub.f32 1.5, %v902_v23 }
 0x866   :  { %v3692_v30 = vpop.eup %3691 }
 0x867   :  { %v904_v25 = vmul.f32 %v3690_v19, %v903_v24  ;;  %v910_v26 = vmul.f32 %v3692_v30, %v898_v20  ;;  %vm916_vm7 = vweird.f32 %v3692_v30 }
 0x868   :  { %vm917_vm9 = vmor %vm915_vm8, %vm916_vm7 }
 0x869   :  { %v908_v28 = vsel %vm907_vm6, %v3690_v19, %v904_v25  ;;  %v911_v35 = vmul.f32 %v3692_v30, %v910_v26 }
 0x86a   :  { %v919_v31 = vmul.f32 %v908_v28, %v4265_v44  ;;  %v3619_v44 = vld [vmem:[%s5115_s9 + $0x2] ss:$0 sm:$0xff] }
 0x86b   :  { %v912_v32 = vmul.f32 0.5, %v911_v35 }
 0x86c   :  { %v924_v33 = vmul.f32 %v3617_v27, %v919_v31 }
 0x86d   :  { %v913_v34 = vsub.f32 1.5, %v912_v32 }
 0x86e   :  { %v4357_v36 = vadd.f32 %v3618_v29, %v924_v33 }
 0x86f   :  { %v914_v38 = vmul.f32 %v3692_v30, %v913_v34 }
 0x870   :  { %3374 = vmatmul.msk.f32.vlgmr.msrb.gmra.mxu1 %vm138_vm2, %v4357_v36  ;;  %3376 = vmatmul.msk.f32.vlgmr.msrb.gmra.mxu2 %vm138_vm2, %v4357_v36 }
 0x871   :  { %v918_v39 = vsel %vm917_vm9, %v3692_v30, %v914_v38  ;;  %3378 = vmatmul.msk.f32.vlgmr.msrb.gmra.mxu3 %vm138_vm2, %v4357_v36  ;;  %3380 = vmatmul.msk.f32.vlgmr.msra.gmra.mxu0 %vm138_vm2, %v4357_v36 }
 0x872   :  { %v920_v40 = vmul.f32 %v918_v39, %v4271_v49 }
 0x874   :  { %v925_v41 = vmul.f32 %v3617_v27, %v920_v40 }
 0x876   :  { %v4368_v42 = vadd.f32 %v3618_v29, %v925_v41 }
 0x878   :  { %3375 = vmatmul.msk.f32.gmra.mxu1 %vm138_vm2, %v4368_v42  ;;  %3377 = vmatmul.msk.f32.gmra.mxu2 %vm138_vm2, %v4368_v42 }
 0x879   :  { %3379 = vmatmul.msk.f32.gmra.mxu3 %vm138_vm2, %v4368_v42  ;;  %3381 = vmatmul.msk.f32.gmra.mxu0 %vm138_vm2, %v4368_v42 }
 0x880   :  { %3382 = vmatmul.msk.f32.vlgmr.msra.gmra.mxu1 %vm138_vm2, %v4357_v36  ;;  %3384 = vmatmul.msk.f32.vlgmr.msra.gmra.mxu2 %vm138_vm2, %v4357_v36 }
 0x888   :  { %3383 = vmatmul.msk.f32.gmra.mxu1 %vm138_vm2, %v4368_v42  ;;  %3385 = vmatmul.msk.f32.gmra.mxu2 %vm138_vm2, %v4368_v42 }
 0x8ed   :  { %v1000_v43 = vpop.f32.mrf.mxu1 }
 0x8ee   :  { %v1001_v47 = vadd.f32 %v3619_v44, %v1000_v43  ;;  %v1078_v54 = vpop.f32.mrf.mxu0 }
 0x8ef   :  { %v1079_v61 = vadd.f32 %v3620_v55, %v1078_v54 }
 0x8f0   :  { %v1136_v53 = vmul.f32 0.25, %v1001_v47 }
 0x8f1   :  { %v1138_v3 = vmul.f32 0.25, %v1079_v61 }
 0x8f3   :  { %v1026_v48 = vpop.f32.mrf.mxu2 }
 0x8f4   :  { %v1027_v49 = vadd.f32 %v3621_v45, %v1026_v48  ;;  %v1052_v50 = vpop.f32.mrf.mxu3 }
 0x8f5   :  { %v1053_v51 = vadd.f32 %v3622_v46, %v1052_v50  ;;  %v1003_v52 = vpop.f32.mrf.mxu1  ;;  %v3372_v50 = vld [vmem:[%s5118_s12 + $0x38] sm:$0xff] }
 0x8f6   :  { %3386 = vmatpush.xpose.msk.msra.mxu3 %vm411_vm10, %v1027_v49  ;;  %v1004_v57 = vadd.f32 %v3619_v44, %v1003_v52  ;;  %v1081_v4 = vpop.f32.mrf.mxu0 }
 0x8f7   :  { %1306 = vmatpush.msrb.mxu2 %v1053_v51  ;;  %v1082_v7 = vadd.f32 %v3620_v55, %v1081_v4 }
 0x8f8   :  { %v1137_v1 = vmul.f32 0.25, %v1004_v57 }
 0x8f9   :  { %3387 = vmatmul.msk.f32.vlgmr.msra.gmra.mxu3 %vm411_vm10, %v1136_v53  ;;  %v1139_v10 = vmul.f32 0.25, %v1082_v7 }
 0x8fb   :  { %v1029_v58 = vpop.f32.mrf.mxu2 }
 0x8fc   :  { %v1030_v59 = vadd.f32 %v3621_v45, %v1029_v58  ;;  %v1055_v60 = vpop.f32.mrf.mxu3 }
 0x8fd   :  { %v1056_v62 = vadd.f32 %v3622_v46, %v1055_v60  ;;  %v1104_v63 = vpop.f32.mrf.mxu1 }
 0x8fe   :  { %v1105_v0 = vadd.f32 %v3623_v56, %v1104_v63  ;;  %3388 = vmatpush.xpose.msk.msrb.mxu3 %vm411_vm10, %v1030_v59  ;;  %v3370_v63 = vld [vmem:[%s5118_s12 + $0x28] sm:$0xff] }
 0x8ff   :  { %1400 = vmatpush.msra.mxu2 %v3370_v63 }
 0x900   :  { %3390 = vmatpush.xpose.msk.msrb.mxu0 %vm411_vm10, %v1105_v0  ;;  %v3371_v0 = vld [vmem:[%s5118_s12 + $0x30] sm:$0xff] }
 0x901   :  { %3389 = vmatmul.msk.f32.vlgmr.msrb.gmra.mxu3 %vm411_vm10, %v1137_v1  ;;  %v3369_v1 = vld [vmem:[%s5118_s12 + $0x20] sm:$0xff] }
 0x902   :  { %1329 = vmatpush.msra.mxu3 %v1056_v62  ;;  %1401 = vmatpush.msra.mxu2 %v3369_v1 }
 0x903   :  { %v1130_v5 = vpop.f32.mrf.mxu2  ;;  %3391 = vmatmul.msk.f32.vlgmr.msrb.gmra.mxu0 %vm411_vm10, %v1138_v3 }
 0x904   :  { %v1131_v6 = vadd.f32 %v3624_v2, %v1130_v5  ;;  %1434 = vmatpush.msrb.mxu3 %v3372_v50 }
 0x905   :  { %v1107_v8 = vpop.f32.mrf.mxu1 }
 0x906   :  { %v1108_v9 = vadd.f32 %v3623_v56, %v1107_v8  ;;  %1352 = vmatpush.msra.mxu0 %v1131_v6  ;;  %1435 = vmatpush.msrb.mxu3 %v3371_v0  ;;  %v3625_v6 = vld [vmem:[%s5119_s13 + $0x1] ss:$0 sm:$0xff] }
 0x908   :  { %3392 = vmatpush.xpose.msk.msrb.mxu1 %vm411_vm10, %v1108_v9 }
 0x90b   :  { %v1133_v12 = vpop.f32.mrf.mxu2  ;;  %3393 = vmatmul.msk.f32.vlgmr.msrb.gmra.mxu1 %vm411_vm10, %v1139_v10 }
 0x90c   :  { %v1134_v13 = vadd.f32 %v3624_v2, %v1133_v12 }
 0x90e   :  { %1375 = vmatpush.msra.mxu1 %v1134_v13 }
 0x97c   :  { %v1163_v14 = vpop.f32.mrf.mxu3 }
 0x97d   :  { %v1164_v15 = vadd.f32 %v1163_v14, %v4161_v11 }
 0x97f   :  { %v1244_v17 = vsel %vm516_vm11, %v1164_v15, -inf }
 0x980   :  { %v1215_v18 = vpop.f32.mrf.mxu0  ;;  %1245 = vmax.xlane.f32.xlu0 %v1244_v17 }
 0x981   :  { %v1216_v19 = vadd.f32 %v1215_v18, %v4161_v11 }
 0x983   :  { %v1250_v20 = vsel %vm516_vm11, %v1216_v19, -inf }
 0x984   :  { %1251 = vmax.xlane.f32.xlu2 %v1250_v20  ;;  %v1189_v21 = vpop.f32.mrf.mxu3 }
 0x985   :  { %v1190_v22 = vadd.f32 %v1189_v21, %v4165_v16 }
 0x987   :  { %v1247_v23 = vsel %vm516_vm11, %v1190_v22, -inf }
 0x988   :  { %v1241_v24 = vpop.f32.mrf.mxu1  ;;  %1248 = vmax.xlane.f32.xlu1 %v1247_v23 }
 0x989   :  { %v1242_v30 = vadd.f32 %v1241_v24, %v4165_v16 }
 0x98b   :  { %v1253_v25 = vsel %vm516_vm11, %v1242_v30, -inf }
 0x98c   :  { %1254 = vmax.xlane.f32.xlu0 %v1253_v25 }
 0x9f3   :  { %v1246_v26 = vpop.xlane.xlu0 %1245 }
 0x9f4   :  { %v1256_v27 = vsub.f32 %v1164_v15, %v1246_v26 }
 0x9f6   :  { %v1260_v28 = vmul.f32 1.442695, %v1256_v27 }
 0x9f7   :  { %v1252_v35 = vpop.xlane.xlu2 %1251 }
 0x9f8   :  { %3693 = vpow2.f32 %v1260_v28  ;;  %v1258_v29 = vsub.f32 %v1216_v19, %v1252_v35 }
 0x9fa   :  { %v1264_v31 = vmul.f32 1.442695, %v1258_v29  ;;  %v3407_v29 = vld [vmem:[%s5122_s16 + $0x38] sm:$0xff] }
 0x9fb   :  { %v1249_v32 = vpop.xlane.xlu1 %1248  ;;  %1533 = vmatpush.msrb.mxu1 %v3407_v29 }
 0x9fc   :  { %3695 = vpow2.f32 %v1264_v31  ;;  %v1257_v33 = vsub.f32 %v1190_v22, %v1249_v32  ;;  %v3406_v31 = vld [vmem:[%s5122_s16 + $0x30] sm:$0xff]  ;;  %v3405_v32 = vld [vmem:[%s5122_s16 + $0x28] sm:$0xff] }
 0x9fd   :  { %1534 = vmatpush.msrb.mxu1 %v3406_v31 }
 0x9fe   :  { %v3694_v34 = vpop.eup %3693  ;;  %v1262_v38 = vmul.f32 1.442695, %v1257_v33  ;;  %v3404_v33 = vld [vmem:[%s5122_s16 + $0x20] sm:$0xff] }
 0x9ff   :  { %v1255_v39 = vpop.xlane.xlu0 %1254  ;;  %v1268_v40 = vsel %vm516_vm11, %v3694_v34, 0.0  ;;  %1535 = vmatpush.msrb.mxu1 %v3405_v32 }
 0xa00   :  { %3697 = vpow2.f32 %v1262_v38  ;;  %v1259_v41 = vsub.f32 %v1242_v30, %v1255_v39  ;;  %1269 = vadd.xlane.f32.xlu1 %v1268_v40 }
 0xa01   :  { %1536 = vmatpush.msrb.mxu1 %v3404_v33 }
 0xa02   :  { %v3696_v43 = vpop.eup %3695  ;;  %v1266_v44 = vmul.f32 1.442695, %v1259_v41 }
 0xa03   :  { %v1274_v45 = vsel %vm516_vm11, %v3696_v43, 0.0 }
 0xa04   :  { %3699 = vpow2.f32 %v1266_v44  ;;  %1275 = vadd.xlane.f32.xlu0 %v1274_v45 }
 0xa06   :  { %v3698_v46 = vpop.eup %3697 }
 0xa07   :  { %v1271_v47 = vsel %vm516_vm11, %v3698_v46, 0.0 }
 0xa08   :  { %1272 = vadd.xlane.f32.xlu2 %v1271_v47 }
 0xa0a   :  { %v3700_v48 = vpop.eup %3699 }
 0xa0b   :  { %v1277_v49 = vsel %vm516_vm11, %v3700_v48, 0.0 }
 0xa0c   :  { %1278 = vadd.xlane.f32.xlu1 %v1277_v49 }
 0xa73   :  { %v1270_v51 = vpop.xlane.xlu1 %1269 }
 0xa74   :  { %3701 = vrcp.f32 %v1270_v51 }
 0xa77   :  { %v1276_v52 = vpop.xlane.xlu0 %1275 }
 0xa78   :  { %3703 = vrcp.f32 %v1276_v52  ;;  %v3626_v52 = vld [vmem:[%s5120_s14 + $0x1] ss:$0 sm:$0xff] }
 0xa7a   :  { %v3702_v53 = vpop.eup %3701 }
 0xa7b   :  { %v1284_v54 = vmul.f32 %v3702_v53, %v3694_v34  ;;  %v1273_v55 = vpop.xlane.xlu2 %1272 }
 0xa7c   :  { %3705 = vrcp.f32 %v1273_v55 }
 0xa7d   :  { %3394 = vmatmul.msk.f32.vlgmr.msrb.gmra.mxu2 %vm516_vm11, %v1284_v54 }
 0xa7e   :  { %v3704_v56 = vpop.eup %3703 }
 0xa7f   :  { %v1286_v57 = vmul.f32 %v3704_v56, %v3696_v43  ;;  %v1279_v58 = vpop.xlane.xlu1 %1278  ;;  %v3627_v56 = vld [vmem:[%s5121_s15 + $0x1] ss:$0 sm:$0xff] }
 0xa80   :  { %3707 = vrcp.f32 %v1279_v58 }
 0xa81   :  { %3396 = vmatmul.msk.f32.vlgmr.msra.gmra.mxu0 %vm516_vm11, %v1286_v57 }
 0xa82   :  { %v3706_v59 = vpop.eup %3705 }
 0xa83   :  { %v1285_v60 = vmul.f32 %v3706_v59, %v3698_v46 }
 0xa85   :  { %3395 = vmatmul.msk.f32.vlgmr.msra.gmra.mxu3 %vm516_vm11, %v1285_v60 }
 0xa86   :  { %v3708_v61 = vpop.eup %3707 }
 0xa87   :  { %v1287_v62 = vmul.f32 %v3708_v61, %v3700_v48 }
 0xa89   :  { %3397 = vmatmul.msk.f32.vlgmr.msra.gmra.mxu1 %vm516_vm11, %v1287_v62 }
 0xafe   :  { %v1354_v2 = vpop.f32.mrf.mxu0 }
 0xaff   :  { %3400 = vmatmul.msk.f32.vlgmr.msrb.gmra.mxu3 %vm411_vm10, %v1354_v2  ;;  %v3418_v2 = vld [vmem:[%s5124_s18 + $0x78] sm:$0xff] }
 0xb00   :  { %v1308_v3 = vpop.f32.mrf.mxu2  ;;  %1590 = vmatpush.msra.mxu1 %v3418_v2  ;;  %v3433_v2 = vld [vmem:[%s5151_s1 + $0x88] sm:$0xff] }
 0xb01   :  { %3398 = vmatmul.msk.f32.vlgmr.msra.gmra.mxu2 %vm411_vm10, %v1308_v3  ;;  %v3417_v3 = vld [vmem:[%s5124_s18 + $0x70] sm:$0xff] }
 0xb02   :  { %1591 = vmatpush.msra.mxu1 %v3417_v3  ;;  %v3441_v3 = vld [vmem:[%s5152_s28 + $0x88] sm:$0xff] }
 0xb06   :  { %v1377_v4 = vpop.f32.mrf.mxu1 }
 0xb07   :  { %3401 = vmatmul.msk.f32.gmra.mxu3 %vm411_vm10, %v1377_v4  ;;  %v3416_v4 = vld [vmem:[%s5124_s18 + $0x68] sm:$0xff] }
 0xb08   :  { %v1331_v5 = vpop.f32.mrf.mxu3  ;;  %1592 = vmatpush.msra.mxu1 %v3416_v4  ;;  %v3429_v4 = vld [vmem:[%s5150_s25 + $0xa8] sm:$0xff] }
 0xb09   :  { %3399 = vmatmul.msk.f32.gmra.mxu2 %vm411_vm10, %v1331_v5  ;;  %v3415_v5 = vld [vmem:[%s5124_s18 + $0x60] sm:$0xff] }
 0xb0a   :  { %1593 = vmatpush.msra.mxu1 %v3415_v5  ;;  %v3424_v5 = vld [vmem:[%s5150_s25 + $0x80] sm:$0xff] }
 0xb82   :  { %v1437_v7 = vpop.f32.mrf.mxu3 }
 0xb84   :  { %v1403_v8 = vpop.f32.mrf.mxu2 }
 0xb85   :  { %v1412_v9 = vadd.f32 %v3625_v6, %v1403_v8  ;;  %v3412_v8 = vld [vmem:[%s5124_s18 + $0x48] sm:$0xff] }
 0xb87   :  { %v1443_v10 = vadd.f32 %v1437_v7, %v1412_v9  ;;  %v3413_v7 = vld [vmem:[%s5124_s18 + $0x50] sm:$0xff]  ;;  %v3411_v9 = vld [vmem:[%s5124_s18 + $0x40] sm:$0xff] }
 0xb89   :  { %v1445_v12 = vadd.f32 %v1443_v10, %v4357_v36  ;;  %v3628_v10 = vld [vmem:[%s5123_s17 + $0x1] ss:$0 sm:$0xff] }
 0xb8a   :  { %v1440_v17 = vpop.f32.mrf.mxu3 }
 0xb8b   :  { %v1451_v13 = vsel %vm138_vm2, %v1445_v12, 0.0 }
 0xb8c   :  { %v1406_v14 = vpop.f32.mrf.mxu2  ;;  %1452 = vadd.xlane.f32.xlu2 %v1451_v13 }
 0xb8d   :  { %v1413_v15 = vadd.f32 %v3625_v6, %v1406_v14  ;;  %v3414_v6 = vld [vmem:[%s5124_s18 + $0x58] sm:$0xff] }
 0xb8e   :  { %1594 = vmatpush.msra.mxu1 %v3414_v6  ;;  %v3432_v6 = vld [vmem:[%s5151_s1 + $0x80] sm:$0xff] }
 0xb8f   :  { %v1444_v18 = vadd.f32 %v1440_v17, %v1413_v15 }
 0xb90   :  { %1595 = vmatpush.msra.mxu1 %v3413_v7  ;;  %v3440_v7 = vld [vmem:[%s5152_s28 + $0x80] sm:$0xff] }
 0xb91   :  { %v1446_v19 = vadd.f32 %v1444_v18, %v4368_v42 }
 0xb92   :  { %1596 = vmatpush.msra.mxu1 %v3412_v8  ;;  %v3428_v8 = vld [vmem:[%s5150_s25 + $0xa0] sm:$0xff] }
 0xb93   :  { %v1454_v20 = vsel %vm138_vm2, %v1446_v19, 0.0 }
 0xb94   :  { %1455 = vadd.xlane.f32.xlu0 %v1454_v20  ;;  %1597 = vmatpush.msra.mxu1 %v3411_v9 }
 0xbff   :  { %v1453_v21 = vpop.xlane.xlu2 %1452 }
 0xc00   :  { %v1457_v22 = vmul.f32 %v1453_v21, %v4008_v37 }
 0xc02   :  { %v1459_v23 = vsub.f32 %v1445_v12, %v1457_v22 }
 0xc04   :  { %v1461_v24 = vmul.f32 %v1459_v23, %v1459_v23 }
 0xc06   :  { %v1463_v30 = vsel %vm138_vm2, %v1461_v24, 0.0 }
 0xc07   :  { %1464 = vadd.xlane.f32.xlu1 %v1463_v30  ;;  %v1456_v25 = vpop.xlane.xlu0 %1455 }
 0xc08   :  { %v1458_v26 = vmul.f32 %v1456_v25, %v4008_v37 }
 0xc0a   :  { %v1460_v27 = vsub.f32 %v1446_v19, %v1458_v26 }
 0xc0c   :  { %v1462_v28 = vmul.f32 %v1460_v27, %v1460_v27 }
 0xc0e   :  { %v1466_v35 = vsel %vm138_vm2, %v1462_v28, 0.0 }
 0xc0f   :  { %1467 = vadd.xlane.f32.xlu2 %v1466_v35 }
 0xc7a   :  { %v1465_v34 = vpop.xlane.xlu1 %1464 }
 0xc7b   :  { %v1469_v38 = vmul.f32 %v1465_v34, %v4008_v37  ;;  %v3629_v34 = vld [vmem:[%s5156_s2 + $0x1] ss:$0 sm:$0xff] }
 0xc7d   :  { %v1471_v39 = vadd.f32 1e-05, %v1469_v38 }
 0xc7f   :  { %3709 = vrsqrt.f32 %v1471_v39  ;;  %vm1479_vm13 = vweird.f32 %v1471_v39 }
 0xc82   :  { %v1468_v40 = vpop.xlane.xlu2 %1467 }
 0xc83   :  { %v1470_v41 = vmul.f32 %v1468_v40, %v4008_v37 }
 0xc85   :  { %v3710_v43 = vpop.eup %3709  ;;  %v1472_v44 = vadd.f32 1e-05, %v1470_v41 }
 0xc86   :  { %v1474_v45 = vmul.f32 %v3710_v43, %v1471_v39  ;;  %vm1480_vm12 = vweird.f32 %v3710_v43 }
 0xc87   :  { %3711 = vrsqrt.f32 %v1472_v44  ;;  %vm1481_vm14 = vmor %vm1479_vm13, %vm1480_vm12  ;;  %vm1489_vm0 = vweird.f32 %v1472_v44 }
 0xc88   :  { %v1475_v46 = vmul.f32 %v3710_v43, %v1474_v45 }
 0xc8a   :  { %v1476_v47 = vmul.f32 0.5, %v1475_v46 }
 0xc8c   :  { %v1477_v48 = vsub.f32 1.5, %v1476_v47 }
 0xc8d   :  { %v3712_v49 = vpop.eup %3711 }
 0xc8e   :  { %v1478_v50 = vmul.f32 %v3710_v43, %v1477_v48  ;;  %v1484_v51 = vmul.f32 %v3712_v49, %v1472_v44  ;;  %vm1490_vm15 = vweird.f32 %v3712_v49 }
 0xc8f   :  { %vm1491_vm1 = vmor %vm1489_vm0, %vm1490_vm15 }
 0xc90   :  { %v1482_v53 = vsel %vm1481_vm14, %v3710_v43, %v1478_v50  ;;  %v1485_v54 = vmul.f32 %v3712_v49, %v1484_v51 }
 0xc91   :  { %v1493_v55 = vmul.f32 %v1482_v53, %v1459_v23 }
 0xc92   :  { %v1486_v57 = vmul.f32 0.5, %v1485_v54 }
 0xc93   :  { %v1498_v58 = vmul.f32 %v3626_v52, %v1493_v55 }
 0xc94   :  { %v1487_v59 = vsub.f32 1.5, %v1486_v57  ;;  %v3427_v57 = vld [vmem:[%s5150_s25 + $0x98] sm:$0xff] }
 0xc95   :  { %v1503_v60 = vadd.f32 %v3627_v56, %v1498_v58  ;;  %v3435_v58 = vld [vmem:[%s5151_s1 + $0x98] sm:$0xff]  ;;  %1729 = vmatpush.msrb.mxu2 %v3427_v57 }
 0xc96   :  { %v1488_v61 = vmul.f32 %v3712_v49, %v1487_v59  ;;  %v3443_v59 = vld [vmem:[%s5152_s28 + $0x98] sm:$0xff]  ;;  %1755 = vmatpush.msra.mxu3 %v3435_v58 }
 0xc97   :  { %3409 = vmatmul.msk.f32.vlgmr.msrb.gmra.mxu1 %vm138_vm2, %v1503_v60  ;;  %1781 = vmatpush.msrb.mxu0 %v3443_v59 }
 0xc98   :  { %v1492_v62 = vsel %vm1491_vm1, %v3712_v49, %v1488_v61  ;;  %v3426_v61 = vld [vmem:[%s5150_s25 + $0x90] sm:$0xff] }
 0xc99   :  { %v1494_v63 = vmul.f32 %v1492_v62, %v1460_v27  ;;  %v3434_v62 = vld [vmem:[%s5151_s1 + $0x90] sm:$0xff]  ;;  %1730 = vmatpush.msrb.mxu2 %v3426_v61 }
 0xc9a   :  { %1756 = vmatpush.msra.mxu3 %v3434_v62 }
 0xc9b   :  { %v1499_v0 = vmul.f32 %v3626_v52, %v1494_v63  ;;  %v3442_v63 = vld [vmem:[%s5152_s28 + $0x90] sm:$0xff] }
 0xc9c   :  { %1782 = vmatpush.msrb.mxu0 %v3442_v63  ;;  %1757 = vmatpush.msra.mxu3 %v3433_v2 }
 0xc9d   :  { %v1504_v1 = vadd.f32 %v3627_v56, %v1499_v0  ;;  %v3430_v0 = vld [vmem:[%s5150_s25 + $0xb0] sm:$0xff] }
 0xc9e   :  { %1783 = vmatpush.msrb.mxu0 %v3441_v3  ;;  %1758 = vmatpush.msra.mxu3 %v3432_v6  ;;  %v3637_v6 = vld [vmem:[%s5117_s11 + $0x5] ss:$0 sm:$0xff] }
 0xc9f   :  { %3410 = vmatmul.msk.f32.gmra.mxu1 %vm138_vm2, %v1504_v1 }
 0xca0   :  { %1784 = vmatpush.msrb.mxu0 %v3440_v7 }
 0xd14   :  { %v1538_v12 = vpop.f32.mrf.mxu1 }
 0xd15   :  { %v1539_v13 = vadd.f32 %v3628_v10, %v1538_v12 }
 0xd17   :  { %v1546_v14 = vmul.f32 0.044715, %v1539_v13  ;;  %v1544_v27 = vmul.f32 0.5, %v1539_v13 }
 0xd19   :  { %v1548_v15 = vmul.f32 %v1546_v14, %v1539_v13  ;;  %v3447_v14 = vld [vmem:[%s5152_s28 + $0xb8] sm:$0xff] }
 0xd1a   :  { %1859 = vmatpush.msrb.mxu3 %v3447_v14 }
 0xd1b   :  { %v1550_v17 = vmul.f32 %v1548_v15, %v1539_v13  ;;  %v3438_v15 = vld [vmem:[%s5151_s1 + $0xb0] sm:$0xff] }
 0xd1c   :  { %v1541_v18 = vpop.f32.mrf.mxu1 }
 0xd1d   :  { %v1552_v19 = vadd.f32 %v1550_v17, %v1539_v13  ;;  %v1542_v20 = vadd.f32 %v3628_v10, %v1541_v18  ;;  %v3439_v13 = vld [vmem:[%s5151_s1 + $0xb8] sm:$0xff]  ;;  %v3446_v17 = vld [vmem:[%s5152_s28 + $0xb0] sm:$0xff] }
 0xd1e   :  { %1860 = vmatpush.msrb.mxu3 %v3446_v17 }
 0xd1f   :  { %v1554_v21 = vmul.f32 0.7978846, %v1552_v19  ;;  %v1547_v22 = vmul.f32 0.044715, %v1542_v20  ;;  %v1545_v31 = vmul.f32 0.5, %v1542_v20  ;;  %v3437_v19 = vld [vmem:[%s5151_s1 + $0xa8] sm:$0xff] }
 0xd21   :  { %3713 = vtanh.f32 %v1554_v21  ;;  %v1549_v23 = vmul.f32 %v1547_v22, %v1542_v20  ;;  %v3436_v22 = vld [vmem:[%s5151_s1 + $0xa0] sm:$0xff] }
 0xd23   :  { %v1551_v24 = vmul.f32 %v1549_v23, %v1542_v20  ;;  %v3444_v23 = vld [vmem:[%s5152_s28 + $0xa0] sm:$0xff] }
 0xd25   :  { %v1553_v30 = vadd.f32 %v1551_v24, %v1542_v20  ;;  %v3445_v20 = vld [vmem:[%s5152_s28 + $0xa8] sm:$0xff] }
 0xd26   :  { %1861 = vmatpush.msrb.mxu3 %v3445_v20 }
 0xd27   :  { %v3714_v25 = vpop.eup %3713  ;;  %v1555_v26 = vmul.f32 0.7978846, %v1553_v30 }
 0xd28   :  { %v1558_v28 = vadd.f32 1.0, %v3714_v25  ;;  %1862 = vmatpush.msrb.mxu3 %v3444_v23 }
 0xd29   :  { %3715 = vtanh.f32 %v1555_v26 }
 0xd2a   :  { %v1560_v35 = vmul.f32 %v1558_v28, %v1544_v27 }
 0xd2c   :  { %3420 = vmatmul.msk.f32.vlgmr.msra.gmra.mxu1 %vm843_vm3, %v1560_v35 }
 0xd2f   :  { %v3716_v29 = vpop.eup %3715 }
 0xd30   :  { %v1559_v32 = vadd.f32 1.0, %v3716_v29 }
 0xd32   :  { %v1561_v33 = vmul.f32 %v1559_v32, %v1545_v31  ;;  %v3630_v32 = vld [vmem:[%s5126_s20 + $0x1] ss:$0 sm:$0xff] }
 0xd34   :  { %3421 = vmatmul.msk.f32.gmra.mxu1 %vm843_vm3, %v1561_v33 }
 0xda9   :  { %v1599_v38 = vpop.f32.mrf.mxu1 }
 0xdaa   :  { %v1600_v39 = vadd.f32 %v3629_v34, %v1599_v38  ;;  %v3631_v38 = vld [vmem:[%s5127_s21 + $0x1] ss:$0 sm:$0xff] }
 0xdac   :  { %v1605_v40 = vadd.f32 %v1600_v39, %v1503_v60  ;;  %v3431_v60 = vld [vmem:[%s5150_s25 + $0xb8] sm:$0xff] }
 0xdad   :  { %1807 = vmatpush.msrb.mxu1 %v3431_v60 }
 0xdae   :  { %v1611_v41 = vsel %vm138_vm2, %v1605_v40, 0.0 }
 0xdaf   :  { %1612 = vadd.xlane.f32.xlu0 %v1611_v41  ;;  %1808 = vmatpush.msrb.mxu1 %v3430_v0 }
 0xdb1   :  { %v1602_v43 = vpop.f32.mrf.mxu1  ;;  %1809 = vmatpush.msrb.mxu1 %v3429_v4  ;;  %v3633_v4 = vld [vmem:[%s5115_s9 + $0x5] ss:$0 sm:$0xff] }
 0xdb2   :  { %v1603_v44 = vadd.f32 %v3629_v34, %v1602_v43 }
 0xdb3   :  { %1810 = vmatpush.msrb.mxu1 %v3428_v8 }
 0xdb4   :  { %v1606_v45 = vadd.f32 %v1603_v44, %v1504_v1  ;;  %v3425_v1 = vld [vmem:[%s5150_s25 + $0x88] sm:$0xff] }
 0xdb5   :  { %1731 = vmatpush.msrb.mxu2 %v3425_v1 }
 0xdb6   :  { %v1614_v46 = vsel %vm138_vm2, %v1606_v45, 0.0 }
 0xdb7   :  { %1615 = vadd.xlane.f32.xlu1 %v1614_v46  ;;  %1732 = vmatpush.msrb.mxu2 %v3424_v5  ;;  %v3636_v5 = vld [vmem:[%s5116_s10 + $0x5] ss:$0 sm:$0xff] }
 0xdb9   :  { %1833 = vmatpush.msra.mxu2 %v3439_v13 }
 0xdbb   :  { %1834 = vmatpush.msra.mxu2 %v3438_v15 }
 0xdbd   :  { %1835 = vmatpush.msra.mxu2 %v3437_v19 }
 0xdbf   :  { %1836 = vmatpush.msra.mxu2 %v3436_v22 }
 0xe22   :  { %v1613_v47 = vpop.xlane.xlu0 %1612 }
 0xe23   :  { %v1617_v48 = vmul.f32 %v1613_v47, %v4008_v37 }
 0xe25   :  { %v4512_v49 = vsub.f32 %v1605_v40, %v1617_v48 }
 0xe27   :  { %v1621_v50 = vmul.f32 %v4512_v49, %v4512_v49 }
 0xe29   :  { %v1623_v51 = vsel %vm138_vm2, %v1621_v50, 0.0  ;;  %v3632_v50 = vld [vmem:[%s5117_s11 + $0x4] ss:$0 sm:$0xff] }
 0xe2a   :  { %1624 = vadd.xlane.f32.xlu2 %v1623_v51  ;;  %v1616_v52 = vpop.xlane.xlu1 %1615 }
 0xe2b   :  { %v1618_v53 = vmul.f32 %v1616_v52, %v4008_v37 }
 0xe2d   :  { %v4518_v54 = vsub.f32 %v1606_v45, %v1618_v53  ;;  %v3634_v53 = vld [vmem:[%s5115_s9 + $0x4] ss:$0 sm:$0xff] }
 0xe2f   :  { %v1622_v55 = vmul.f32 %v4518_v54, %v4518_v54 }
 0xe31   :  { %v1626_v56 = vsel %vm138_vm2, %v1622_v55, 0.0 }
 0xe32   :  { %1627 = vadd.xlane.f32.xlu0 %v1626_v56 }
 0xe9d   :  { %v1625_v9 = vpop.xlane.xlu2 %1624 }
 0xe9e   :  { %v1629_v10 = vmul.f32 %v1625_v9, %v4008_v37 }
 0xea0   :  { %v1631_v12 = vadd.f32 1e-05, %v1629_v10 }
 0xea2   :  { %3717 = vrsqrt.f32 %v1631_v12  ;;  %vm1639_vm5 = vweird.f32 %v1631_v12 }
 0xea5   :  { %v1628_v18 = vpop.xlane.xlu0 %1627 }
 0xea6   :  { %v1630_v21 = vmul.f32 %v1628_v18, %v4008_v37 }
 0xea8   :  { %v3718_v24 = vpop.eup %3717  ;;  %v1632_v30 = vadd.f32 1e-05, %v1630_v21 }
 0xea9   :  { %v1634_v25 = vmul.f32 %v3718_v24, %v1631_v12  ;;  %vm1640_vm4 = vweird.f32 %v3718_v24 }
 0xeaa   :  { %3719 = vrsqrt.f32 %v1632_v30  ;;  %vm1641_vm6 = vmor %vm1639_vm5, %vm1640_vm4  ;;  %vm1649_vm8 = vweird.f32 %v1632_v30 }
 0xeab   :  { %v1635_v26 = vmul.f32 %v3718_v24, %v1634_v25 }
 0xead   :  { %v1636_v27 = vmul.f32 0.5, %v1635_v26 }
 0xeaf   :  { %v1637_v28 = vsub.f32 1.5, %v1636_v27 }
 0xeb0   :  { %v3720_v35 = vpop.eup %3719 }
 0xeb1   :  { %v1638_v29 = vmul.f32 %v3718_v24, %v1637_v28  ;;  %v1644_v31 = vmul.f32 %v3720_v35, %v1632_v30  ;;  %vm1650_vm7 = vweird.f32 %v3720_v35 }
 0xeb2   :  { %vm1651_vm9 = vmor %vm1649_vm8, %vm1650_vm7 }
 0xeb3   :  { %v1642_v33 = vsel %vm1641_vm6, %v3718_v24, %v1638_v29  ;;  %v1645_v34 = vmul.f32 %v3720_v35, %v1644_v31 }
 0xeb4   :  { %v1653_v39 = vmul.f32 %v1642_v33, %v4512_v49 }
 0xeb5   :  { %v1646_v40 = vmul.f32 0.5, %v1645_v34 }
 0xeb6   :  { %v1658_v41 = vmul.f32 %v3630_v32, %v1653_v39 }
 0xeb7   :  { %v1647_v43 = vsub.f32 1.5, %v1646_v40 }
 0xeb8   :  { %v4604_v44 = vadd.f32 %v3631_v38, %v1658_v41 }
 0xeb9   :  { %v1648_v45 = vmul.f32 %v3720_v35, %v1647_v43 }
 0xeba   :  { %3459 = vmatmul.msk.f32.vlgmr.msrb.gmra.mxu2 %vm138_vm2, %v4604_v44  ;;  %3461 = vmatmul.msk.f32.vlgmr.msra.gmra.mxu3 %vm138_vm2, %v4604_v44 }
 0xebb   :  { %v1652_v46 = vsel %vm1651_vm9, %v3720_v35, %v1648_v45  ;;  %3463 = vmatmul.msk.f32.vlgmr.msrb.gmra.mxu0 %vm138_vm2, %v4604_v44  ;;  %3465 = vmatmul.msk.f32.vlgmr.msrb.gmra.mxu1 %vm138_vm2, %v4604_v44 }
 0xebc   :  { %v1654_v47 = vmul.f32 %v1652_v46, %v4518_v54  ;;  %v3635_v54 = vld [vmem:[%s5116_s10 + $0x4] ss:$0 sm:$0xff] }
 0xebe   :  { %v1659_v48 = vmul.f32 %v3630_v32, %v1654_v47 }
 0xec0   :  { %v4615_v49 = vadd.f32 %v3631_v38, %v1659_v48 }
 0xec2   :  { %3460 = vmatmul.msk.f32.gmra.mxu2 %vm138_vm2, %v4615_v49  ;;  %3462 = vmatmul.msk.f32.gmra.mxu3 %vm138_vm2, %v4615_v49 }
 0xec3   :  { %3464 = vmatmul.msk.f32.gmra.mxu0 %vm138_vm2, %v4615_v49  ;;  %3466 = vmatmul.msk.f32.gmra.mxu1 %vm138_vm2, %v4615_v49 }
 0xeca   :  { %3467 = vmatmul.msk.f32.vlgmr.msra.gmra.mxu2 %vm138_vm2, %v4604_v44  ;;  %3469 = vmatmul.msk.f32.vlgmr.msrb.gmra.mxu3 %vm138_vm2, %v4604_v44 }
 0xed2   :  { %3468 = vmatmul.msk.f32.gmra.mxu2 %vm138_vm2, %v4615_v49  ;;  %3470 = vmatmul.msk.f32.gmra.mxu3 %vm138_vm2, %v4615_v49 }
 0xf38   :  { %v1786_v51 = vpop.f32.mrf.mxu0  ;;  %v1812_v2 = vpop.f32.mrf.mxu1 }
 0xf39   :  { %v1787_v52 = vadd.f32 %v3632_v50, %v1786_v51  ;;  %v1813_v7 = vadd.f32 %v3633_v4, %v1812_v2 }
 0xf3b   :  { %2040 = vmatpush.msra.mxu3 %v1787_v52  ;;  %v1872_v13 = vmul.f32 0.25, %v1813_v7 }
 0xf3d   :  { %v1734_v55 = vpop.f32.mrf.mxu2  ;;  %v1760_v56 = vpop.f32.mrf.mxu3 }
 0xf3e   :  { %v1735_v57 = vadd.f32 %v3634_v53, %v1734_v55  ;;  %v1761_v58 = vadd.f32 %v3635_v54, %v1760_v56 }
 0xf40   :  { %v1870_v59 = vmul.f32 0.25, %v1735_v57  ;;  %3471 = vmatpush.xpose.msk.msra.mxu0 %vm411_vm10, %v1761_v58  ;;  %v1789_v60 = vpop.f32.mrf.mxu0  ;;  %v1815_v14 = vpop.f32.mrf.mxu1 }
 0xf41   :  { %v1790_v1 = vadd.f32 %v3632_v50, %v1789_v60  ;;  %v1816_v15 = vadd.f32 %v3633_v4, %v1815_v14 }
 0xf43   :  { %3472 = vmatmul.msk.f32.vlgmr.msra.gmra.mxu0 %vm411_vm10, %v1870_v59  ;;  %v1873_v21 = vmul.f32 0.25, %v1816_v15 }
 0xf45   :  { %v1737_v61 = vpop.f32.mrf.mxu2  ;;  %v1763_v62 = vpop.f32.mrf.mxu3 }
 0xf46   :  { %v1738_v63 = vadd.f32 %v3634_v53, %v1737_v61  ;;  %v1764_v0 = vadd.f32 %v3635_v54, %v1763_v62 }
 0xf48   :  { %v1871_v3 = vmul.f32 0.25, %v1738_v63  ;;  %3473 = vmatpush.xpose.msk.msrb.mxu0 %vm411_vm10, %v1764_v0  ;;  %v3455_v63 = vld [vmem:[%s5118_s12 + $0x48] sm:$0xff] }
 0xf49   :  { %2134 = vmatpush.msrb.mxu3 %v3455_v63 }
 0xf4b   :  { %3474 = vmatmul.msk.f32.vlgmr.msrb.gmra.mxu0 %vm411_vm10, %v1871_v3 }
 0xf4c   :  { %2063 = vmatpush.msra.mxu0 %v1790_v1 }
 0xf4d   :  { %v1838_v8 = vpop.f32.mrf.mxu2  ;;  %v1864_v9 = vpop.f32.mrf.mxu3 }
 0xf4e   :  { %v1839_v10 = vadd.f32 %v3636_v5, %v1838_v8  ;;  %v1865_v12 = vadd.f32 %v3637_v6, %v1864_v9  ;;  %v3454_v8 = vld [vmem:[%s5118_s12 + $0x40] sm:$0xff]  ;;  %v3457_v9 = vld [vmem:[%s5118_s12 + $0x58] sm:$0xff] }
 0xf4f   :  { %2135 = vmatpush.msrb.mxu3 %v3454_v8  ;;  %2168 = vmatpush.msrb.mxu0 %v3457_v9 }
 0xf50   :  { %3475 = vmatpush.xpose.msk.msra.mxu1 %vm411_vm10, %v1839_v10  ;;  %v3456_v10 = vld [vmem:[%s5118_s12 + $0x50] sm:$0xff] }
 0xf51   :  { %2169 = vmatpush.msrb.mxu0 %v3456_v10 }
 0xf53   :  { %3476 = vmatmul.msk.f32.vlgmr.msra.gmra.mxu1 %vm411_vm10, %v1872_v13 }
 0xf54   :  { %2086 = vmatpush.msrb.mxu1 %v1865_v12 }
 0xf55   :  { %v1841_v17 = vpop.f32.mrf.mxu2  ;;  %v1867_v18 = vpop.f32.mrf.mxu3 }
 0xf56   :  { %v1842_v19 = vadd.f32 %v3636_v5, %v1841_v17  ;;  %v1868_v20 = vadd.f32 %v3637_v6, %v1867_v18  ;;  %v3638_v17 = vld [vmem:[%s5119_s13 + $0x2] ss:$0 sm:$0xff] }
 0xf58   :  { %3477 = vmatpush.xpose.msk.msrb.mxu2 %vm411_vm10, %v1842_v19 }
 0xf5b   :  { %3478 = vmatmul.msk.f32.vlgmr.msrb.gmra.mxu2 %vm411_vm10, %v1873_v21 }
 0xf5c   :  { %2109 = vmatpush.msra.mxu2 %v1868_v20 }
 0xfc0   :  { %v1897_v22 = vpop.f32.mrf.mxu0 }
 0xfc1   :  { %v1898_v23 = vadd.f32 %v1897_v22, %v4161_v11 }
 0xfc3   :  { %v1978_v24 = vsel %vm516_vm11, %v1898_v23, -inf }
 0xfc4   :  { %1979 = vmax.xlane.f32.xlu1 %v1978_v24 }
 0xfc8   :  { %v1923_v30 = vpop.f32.mrf.mxu0 }
 0xfc9   :  { %v1924_v25 = vadd.f32 %v1923_v30, %v4165_v16 }
 0xfcb   :  { %v1981_v26 = vsel %vm516_vm11, %v1924_v25, -inf }
 0xfcc   :  { %1982 = vmax.xlane.f32.xlu2 %v1981_v26 }
 0xfd0   :  { %v1949_v27 = vpop.f32.mrf.mxu1 }
 0xfd1   :  { %v1950_v28 = vadd.f32 %v1949_v27, %v4161_v11 }
 0xfd3   :  { %v1984_v35 = vsel %vm516_vm11, %v1950_v28, -inf }
 0xfd4   :  { %1985 = vmax.xlane.f32.xlu0 %v1984_v35 }
 0xfde   :  { %v1975_v29 = vpop.f32.mrf.mxu2 }
 0xfdf   :  { %v1976_v31 = vadd.f32 %v1975_v29, %v4165_v16 }
 0xfe1   :  { %v1987_v32 = vsel %vm516_vm11, %v1976_v31, -inf }
 0xfe2   :  { %1988 = vmax.xlane.f32.xlu1 %v1987_v32 }
0x1037   :  { %v1980_v33 = vpop.xlane.xlu1 %1979 }
0x1038   :  { %v1990_v34 = vsub.f32 %v1898_v23, %v1980_v33 }
0x103a   :  { %v1994_v38 = vmul.f32 1.442695, %v1990_v34 }
0x103c   :  { %3721 = vpow2.f32 %v1994_v38 }
0x103f   :  { %v1983_v39 = vpop.xlane.xlu2 %1982 }
0x1040   :  { %v1991_v40 = vsub.f32 %v1924_v25, %v1983_v39 }
0x1042   :  { %v3722_v41 = vpop.eup %3721  ;;  %v1996_v43 = vmul.f32 1.442695, %v1991_v40 }
0x1043   :  { %v2002_v45 = vsel %vm516_vm11, %v3722_v41, 0.0 }
0x1044   :  { %3723 = vpow2.f32 %v1996_v43  ;;  %2003 = vadd.xlane.f32.xlu2 %v2002_v45  ;;  %v3492_v43 = vld [vmem:[%s5122_s16 + $0x58] sm:$0xff]  ;;  %v3491_v45 = vld [vmem:[%s5122_s16 + $0x50] sm:$0xff] }
0x1045   :  { %2267 = vmatpush.msra.mxu1 %v3492_v43 }
0x1047   :  { %v1986_v46 = vpop.xlane.xlu0 %1985  ;;  %2268 = vmatpush.msra.mxu1 %v3491_v45 }
0x1048   :  { %v1992_v47 = vsub.f32 %v1950_v28, %v1986_v46  ;;  %v3490_v46 = vld [vmem:[%s5122_s16 + $0x48] sm:$0xff] }
0x1049   :  { %2269 = vmatpush.msra.mxu1 %v3490_v46 }
0x104a   :  { %v3724_v48 = vpop.eup %3723  ;;  %v1998_v50 = vmul.f32 1.442695, %v1992_v47  ;;  %v3489_v47 = vld [vmem:[%s5122_s16 + $0x40] sm:$0xff] }
0x104b   :  { %v2005_v51 = vsel %vm516_vm11, %v3724_v48, 0.0  ;;  %2270 = vmatpush.msra.mxu1 %v3489_v47 }
0x104c   :  { %3725 = vpow2.f32 %v1998_v50  ;;  %2006 = vadd.xlane.f32.xlu0 %v2005_v51 }
0x1052   :  { %v3726_v52 = vpop.eup %3725 }
0x1053   :  { %v2008_v53 = vsel %vm516_vm11, %v3726_v52, 0.0 }
0x1054   :  { %2009 = vadd.xlane.f32.xlu1 %v2008_v53 }
0x1055   :  { %v1989_v54 = vpop.xlane.xlu1 %1988 }
0x1056   :  { %v1993_v55 = vsub.f32 %v1976_v31, %v1989_v54 }
0x1058   :  { %v2000_v56 = vmul.f32 1.442695, %v1993_v55 }
0x105a   :  { %3727 = vpow2.f32 %v2000_v56 }
0x1060   :  { %v3728_v57 = vpop.eup %3727 }
0x1061   :  { %v2011_v58 = vsel %vm516_vm11, %v3728_v57, 0.0 }
0x1062   :  { %2012 = vadd.xlane.f32.xlu2 %v2011_v58 }
0x10b7   :  { %v2004_v59 = vpop.xlane.xlu2 %2003 }
0x10b8   :  { %3729 = vrcp.f32 %v2004_v59  ;;  %v3639_v59 = vld [vmem:[%s5120_s14 + $0x2] ss:$0 sm:$0xff] }
0x10be   :  { %v3730_v60 = vpop.eup %3729 }
0x10bf   :  { %v2018_v61 = vmul.f32 %v3730_v60, %v3722_v41  ;;  %v2007_v62 = vpop.xlane.xlu0 %2006 }
0x10c0   :  { %3731 = vrcp.f32 %v2007_v62 }
0x10c1   :  { %3479 = vmatmul.msk.f32.vlgmr.msra.gmra.mxu3 %vm516_vm11, %v2018_v61 }
0x10c6   :  { %v3732_v0 = vpop.eup %3731 }
0x10c7   :  { %v2019_v1 = vmul.f32 %v3732_v0, %v3724_v48  ;;  %v2010_v2 = vpop.xlane.xlu1 %2009  ;;  %v3640_v0 = vld [vmem:[%s5121_s15 + $0x2] ss:$0 sm:$0xff] }
0x10c8   :  { %3733 = vrcp.f32 %v2010_v2 }
0x10c9   :  { %3480 = vmatmul.msk.f32.vlgmr.msra.gmra.mxu0 %vm516_vm11, %v2019_v1 }
0x10ce   :  { %v3734_v3 = vpop.eup %3733 }
0x10cf   :  { %v2020_v4 = vmul.f32 %v3734_v3, %v3726_v52 }
0x10d1   :  { %3481 = vmatmul.msk.f32.vlgmr.msrb.gmra.mxu1 %vm516_vm11, %v2020_v4 }
0x10d5   :  { %v2013_v5 = vpop.xlane.xlu2 %2012 }
0x10d6   :  { %3735 = vrcp.f32 %v2013_v5 }
0x10dc   :  { %v3736_v6 = vpop.eup %3735 }
0x10dd   :  { %v2021_v7 = vmul.f32 %v3736_v6, %v3728_v57 }
0x10df   :  { %3482 = vmatmul.msk.f32.vlgmr.msra.gmra.mxu2 %vm516_vm11, %v2021_v7 }
0x1144   :  { %v2042_v12 = vpop.f32.mrf.mxu3 }
0x1145   :  { %3483 = vmatmul.msk.f32.vlgmr.msrb.gmra.mxu3 %vm411_vm10, %v2042_v12 }
0x1146   :  { %v2065_v13 = vpop.f32.mrf.mxu0 }
0x114d   :  { %3484 = vmatmul.msk.f32.gmra.mxu3 %vm411_vm10, %v2065_v13 }
0x114e   :  { %v2088_v14 = vpop.f32.mrf.mxu1 }
0x114f   :  { %3485 = vmatmul.msk.f32.vlgmr.msrb.gmra.mxu0 %vm411_vm10, %v2088_v14  ;;  %v3503_v14 = vld [vmem:[%s5124_s18 + $0xb8] sm:$0xff] }
0x1150   :  { %2324 = vmatpush.msrb.mxu2 %v3503_v14  ;;  %v3515_v14 = vld [vmem:[%s5150_s25 + $0xf0] sm:$0xff] }
0x1162   :  { %v2111_v15 = vpop.f32.mrf.mxu2 }
0x1163   :  { %3486 = vmatmul.msk.f32.gmra.mxu0 %vm411_vm10, %v2111_v15  ;;  %v3502_v15 = vld [vmem:[%s5124_s18 + $0xb0] sm:$0xff] }
0x1164   :  { %2325 = vmatpush.msrb.mxu2 %v3502_v15  ;;  %v3510_v15 = vld [vmem:[%s5150_s25 + $0xc8] sm:$0xff] }
0x11c8   :  { %v2137_v18 = vpop.f32.mrf.mxu3 }
0x11c9   :  { %v2146_v19 = vadd.f32 %v3638_v17, %v2137_v18  ;;  %v3500_v18 = vld [vmem:[%s5124_s18 + $0xa0] sm:$0xff] }
0x11cc   :  { %v2171_v20 = vpop.f32.mrf.mxu0 }
0x11cd   :  { %v2177_v21 = vadd.f32 %v2171_v20, %v2146_v19  ;;  %v3499_v19 = vld [vmem:[%s5124_s18 + $0x98] sm:$0xff]  ;;  %v3498_v20 = vld [vmem:[%s5124_s18 + $0x90] sm:$0xff] }
0x11cf   :  { %v2179_v22 = vadd.f32 %v2177_v21, %v4604_v44  ;;  %v3497_v21 = vld [vmem:[%s5124_s18 + $0x88] sm:$0xff] }
0x11d0   :  { %v2140_v24 = vpop.f32.mrf.mxu3 }
0x11d1   :  { %v2185_v23 = vsel %vm138_vm2, %v2179_v22, 0.0  ;;  %v2147_v30 = vadd.f32 %v3638_v17, %v2140_v24  ;;  %v3501_v17 = vld [vmem:[%s5124_s18 + $0xa8] sm:$0xff] }
0x11d2   :  { %2186 = vadd.xlane.f32.xlu0 %v2185_v23  ;;  %2326 = vmatpush.msrb.mxu2 %v3501_v17  ;;  %v3641_v23 = vld [vmem:[%s5123_s17 + $0x2] ss:$0 sm:$0xff]  ;;  %v3518_v17 = vld [vmem:[%s5151_s1 + $0xc8] sm:$0xff] }
0x11d4   :  { %2327 = vmatpush.msrb.mxu2 %v3500_v18  ;;  %v3526_v18 = vld [vmem:[%s5152_s28 + $0xc8] sm:$0xff] }
0x11d6   :  { %2328 = vmatpush.msrb.mxu2 %v3499_v19  ;;  %v3514_v19 = vld [vmem:[%s5150_s25 + $0xe8] sm:$0xff] }
0x11d8   :  { %2329 = vmatpush.msrb.mxu2 %v3498_v20  ;;  %v3509_v20 = vld [vmem:[%s5150_s25 + $0xc0] sm:$0xff] }
0x11da   :  { %2330 = vmatpush.msrb.mxu2 %v3497_v21  ;;  %v3517_v21 = vld [vmem:[%s5151_s1 + $0xc0] sm:$0xff] }
0x11e0   :  { %v2174_v25 = vpop.f32.mrf.mxu0 }
0x11e1   :  { %v2178_v26 = vadd.f32 %v2174_v25, %v2147_v30 }
0x11e3   :  { %v2180_v27 = vadd.f32 %v2178_v26, %v4615_v49 }
0x11e5   :  { %v2188_v28 = vsel %vm138_vm2, %v2180_v27, 0.0 }
0x11e6   :  { %2189 = vadd.xlane.f32.xlu1 %v2188_v28 }
0x1245   :  { %v2187_v35 = vpop.xlane.xlu0 %2186 }
0x1246   :  { %v2191_v29 = vmul.f32 %v2187_v35, %v4008_v37 }
0x1248   :  { %v2193_v31 = vsub.f32 %v2179_v22, %v2191_v29  ;;  %v3496_v22 = vld [vmem:[%s5124_s18 + $0x80] sm:$0xff] }
0x1249   :  { %2331 = vmatpush.msrb.mxu2 %v3496_v22  ;;  %v3525_v22 = vld [vmem:[%s5152_s28 + $0xc0] sm:$0xff] }
0x124a   :  { %v2195_v32 = vmul.f32 %v2193_v31, %v2193_v31 }
0x124c   :  { %v2197_v33 = vsel %vm138_vm2, %v2195_v32, 0.0 }
0x124d   :  { %2198 = vadd.xlane.f32.xlu2 %v2197_v33 }
0x1259   :  { %v2190_v34 = vpop.xlane.xlu1 %2189 }
0x125a   :  { %v2192_v38 = vmul.f32 %v2190_v34, %v4008_v37 }
0x125c   :  { %v2194_v39 = vsub.f32 %v2180_v27, %v2192_v38 }
0x125e   :  { %v2196_v40 = vmul.f32 %v2194_v39, %v2194_v39 }
0x1260   :  { %v2200_v41 = vsel %vm138_vm2, %v2196_v40, 0.0 }
0x1261   :  { %2201 = vadd.xlane.f32.xlu0 %v2200_v41 }
0x12c0   :  { %v2199_v48 = vpop.xlane.xlu2 %2198 }
0x12c1   :  { %v2203_v50 = vmul.f32 %v2199_v48, %v4008_v37 }
0x12c3   :  { %v2205_v51 = vadd.f32 1e-05, %v2203_v50 }
0x12c5   :  { %3737 = vrsqrt.f32 %v2205_v51  ;;  %vm2213_vm13 = vweird.f32 %v2205_v51 }
0x12cb   :  { %v3738_v52 = vpop.eup %3737 }
0x12cc   :  { %v2208_v53 = vmul.f32 %v3738_v52, %v2205_v51  ;;  %vm2214_vm12 = vweird.f32 %v3738_v52  ;;  %v3642_v51 = vld [vmem:[%s5156_s2 + $0x2] ss:$0 sm:$0xff] }
0x12cd   :  { %vm2215_vm14 = vmor %vm2213_vm13, %vm2214_vm12 }
0x12ce   :  { %v2209_v54 = vmul.f32 %v3738_v52, %v2208_v53 }
0x12d0   :  { %v2210_v55 = vmul.f32 0.5, %v2209_v54 }
0x12d2   :  { %v2211_v56 = vsub.f32 1.5, %v2210_v55 }
0x12d4   :  { %v2212_v57 = vmul.f32 %v3738_v52, %v2211_v56  ;;  %v2202_v58 = vpop.xlane.xlu0 %2201 }
0x12d5   :  { %v2204_v60 = vmul.f32 %v2202_v58, %v4008_v37 }
0x12d6   :  { %v2216_v61 = vsel %vm2215_vm14, %v3738_v52, %v2212_v57 }
0x12d7   :  { %v2227_v62 = vmul.f32 %v2216_v61, %v2193_v31  ;;  %v2206_v63 = vadd.f32 1e-05, %v2204_v60 }
0x12d9   :  { %v2232_v1 = vmul.f32 %v3639_v59, %v2227_v62  ;;  %3739 = vrsqrt.f32 %v2206_v63  ;;  %vm2223_vm0 = vweird.f32 %v2206_v63 }
0x12db   :  { %v2237_v2 = vadd.f32 %v3640_v0, %v2232_v1 }
0x12dd   :  { %3494 = vmatmul.msk.f32.vlgmr.msra.gmra.mxu1 %vm138_vm2, %v2237_v2 }
0x12df   :  { %v3740_v3 = vpop.eup %3739 }
0x12e0   :  { %v2218_v4 = vmul.f32 %v3740_v3, %v2206_v63  ;;  %vm2224_vm15 = vweird.f32 %v3740_v3 }
0x12e1   :  { %vm2225_vm1 = vmor %vm2223_vm0, %vm2224_vm15 }
0x12e2   :  { %v2219_v5 = vmul.f32 %v3740_v3, %v2218_v4 }
0x12e4   :  { %v2220_v6 = vmul.f32 0.5, %v2219_v5 }
0x12e6   :  { %v2221_v7 = vsub.f32 1.5, %v2220_v6  ;;  %v3512_v6 = vld [vmem:[%s5150_s25 + $0xd8] sm:$0xff] }
0x12e7   :  { %2463 = vmatpush.msra.mxu3 %v3512_v6 }
0x12e8   :  { %v2222_v8 = vmul.f32 %v3740_v3, %v2221_v7  ;;  %v3520_v7 = vld [vmem:[%s5151_s1 + $0xd8] sm:$0xff] }
0x12e9   :  { %2489 = vmatpush.msra.mxu0 %v3520_v7  ;;  %v3647_v7 = vld [vmem:[%s5115_s9 + $0x6] ss:$0 sm:$0xff] }
0x12ea   :  { %v2226_v9 = vsel %vm2225_vm1, %v3740_v3, %v2222_v8  ;;  %v3528_v8 = vld [vmem:[%s5152_s28 + $0xd8] sm:$0xff]  ;;  %vm3134_vm1 = vcmask 1041409  }
0x12eb   :  { %v2228_v10 = vmul.f32 %v2226_v9, %v2194_v39  ;;  %v3516_v9 = vld [vmem:[%s5150_s25 + $0xf8] sm:$0xff]  ;;  %2515 = vmatpush.msrb.mxu1 %v3528_v8 }
0x12ec   :  { %2541 = vmatpush.msra.mxu2 %v3516_v9 }
0x12ed   :  { %v2233_v12 = vmul.f32 %v3639_v59, %v2228_v10  ;;  %v3511_v10 = vld [vmem:[%s5150_s25 + $0xd0] sm:$0xff] }
0x12ee   :  { %2464 = vmatpush.msra.mxu3 %v3511_v10  ;;  %2542 = vmatpush.msra.mxu2 %v3515_v14 }
0x12ef   :  { %v2238_v13 = vadd.f32 %v3640_v0, %v2233_v12  ;;  %v3519_v12 = vld [vmem:[%s5151_s1 + $0xd0] sm:$0xff] }
0x12f0   :  { %2490 = vmatpush.msra.mxu0 %v3519_v12  ;;  %2465 = vmatpush.msra.mxu3 %v3510_v15 }
0x12f1   :  { %3495 = vmatmul.msk.f32.gmra.mxu1 %vm138_vm2, %v2238_v13  ;;  %2543 = vmatpush.msra.mxu2 %v3514_v19 }
0x12f2   :  { %2491 = vmatpush.msra.mxu0 %v3518_v17  ;;  %2466 = vmatpush.msra.mxu3 %v3509_v20  ;;  %v3648_v20 = vld [vmem:[%s5115_s9 + $0x7] ss:$0 sm:$0xff] }
0x12f4   :  { %2492 = vmatpush.msra.mxu0 %v3517_v21 }
0x135a   :  { %v2272_v24 = vpop.f32.mrf.mxu1 }
0x135b   :  { %v2273_v30 = vadd.f32 %v3641_v23, %v2272_v24 }
0x135d   :  { %v2280_v25 = vmul.f32 0.044715, %v2273_v30  ;;  %v2278_v31 = vmul.f32 0.5, %v2273_v30 }
0x135f   :  { %v2282_v26 = vmul.f32 %v2280_v25, %v2273_v30 }
0x1361   :  { %v2284_v27 = vmul.f32 %v2282_v26, %v2273_v30 }
0x1363   :  { %v2286_v28 = vadd.f32 %v2284_v27, %v2273_v30 }
0x1365   :  { %v2288_v35 = vmul.f32 0.7978846, %v2286_v28 }
0x1367   :  { %3741 = vtanh.f32 %v2288_v35 }
0x136d   :  { %v3742_v29 = vpop.eup %3741 }
0x136e   :  { %v2275_v32 = vpop.f32.mrf.mxu1  ;;  %v2292_v33 = vadd.f32 1.0, %v3742_v29 }
0x136f   :  { %v2276_v34 = vadd.f32 %v3641_v23, %v2275_v32  ;;  %v3513_v23 = vld [vmem:[%s5150_s25 + $0xe0] sm:$0xff]  ;;  %v3532_v32 = vld [vmem:[%s5152_s28 + $0xf8] sm:$0xff] }
0x1370   :  { %v2294_v38 = vmul.f32 %v2292_v33, %v2278_v31  ;;  %2544 = vmatpush.msra.mxu2 %v3513_v23  ;;  %v3524_v31 = vld [vmem:[%s5151_s1 + $0xf8] sm:$0xff]  ;;  %v3523_v33 = vld [vmem:[%s5151_s1 + $0xf0] sm:$0xff]  ;;  %2593 = vmatpush.msrb.mxu0 %v3532_v32  ;;  %v3650_v23 = vld [vmem:[%s5116_s10 + $0x7] ss:$0 sm:$0xff] }
0x1371   :  { %v2281_v39 = vmul.f32 0.044715, %v2276_v34  ;;  %v2279_v47 = vmul.f32 0.5, %v2276_v34  ;;  %2567 = vmatpush.msrb.mxu3 %v3524_v31 }
0x1372   :  { %3505 = vmatmul.msk.f32.vlgmr.msrb.gmra.mxu2 %vm843_vm3, %v2294_v38 }
0x1373   :  { %v2283_v40 = vmul.f32 %v2281_v39, %v2276_v34  ;;  %2568 = vmatpush.msrb.mxu3 %v3523_v33 }
0x1375   :  { %v2285_v41 = vmul.f32 %v2283_v40, %v2276_v34  ;;  %v3522_v40 = vld [vmem:[%s5151_s1 + $0xe8] sm:$0xff] }
0x1376   :  { %2569 = vmatpush.msrb.mxu3 %v3522_v40 }
0x1377   :  { %v2287_v43 = vadd.f32 %v2285_v41, %v2276_v34  ;;  %v3531_v34 = vld [vmem:[%s5152_s28 + $0xf0] sm:$0xff]  ;;  %v3530_v41 = vld [vmem:[%s5152_s28 + $0xe8] sm:$0xff] }
0x1378   :  { %2594 = vmatpush.msrb.mxu0 %v3531_v34 }
0x1379   :  { %v2289_v45 = vmul.f32 0.7978846, %v2287_v43  ;;  %v3643_v43 = vld [vmem:[%s5126_s20 + $0x2] ss:$0 sm:$0xff] }
0x137a   :  { %2595 = vmatpush.msrb.mxu0 %v3530_v41 }
0x137b   :  { %3743 = vtanh.f32 %v2289_v45 }
0x1381   :  { %v3744_v46 = vpop.eup %3743 }
0x1382   :  { %v2293_v48 = vadd.f32 1.0, %v3744_v46 }
0x1384   :  { %v2295_v50 = vmul.f32 %v2293_v48, %v2279_v47  ;;  %v3521_v47 = vld [vmem:[%s5151_s1 + $0xe0] sm:$0xff]  ;;  %s3823_s1 = smov [#allocation2]  }
0x1385   :  { %v3529_v48 = vld [vmem:[%s5152_s28 + $0xe0] sm:$0xff]  ;;  %2570 = vmatpush.msrb.mxu3 %v3521_v47 }
0x1386   :  { %3506 = vmatmul.msk.f32.gmra.mxu2 %vm843_vm3, %v2295_v50  ;;  %v3644_v50 = vld [vmem:[%s5127_s21 + $0x2] ss:$0 sm:$0xff]  ;;  %2596 = vmatpush.msrb.mxu0 %v3529_v48 }
0x13f5   :  { %v2333_v52 = vpop.f32.mrf.mxu2 }
0x13f6   :  { %v2334_v53 = vadd.f32 %v3642_v51, %v2333_v52 }
0x13f8   :  { %v2339_v54 = vadd.f32 %v2334_v53, %v2237_v2 }
0x13fa   :  { %v2345_v55 = vsel %vm138_vm2, %v2339_v54, 0.0 }
0x13fb   :  { %2346 = vadd.xlane.f32.xlu1 %v2345_v55 }
0x1409   :  { %v2336_v56 = vpop.f32.mrf.mxu2 }
0x140a   :  { %v2337_v57 = vadd.f32 %v3642_v51, %v2336_v56 }
0x140c   :  { %v2340_v58 = vadd.f32 %v2337_v57, %v2238_v13  ;;  %v3527_v13 = vld [vmem:[%s5152_s28 + $0xd0] sm:$0xff]  ;;  %s3291_s28 = sshll.u32 %s3823_s1, 4  ;;  %s3292_s28 = int_to_ptr.vmem [resolvable:$true] %s3291_s28 }
0x140d   :  { %2516 = vmatpush.msrb.mxu1 %v3527_v13 }
0x140e   :  { %v2348_v59 = vsel %vm138_vm2, %v2340_v58, 0.0 }
0x140f   :  { %2349 = vadd.xlane.f32.xlu2 %v2348_v59  ;;  %2517 = vmatpush.msrb.mxu1 %v3526_v18 }
0x1411   :  { %2518 = vmatpush.msrb.mxu1 %v3525_v22 }
0x146e   :  { %v2347_v60 = vpop.xlane.xlu1 %2346 }
0x146f   :  { %v2351_v61 = vmul.f32 %v2347_v60, %v4008_v37 }
0x1471   :  { %v4759_v62 = vsub.f32 %v2339_v54, %v2351_v61 }
0x1473   :  { %v2355_v63 = vmul.f32 %v4759_v62, %v4759_v62 }
0x1475   :  { %v2357_v0 = vsel %vm138_vm2, %v2355_v63, 0.0 }
0x1476   :  { %2358 = vadd.xlane.f32.xlu0 %v2357_v0 }
0x1482   :  { %v2350_v1 = vpop.xlane.xlu2 %2349 }
0x1483   :  { %v2352_v2 = vmul.f32 %v2350_v1, %v4008_v37  ;;  %v3645_v1 = vld [vmem:[%s5116_s10 + $0x6] ss:$0 sm:$0xff] }
0x1485   :  { %v4765_v3 = vsub.f32 %v2340_v58, %v2352_v2  ;;  %v3646_v2 = vld [vmem:[%s5117_s11 + $0x6] ss:$0 sm:$0xff] }
0x1487   :  { %v2356_v4 = vmul.f32 %v4765_v3, %v4765_v3 }
0x1489   :  { %v2360_v5 = vsel %vm138_vm2, %v2356_v4, 0.0 }
0x148a   :  { %2361 = vadd.xlane.f32.xlu1 %v2360_v5 }
0x14e9   :  { %v2359_v24 = vpop.xlane.xlu0 %2358 }
0x14ea   :  { %v2363_v30 = vmul.f32 %v2359_v24, %v4008_v37  ;;  %v3649_v24 = vld [vmem:[%s5117_s11 + $0x7] ss:$0 sm:$0xff]  ;;  %s3820_s11 = smov 96  }
0x14ec   :  { %v2365_v25 = vadd.f32 1e-05, %v2363_v30 }
0x14ee   :  { %3745 = vrsqrt.f32 %v2365_v25  ;;  %vm2373_vm5 = vweird.f32 %v2365_v25 }
0x14f4   :  { %v3746_v26 = vpop.eup %3745 }
0x14f5   :  { %v2368_v27 = vmul.f32 %v3746_v26, %v2365_v25  ;;  %vm2374_vm4 = vweird.f32 %v3746_v26 }
0x14f6   :  { %vm2375_vm6 = vmor %vm2373_vm5, %vm2374_vm4 }
0x14f7   :  { %v2369_v28 = vmul.f32 %v3746_v26, %v2368_v27 }
0x14f9   :  { %v2370_v35 = vmul.f32 0.5, %v2369_v28 }
0x14fb   :  { %v2371_v29 = vsub.f32 1.5, %v2370_v35 }
0x14fd   :  { %v2372_v38 = vmul.f32 %v3746_v26, %v2371_v29  ;;  %v2362_v39 = vpop.xlane.xlu1 %2361 }
0x14fe   :  { %v2364_v45 = vmul.f32 %v2362_v39, %v4008_v37 }
0x14ff   :  { %v2376_v46 = vsel %vm2375_vm6, %v3746_v26, %v2372_v38 }
0x1500   :  { %v2387_v51 = vmul.f32 %v2376_v46, %v4759_v62  ;;  %v2366_v52 = vadd.f32 1e-05, %v2364_v45 }
0x1502   :  { %v2392_v53 = vmul.f32 %v3643_v43, %v2387_v51  ;;  %3747 = vrsqrt.f32 %v2366_v52  ;;  %vm2383_vm8 = vweird.f32 %v2366_v52 }
0x1504   :  { %v4851_v54 = vadd.f32 %v3644_v50, %v2392_v53 }
0x1506   :  { %3544 = vmatmul.msk.f32.vlgmr.msra.gmra.mxu3 %vm138_vm2, %v4851_v54  ;;  %3546 = vmatmul.msk.f32.vlgmr.msra.gmra.mxu0 %vm138_vm2, %v4851_v54 }
0x1507   :  { %3548 = vmatmul.msk.f32.vlgmr.msrb.gmra.mxu1 %vm138_vm2, %v4851_v54  ;;  %3550 = vmatmul.msk.f32.vlgmr.msra.gmra.mxu2 %vm138_vm2, %v4851_v54 }
0x1508   :  { %v3748_v55 = vpop.eup %3747 }
0x1509   :  { %v2378_v56 = vmul.f32 %v3748_v55, %v2366_v52  ;;  %vm2384_vm7 = vweird.f32 %v3748_v55 }
0x150a   :  { %vm2385_vm9 = vmor %vm2383_vm8, %vm2384_vm7 }
0x150b   :  { %v2379_v57 = vmul.f32 %v3748_v55, %v2378_v56 }
0x150d   :  { %v2380_v58 = vmul.f32 0.5, %v2379_v57 }
0x150f   :  { %v2381_v59 = vsub.f32 1.5, %v2380_v58 }
0x1511   :  { %v2382_v60 = vmul.f32 %v3748_v55, %v2381_v59 }
0x1513   :  { %v2386_v61 = vsel %vm2385_vm9, %v3748_v55, %v2382_v60 }
0x1514   :  { %v2388_v62 = vmul.f32 %v2386_v61, %v4765_v3 }
0x1516   :  { %v2393_v63 = vmul.f32 %v3643_v43, %v2388_v62 }
0x1518   :  { %v4862_v0 = vadd.f32 %v3644_v50, %v2393_v63 }
0x151a   :  { %3545 = vmatmul.msk.f32.gmra.mxu3 %vm138_vm2, %v4862_v0  ;;  %3547 = vmatmul.msk.f32.gmra.mxu0 %vm138_vm2, %v4862_v0 }
0x151b   :  { %3549 = vmatmul.msk.f32.gmra.mxu1 %vm138_vm2, %v4862_v0  ;;  %3551 = vmatmul.msk.f32.gmra.mxu2 %vm138_vm2, %v4862_v0 }
0x1522   :  { %3552 = vmatmul.msk.f32.vlgmr.msrb.gmra.mxu3 %vm138_vm2, %v4851_v54  ;;  %3554 = vmatmul.msk.f32.vlgmr.msrb.gmra.mxu0 %vm138_vm2, %v4851_v54 }
0x152a   :  { %3553 = vmatmul.msk.f32.gmra.mxu3 %vm138_vm2, %v4862_v0  ;;  %3555 = vmatmul.msk.f32.gmra.mxu0 %vm138_vm2, %v4862_v0 }
0x1583   :  { %v2494_v3 = vpop.f32.mrf.mxu0 }
0x1584   :  { %v2495_v4 = vadd.f32 %v3645_v1, %v2494_v3  ;;  %v2520_v5 = vpop.f32.mrf.mxu1 }
0x1585   :  { %v2521_v6 = vadd.f32 %v3646_v2, %v2520_v5 }
0x1586   :  { %3556 = vmatpush.xpose.msk.msra.mxu1 %vm411_vm10, %v2495_v4 }
0x1587   :  { %2774 = vmatpush.msra.mxu0 %v2521_v6 }
0x1589   :  { %v2468_v8 = vpop.f32.mrf.mxu3 }
0x158a   :  { %v2469_v9 = vadd.f32 %v3647_v7, %v2468_v8  ;;  %v2546_v21 = vpop.f32.mrf.mxu2 }
0x158b   :  { %v2547_v30 = vadd.f32 %v3648_v20, %v2546_v21 }
0x158c   :  { %v2604_v10 = vmul.f32 0.25, %v2469_v9 }
0x158d   :  { %v2606_v28 = vmul.f32 0.25, %v2547_v30  ;;  %v3539_v30 = vld [vmem:[%s5118_s12 + $0x60] sm:$0xff] }
0x158e   :  { %3557 = vmatmul.msk.f32.vlgmr.msra.gmra.mxu1 %vm411_vm10, %v2604_v10 }
0x1597   :  { %v2497_v12 = vpop.f32.mrf.mxu0 }
0x1598   :  { %v2498_v13 = vadd.f32 %v3645_v1, %v2497_v12  ;;  %v2523_v14 = vpop.f32.mrf.mxu1 }
0x1599   :  { %v2524_v15 = vadd.f32 %v3646_v2, %v2523_v14  ;;  %v3540_v14 = vld [vmem:[%s5118_s12 + $0x68] sm:$0xff] }
0x159a   :  { %3558 = vmatpush.xpose.msk.msrb.mxu1 %vm411_vm10, %v2498_v13  ;;  %2868 = vmatpush.msrb.mxu0 %v3540_v14 }
0x159c   :  { %2869 = vmatpush.msrb.mxu0 %v3539_v30 }
0x159d   :  { %v2471_v17 = vpop.f32.mrf.mxu3 }
0x159e   :  { %2797 = vmatpush.msra.mxu1 %v2524_v15  ;;  %v2472_v18 = vadd.f32 %v3647_v7, %v2471_v17  ;;  %v2549_v35 = vpop.f32.mrf.mxu2 }
0x159f   :  { %v2598_v22 = vpop.f32.mrf.mxu0  ;;  %v2550_v31 = vadd.f32 %v3648_v20, %v2549_v35 }
0x15a0   :  { %v2605_v19 = vmul.f32 0.25, %v2472_v18  ;;  %v2599_v27 = vadd.f32 %v3649_v24, %v2598_v22 }
0x15a1   :  { %v2607_v38 = vmul.f32 0.25, %v2550_v31  ;;  %v3651_v31 = vld [vmem:[%s5119_s13 + $0x3] ss:$0 sm:$0xff] }
0x15a2   :  { %3559 = vmatmul.msk.f32.vlgmr.msrb.gmra.mxu1 %vm411_vm10, %v2605_v19 }
0x15a5   :  { %v2572_v25 = vpop.f32.mrf.mxu3 }
0x15a6   :  { %v2573_v26 = vadd.f32 %v3650_v23, %v2572_v25  ;;  %v3542_v25 = vld [vmem:[%s5118_s12 + $0x78] sm:$0xff] }
0x15a7   :  { %v2601_v29 = vpop.f32.mrf.mxu0  ;;  %2902 = vmatpush.msrb.mxu1 %v3542_v25 }
0x15a8   :  { %3560 = vmatpush.xpose.msk.msrb.mxu2 %vm411_vm10, %v2573_v26  ;;  %v2602_v34 = vadd.f32 %v3649_v24, %v2601_v29 }
0x15ab   :  { %3561 = vmatmul.msk.f32.vlgmr.msrb.gmra.mxu2 %vm411_vm10, %v2606_v28 }
0x15ac   :  { %2820 = vmatpush.msra.mxu2 %v2599_v27  ;;  %v3541_v27 = vld [vmem:[%s5118_s12 + $0x70] sm:$0xff]  ;;  %s3293_s12 = sshll.u32 %s5130_s24, 4  ;;  %s3294_s12 = int_to_ptr.hbm [resolvable:$true] %s3293_s12 }
0x15ad   :  { %v2575_v32 = vpop.f32.mrf.mxu3  ;;  %2903 = vmatpush.msrb.mxu1 %v3541_v27 }
0x15ae   :  { %v2576_v33 = vadd.f32 %v3650_v23, %v2575_v32 }
0x15b0   :  { %3562 = vmatpush.xpose.msk.msra.mxu3 %vm411_vm10, %v2576_v33 }
0x15b3   :  { %3563 = vmatmul.msk.f32.vlgmr.msra.gmra.mxu3 %vm411_vm10, %v2607_v38 }
0x15b4   :  { %2843 = vmatpush.msrb.mxu3 %v2602_v34 }
0x160b   :  { %v2631_v39 = vpop.f32.mrf.mxu1 }
0x160c   :  { %v2632_v40 = vadd.f32 %v2631_v39, %v4161_v11 }
0x160e   :  { %v2712_v41 = vsel %vm516_vm11, %v2632_v40, -inf }
0x160f   :  { %2713 = vmax.xlane.f32.xlu0 %v2712_v41 }
0x161f   :  { %v2657_v47 = vpop.f32.mrf.mxu1 }
0x1620   :  { %v2658_v48 = vadd.f32 %v2657_v47, %v4165_v16 }
0x1622   :  { %v2715_v53 = vsel %vm516_vm11, %v2658_v48, -inf }
0x162e   :  { %v2683_v43 = vpop.f32.mrf.mxu2 }
0x162f   :  { %v2684_v45 = vadd.f32 %v2683_v43, %v4161_v11 }
0x1631   :  { %v2718_v46 = vsel %vm516_vm11, %v2684_v45, -inf }
0x1632   :  { %2719 = vmax.xlane.f32.xlu2 %v2718_v46 }
0x1636   :  { %v2709_v50 = vpop.f32.mrf.mxu3 }
0x1637   :  { %v2710_v51 = vadd.f32 %v2709_v50, %v4165_v16 }
0x1639   :  { %v2721_v52 = vsel %vm516_vm11, %v2710_v51, -inf }
0x163a   :  { %2722 = vmax.xlane.f32.xlu1 %v2721_v52  ;;  %2716 = vmax.xlane.f32.xlu2 %v2715_v53 }
0x1682   :  { %v2714_v55 = vpop.xlane.xlu0 %2713 }
0x1683   :  { %v2724_v56 = vsub.f32 %v2632_v40, %v2714_v55 }
0x1685   :  { %v2728_v57 = vmul.f32 1.442695, %v2724_v56 }
0x1687   :  { %3749 = vpow2.f32 %v2728_v57 }
0x168d   :  { %v3750_v11 = vpop.eup %3749 }
0x168e   :  { %v2736_v58 = vsel %vm516_vm11, %v3750_v11, 0.0 }
0x168f   :  { %2737 = vadd.xlane.f32.xlu1 %v2736_v58 }
0x16a5   :  { %v2720_v59 = vpop.xlane.xlu2 %2719 }
0x16a6   :  { %v2726_v60 = vsub.f32 %v2684_v45, %v2720_v59 }
0x16a8   :  { %v2732_v61 = vmul.f32 1.442695, %v2726_v60  ;;  %v3577_v60 = vld [vmem:[%s5122_s16 + $0x78] sm:$0xff] }
0x16a9   :  { %3001 = vmatpush.msrb.mxu2 %v3577_v60 }
0x16aa   :  { %3751 = vpow2.f32 %v2732_v61  ;;  %v3576_v61 = vld [vmem:[%s5122_s16 + $0x70] sm:$0xff] }
0x16ab   :  { %3002 = vmatpush.msrb.mxu2 %v3576_v61 }
0x16ad   :  { %v2723_v62 = vpop.xlane.xlu1 %2722  ;;  %v2717_v16 = vpop.xlane.xlu2 %2716 }
0x16ae   :  { %v2727_v63 = vsub.f32 %v2710_v51, %v2723_v62  ;;  %v2725_v1 = vsub.f32 %v2658_v48, %v2717_v16  ;;  %v3575_v62 = vld [vmem:[%s5122_s16 + $0x68] sm:$0xff]  ;;  %v3574_v16 = vld [vmem:[%s5122_s16 + $0x60] sm:$0xff] }
0x16af   :  { %3003 = vmatpush.msrb.mxu2 %v3575_v62 }
0x16b0   :  { %v3752_v2 = vpop.eup %3751  ;;  %v2734_v3 = vmul.f32 1.442695, %v2727_v63  ;;  %v2730_v4 = vmul.f32 1.442695, %v2725_v1 }
0x16b1   :  { %v2742_v5 = vsel %vm516_vm11, %v3752_v2, 0.0  ;;  %3004 = vmatpush.msrb.mxu2 %v3574_v16 }
0x16b2   :  { %3753 = vpow2.f32 %v2734_v3  ;;  %2743 = vadd.xlane.f32.xlu0 %v2742_v5 }
0x16b3   :  { %3755 = vpow2.f32 %v2730_v4 }
0x16b8   :  { %v3754_v6 = vpop.eup %3753 }
0x16b9   :  { %v3756_v7 = vpop.eup %3755  ;;  %v2745_v8 = vsel %vm516_vm11, %v3754_v6, 0.0 }
0x16ba   :  { %2746 = vadd.xlane.f32.xlu2 %v2745_v8  ;;  %v2739_v9 = vsel %vm516_vm11, %v3756_v7, 0.0 }
0x16bb   :  { %2740 = vadd.xlane.f32.xlu0 %v2739_v9 }
0x1702   :  { %v2738_v10 = vpop.xlane.xlu1 %2737 }
0x1703   :  { %3757 = vrcp.f32 %v2738_v10 }
0x1709   :  { %v3758_v12 = vpop.eup %3757 }
0x170a   :  { %v2752_v13 = vmul.f32 %v3758_v12, %v3750_v11 }
0x170c   :  { %3564 = vmatmul.msk.f32.vlgmr.msra.gmra.mxu0 %vm516_vm11, %v2752_v13 }
0x1725   :  { %v2744_v15 = vpop.xlane.xlu0 %2743 }
0x1726   :  { %3759 = vrcp.f32 %v2744_v15  ;;  %v3652_v15 = vld [vmem:[%s5120_s14 + $0x3] ss:$0 sm:$0xff] }
0x172c   :  { %v3760_v17 = vpop.eup %3759 }
0x172d   :  { %v2754_v18 = vmul.f32 %v3760_v17, %v3752_v2  ;;  %v2747_v19 = vpop.xlane.xlu2 %2746 }
0x172e   :  { %v2741_v20 = vpop.xlane.xlu0 %2740  ;;  %3761 = vrcp.f32 %v2747_v19  ;;  %v3653_v19 = vld [vmem:[%s5121_s15 + $0x3] ss:$0 sm:$0xff] }
0x172f   :  { %3763 = vrcp.f32 %v2741_v20  ;;  %3566 = vmatmul.msk.f32.vlgmr.msra.gmra.mxu2 %vm516_vm11, %v2754_v18 }
0x1734   :  { %v3762_v21 = vpop.eup %3761 }
0x1735   :  { %v3764_v22 = vpop.eup %3763  ;;  %v2755_v23 = vmul.f32 %v3762_v21, %v3754_v6 }
0x1736   :  { %v2753_v24 = vmul.f32 %v3764_v22, %v3756_v7 }
0x1737   :  { %3567 = vmatmul.msk.f32.vlgmr.msrb.gmra.mxu3 %vm516_vm11, %v2755_v23 }
0x1738   :  { %3565 = vmatmul.msk.f32.vlgmr.msra.gmra.mxu1 %vm516_vm11, %v2753_v24 }
0x1789   :  { %v2776_v26 = vpop.f32.mrf.mxu0 }
0x178a   :  { %3568 = vmatmul.msk.f32.vlgmr.msrb.gmra.mxu0 %vm411_vm10, %v2776_v26 }
0x17b2   :  { %v2822_v28 = vpop.f32.mrf.mxu2 }
0x17b3   :  { %3570 = vmatmul.msk.f32.vlgmr.msrb.gmra.mxu1 %vm411_vm10, %v2822_v28 }
0x17b5   :  { %v2799_v35 = vpop.f32.mrf.mxu1 }
0x17b6   :  { %3569 = vmatmul.msk.f32.gmra.mxu0 %vm411_vm10, %v2799_v35  ;;  %v3588_v35 = vld [vmem:[%s5124_s18 + $0xf8] sm:$0xff] }
0x17b7   :  { %3058 = vmatpush.msra.mxu3 %v3588_v35  ;;  %v3172_v35 = vld [vmem:[%s5128_s22 + $0x70] sm:$0xff] }
0x17ba   :  { %v2845_v29 = vpop.f32.mrf.mxu3 }
0x17bb   :  { %3571 = vmatmul.msk.f32.gmra.mxu1 %vm411_vm10, %v2845_v29  ;;  %v3587_v29 = vld [vmem:[%s5124_s18 + $0xf0] sm:$0xff] }
0x17bc   :  { %3059 = vmatpush.msra.mxu3 %v3587_v29 }
0x1807   :  { %v2871_v32 = vpop.f32.mrf.mxu0 }
0x1808   :  { %v2880_v33 = vadd.f32 %v3651_v31, %v2871_v32  ;;  %v3585_v32 = vld [vmem:[%s5124_s18 + $0xe0] sm:$0xff] }
0x1830   :  { %v2905_v34 = vpop.f32.mrf.mxu1 }
0x1831   :  { %v2911_v38 = vadd.f32 %v2905_v34, %v2880_v33  ;;  %v3584_v33 = vld [vmem:[%s5124_s18 + $0xd8] sm:$0xff]  ;;  %v3583_v34 = vld [vmem:[%s5124_s18 + $0xd0] sm:$0xff] }
0x1833   :  { %v2913_v39 = vadd.f32 %v2911_v38, %v4851_v54  ;;  %v2874_v40 = vpop.f32.mrf.mxu0  ;;  %v3582_v38 = vld [vmem:[%s5124_s18 + $0xc8] sm:$0xff] }
0x1834   :  { %v2881_v43 = vadd.f32 %v3651_v31, %v2874_v40  ;;  %v3586_v31 = vld [vmem:[%s5124_s18 + $0xe8] sm:$0xff]  ;;  %v3654_v40 = vld [vmem:[%s5123_s17 + $0x3] ss:$0 sm:$0xff] }
0x1835   :  { %v2919_v41 = vsel %vm138_vm2, %v2913_v39, 0.0  ;;  %3060 = vmatpush.msra.mxu3 %v3586_v31 }
0x1836   :  { %2920 = vadd.xlane.f32.xlu1 %v2919_v41 }
0x1837   :  { %3061 = vmatpush.msra.mxu3 %v3585_v32 }
0x1838   :  { %v2908_v45 = vpop.f32.mrf.mxu1 }
0x1839   :  { %v2912_v46 = vadd.f32 %v2908_v45, %v2881_v43  ;;  %3062 = vmatpush.msra.mxu3 %v3584_v33  ;;  %v3170_v33 = vld [vmem:[%s5128_s22 + $0x60] sm:$0xff] }
0x183b   :  { %v2914_v47 = vadd.f32 %v2912_v46, %v4862_v0  ;;  %3063 = vmatpush.msra.mxu3 %v3583_v34 }
0x183d   :  { %v2922_v48 = vsel %vm138_vm2, %v2914_v47, 0.0  ;;  %3064 = vmatpush.msra.mxu3 %v3582_v38 }
0x183e   :  { %2923 = vadd.xlane.f32.xlu2 %v2922_v48 }
0x18a9   :  { %v2921_v50 = vpop.xlane.xlu1 %2920 }
0x18aa   :  { %v2925_v51 = vmul.f32 %v2921_v50, %v4008_v37 }
0x18ac   :  { %v2927_v52 = vsub.f32 %v2913_v39, %v2925_v51  ;;  %v3581_v39 = vld [vmem:[%s5124_s18 + $0xc0] sm:$0xff] }
0x18ad   :  { %3065 = vmatpush.msra.mxu3 %v3581_v39  ;;  %v3168_v39 = vld [vmem:[%s5128_s22 + $0x50] sm:$0xff] }
0x18ae   :  { %v2929_v53 = vmul.f32 %v2927_v52, %v2927_v52 }
0x18b0   :  { %v2931_v55 = vsel %vm138_vm2, %v2929_v53, 0.0 }
0x18b1   :  { %2932 = vadd.xlane.f32.xlu0 %v2931_v55  ;;  %v2924_v56 = vpop.xlane.xlu2 %2923 }
0x18b2   :  { %v2926_v57 = vmul.f32 %v2924_v56, %v4008_v37 }
0x18b4   :  { %v2928_v11 = vsub.f32 %v2914_v47, %v2926_v57 }
0x18b6   :  { %v2930_v58 = vmul.f32 %v2928_v11, %v2928_v11 }
0x18b8   :  { %v2934_v59 = vsel %vm138_vm2, %v2930_v58, 0.0 }
0x18b9   :  { %2935 = vadd.xlane.f32.xlu1 %v2934_v59 }
0x1924   :  { %v2933_v63 = vpop.xlane.xlu0 %2932 }
0x1925   :  { %v2937_v1 = vmul.f32 %v2933_v63, %v4008_v37 }
0x1927   :  { %v2939_v2 = vadd.f32 1e-05, %v2937_v1 }
0x1929   :  { %3765 = vrsqrt.f32 %v2939_v2  ;;  %vm2947_vm12 = vweird.f32 %v2939_v2 }
0x192c   :  { %v2936_v3 = vpop.xlane.xlu1 %2935 }
0x192d   :  { %v2938_v4 = vmul.f32 %v2936_v3, %v4008_v37 }
0x192f   :  { %v3766_v5 = vpop.eup %3765  ;;  %v2940_v6 = vadd.f32 1e-05, %v2938_v4 }
0x1930   :  { %v2942_v7 = vmul.f32 %v3766_v5, %v2939_v2  ;;  %vm2948_vm10 = vweird.f32 %v3766_v5  ;;  %v3655_v2 = vld [vmem:[%s5156_s2 + $0x3] ss:$0 sm:$0xff]  ;;  %s3819_s2 = smov 64  }
0x1931   :  { %3767 = vrsqrt.f32 %v2940_v6  ;;  %vm2949_vm13 = vmor %vm2947_vm12, %vm2948_vm10  ;;  %vm2957_vm15 = vweird.f32 %v2940_v6  ;;  %vm3156_vm10 = vcmask 785408   ;;  %vm3252_vm12 = vcmask 91200  }
0x1932   :  { %v2943_v8 = vmul.f32 %v3766_v5, %v2942_v7 }
0x1934   :  { %v2944_v9 = vmul.f32 0.5, %v2943_v8 }
0x1936   :  { %v2945_v10 = vsub.f32 1.5, %v2944_v9 }
0x1937   :  { %v3768_v12 = vpop.eup %3767 }
0x1938   :  { %v2946_v13 = vmul.f32 %v3766_v5, %v2945_v10  ;;  %v2952_v14 = vmul.f32 %v3768_v12, %v2940_v6  ;;  %vm2958_vm14 = vweird.f32 %v3768_v12 }
0x1939   :  { %vm2959_vm0 = vmor %vm2957_vm15, %vm2958_vm14  ;;  %vm3198_vm14 = vcmask 25600  }
0x193a   :  { %v2950_v17 = vsel %vm2949_vm13, %v3766_v5, %v2946_v13  ;;  %v2953_v18 = vmul.f32 %v3768_v12, %v2952_v14  ;;  %vm3223_vm13 = vcmask 58400  }
0x193b   :  { %v2961_v20 = vmul.f32 %v2950_v17, %v2927_v52 }
0x193c   :  { %v2954_v21 = vmul.f32 0.5, %v2953_v18 }
0x193d   :  { %v2966_v22 = vmul.f32 %v3652_v15, %v2961_v20 }
0x193e   :  { %v2955_v23 = vsub.f32 1.5, %v2954_v21 }
0x193f   :  { %v2971_v24 = vadd.f32 %v3653_v19, %v2966_v22 }
0x1940   :  { %v2956_v30 = vmul.f32 %v3768_v12, %v2955_v23 }
0x1941   :  { %3579 = vmatmul.msk.f32.vlgmr.msrb.gmra.mxu2 %vm138_vm2, %v2971_v24 }
0x1942   :  { %v2960_v25 = vsel %vm2959_vm0, %v3768_v12, %v2956_v30  ;;  %v3137_v12 = vrot.slane %v4615_v49, 7 }
0x1943   :  { %v2962_v26 = vmul.f32 %v2960_v25, %v2928_v11 }
0x1944   :  { %v3138_v13 = vsel %vm3134_vm1, %v3137_v12, %v4604_v44  ;;  %v3142_v44 = vrot.slane %v4862_v0, 7 }
0x1945   :  { %v2967_v27 = vmul.f32 %v3652_v15, %v2962_v26 }
0x1947   :  { %v2972_v28 = vadd.f32 %v3653_v19, %v2967_v27 }
0x1949   :  { %3580 = vmatmul.msk.f32.gmra.mxu2 %vm138_vm2, %v2972_v28 }
0x19c4   :  { %v3006_v41 = vpop.f32.mrf.mxu2 }
0x19c5   :  { %v3007_v43 = vadd.f32 %v3654_v40, %v3006_v41  ;;  %v3167_v41 = vld [vmem:[%s5128_s22 + $0x48] sm:$0xff] }
0x19c7   :  { %v3014_v45 = vmul.f32 0.044715, %v3007_v43  ;;  %v3012_v59 = vmul.f32 0.5, %v3007_v43 }
0x19c9   :  { %v3016_v46 = vmul.f32 %v3014_v45, %v3007_v43 }
0x19cb   :  { %v3018_v47 = vmul.f32 %v3016_v46, %v3007_v43  ;;  %v3166_v46 = vld [vmem:[%s5128_s22 + $0x40] sm:$0xff] }
0x19cc   :  { %v3009_v48 = vpop.f32.mrf.mxu2 }
0x19cd   :  { %v3020_v50 = vadd.f32 %v3018_v47, %v3007_v43  ;;  %v3010_v51 = vadd.f32 %v3654_v40, %v3009_v48 }
0x19cf   :  { %v3022_v52 = vmul.f32 0.7978846, %v3020_v50  ;;  %v3015_v53 = vmul.f32 0.044715, %v3010_v51  ;;  %v3013_v16 = vmul.f32 0.5, %v3010_v51  ;;  %v3165_v50 = vld [vmem:[%s5128_s22 + $0x38] sm:$0xff] }
0x19d1   :  { %3769 = vtanh.f32 %v3022_v52  ;;  %v3017_v55 = vmul.f32 %v3015_v53, %v3010_v51  ;;  %v3164_v52 = vld [vmem:[%s5128_s22 + $0x30] sm:$0xff] }
0x19d3   :  { %v3019_v56 = vmul.f32 %v3017_v55, %v3010_v51 }
0x19d5   :  { %v3021_v57 = vadd.f32 %v3019_v56, %v3010_v51  ;;  %v3163_v56 = vld [vmem:[%s5128_s22 + $0x28] sm:$0xff] }
0x19d7   :  { %v3770_v11 = vpop.eup %3769  ;;  %v3023_v58 = vmul.f32 0.7978846, %v3021_v57 }
0x19d8   :  { %v3026_v60 = vadd.f32 1.0, %v3770_v11  ;;  %v3162_v11 = vld [vmem:[%s5128_s22 + $0x20] sm:$0xff] }
0x19d9   :  { %3771 = vtanh.f32 %v3023_v58 }
0x19da   :  { %v3028_v61 = vmul.f32 %v3026_v60, %v3012_v59  ;;  %v3656_v59 = vld [vmem:[%s5126_s20 + $0x3] ss:$0 sm:$0xff] }
0x19dc   :  { %3590 = vmatmul.msk.f32.vlgmr.msra.gmra.mxu3 %vm843_vm3, %v3028_v61  ;;  %v3161_v61 = vld [vmem:[%s5128_s22 + $0x18] sm:$0xff] }
0x19df   :  { %v3772_v62 = vpop.eup %3771 }
0x19e0   :  { %v3027_v63 = vadd.f32 1.0, %v3772_v62 }
0x19e2   :  { %v3029_v1 = vmul.f32 %v3027_v63, %v3013_v16  ;;  %v3160_v16 = vld [vmem:[%s5128_s22 + $0x10] sm:$0xff] }
0x19e4   :  { %3591 = vmatmul.msk.f32.gmra.mxu3 %vm843_vm3, %v3029_v1 }
0x1a5f   :  { %v3067_v3 = vpop.f32.mrf.mxu3 }
0x1a60   :  { %v3068_v4 = vadd.f32 %v3655_v2, %v3067_v3  ;;  %v3159_v3 = vld [vmem:[%s5128_s22 + $0x8] sm:$0xff] }
0x1a62   :  { %v3073_v5 = vadd.f32 %v3068_v4, %v2971_v24  ;;  %v3143_v24 = vsel %vm3134_vm1, %v3142_v44, %v4851_v54  ;;  %v3171_v54 = vld [vmem:[%s5128_s22 + $0x68] sm:$0xff] }
0x1a64   :  { %v3079_v6 = vsel %vm138_vm2, %v3073_v5, 0.0 }
0x1a65   :  { %3080 = vadd.xlane.f32.xlu0 %v3079_v6 }
0x1a67   :  { %v3070_v7 = vpop.f32.mrf.mxu3 }
0x1a68   :  { %v3071_v8 = vadd.f32 %v3655_v2, %v3070_v7  ;;  %v3657_v2 = vld [vmem:[%s5127_s21 + $0x3] ss:$0 sm:$0xff] }
0x1a6a   :  { %v3074_v9 = vadd.f32 %v3071_v8, %v2972_v28  ;;  %v3173_v28 = vld [vmem:[%s5128_s22 + $0x78] sm:$0xff]  ;;  %v3158_v8 = vld [vmem:[%s5128_s22] sm:$0xff] }
0x1a6b   :  { %3178 = vmatpush.msra.mxu0 %v3173_v28 }
0x1a6c   :  { %v3082_v10 = vsel %vm138_vm2, %v3074_v9, 0.0 }
0x1a6d   :  { %3083 = vadd.xlane.f32.xlu2 %v3082_v10  ;;  %3179 = vmatpush.msra.mxu0 %v3172_v35 }
0x1a6f   :  { %3180 = vmatpush.msra.mxu0 %v3171_v54 }
0x1a71   :  { %3181 = vmatpush.msra.mxu0 %v3170_v33 }
0x1a79   :  { %3139 = vrot.lane.b32.xlu0 %v3138_v13, %s3818_s19 }
0x1ad8   :  { %v3081_v14 = vpop.xlane.xlu0 %3080 }
0x1ad9   :  { %v3085_v15 = vmul.f32 %v3081_v14, %v4008_v37 }
0x1adb   :  { %v3087_v17 = vsub.f32 %v3073_v5, %v3085_v15 }
0x1add   :  { %v3089_v18 = vmul.f32 %v3087_v17, %v3087_v17 }
0x1adf   :  { %v3091_v19 = vsel %vm138_vm2, %v3089_v18, 0.0 }
0x1ae0   :  { %3092 = vadd.xlane.f32.xlu2 %v3091_v19  ;;  %v3084_v20 = vpop.xlane.xlu2 %3083  ;;  %v3658_v19 = vld [vmem:[%s5129_s23] ss:$0 sm:$0xff]  ;;  %s3822_s23 = smov 124  }
0x1ae1   :  { %v3086_v21 = vmul.f32 %v3084_v20, %v4008_v37 }
0x1ae3   :  { %v3088_v22 = vsub.f32 %v3074_v9, %v3086_v21  ;;  %v3133_v9 = vrot.slane %v4368_v42, 7 }
0x1ae5   :  { %v3090_v23 = vmul.f32 %v3088_v22, %v3088_v22  ;;  %v3135_v13 = vsel %vm3134_vm1, %v3133_v9, %v4357_v36 }
0x1ae7   :  { %v3094_v49 = vsel %vm138_vm2, %v3090_v23, 0.0 }
0x1ae8   :  { %3095 = vadd.xlane.f32.xlu1 %v3094_v49 }
0x1aeb   :  { %v3140_v10 = vpop.permute.xlu0 %3139 }
0x1aec   :  { %v3154_v14 = vsel %vm138_vm2, %v3135_v13, %v3140_v10 }
0x1b01   :  { %3144 = vrot.lane.b32.xlu1 %v3143_v24, %s3819_s2 }
0x1b53   :  { %v3093_v30 = vpop.xlane.xlu2 %3092 }
0x1b54   :  { %v3097_v25 = vmul.f32 %v3093_v30, %v4008_v37 }
0x1b56   :  { %v3099_v26 = vadd.f32 1e-05, %v3097_v25 }
0x1b58   :  { %3773 = vrsqrt.f32 %v3099_v26  ;;  %vm3107_vm5 = vweird.f32 %v3099_v26 }
0x1b5b   :  { %v3096_v27 = vpop.xlane.xlu1 %3095 }
0x1b5c   :  { %v3098_v0 = vmul.f32 %v3096_v27, %v4008_v37  ;;  %v3169_v37 = vld [vmem:[%s5128_s22 + $0x58] sm:$0xff]  ;;  %s3821_s22 = smov 120  }
0x1b5d   :  { %3182 = vmatpush.msra.mxu0 %v3169_v37 }
0x1b5e   :  { %v3774_v29 = vpop.eup %3773  ;;  %v3100_v31 = vadd.f32 1e-05, %v3098_v0 }
0x1b5f   :  { %v3102_v32 = vmul.f32 %v3774_v29, %v3099_v26  ;;  %3183 = vmatpush.msra.mxu0 %v3168_v39  ;;  %vm3108_vm4 = vweird.f32 %v3774_v29 }
0x1b60   :  { %3775 = vrsqrt.f32 %v3100_v31  ;;  %vm3109_vm6 = vmor %vm3107_vm5, %vm3108_vm4  ;;  %vm3117_vm8 = vweird.f32 %v3100_v31 }
0x1b61   :  { %v3103_v34 = vmul.f32 %v3774_v29, %v3102_v32  ;;  %3184 = vmatpush.msra.mxu0 %v3167_v41 }
0x1b63   :  { %v3104_v38 = vmul.f32 0.5, %v3103_v34  ;;  %3185 = vmatpush.msra.mxu0 %v3166_v46 }
0x1b65   :  { %v3105_v40 = vsub.f32 1.5, %v3104_v38  ;;  %3186 = vmatpush.msra.mxu0 %v3165_v50 }
0x1b66   :  { %v3776_v43 = vpop.eup %3775 }
0x1b67   :  { %v3112_v45 = vmul.f32 %v3776_v43, %v3100_v31  ;;  %v3106_v47 = vmul.f32 %v3774_v29, %v3105_v40  ;;  %vm3118_vm7 = vweird.f32 %v3776_v43  ;;  %3187 = vmatpush.msra.mxu0 %v3164_v52 }
0x1b68   :  { %vm3119_vm9 = vmor %vm3117_vm8, %vm3118_vm7 }
0x1b69   :  { %v3113_v48 = vmul.f32 %v3776_v43, %v3112_v45  ;;  %v3110_v53 = vsel %vm3109_vm6, %v3774_v29, %v3106_v47  ;;  %3188 = vmatpush.msra.mxu0 %v3163_v56 }
0x1b6a   :  { %v3121_v58 = vmul.f32 %v3110_v53, %v3087_v17 }
0x1b6b   :  { %v3114_v51 = vmul.f32 0.5, %v3113_v48  ;;  %3189 = vmatpush.msra.mxu0 %v3162_v11 }
0x1b6c   :  { %v3126_v63 = vmul.f32 %v3656_v59, %v3121_v58 }
0x1b6d   :  { %v3115_v55 = vsub.f32 1.5, %v3114_v51  ;;  %3190 = vmatpush.msra.mxu0 %v3161_v61 }
0x1b6e   :  { %v3131_v5 = vadd.f32 %v3657_v2, %v3126_v63 }
0x1b6f   :  { %v3116_v57 = vmul.f32 %v3776_v43, %v3115_v55  ;;  %3191 = vmatpush.msra.mxu0 %v3160_v16 }
0x1b71   :  { %v3120_v60 = vsel %vm3119_vm9, %v3776_v43, %v3116_v57  ;;  %3192 = vmatpush.msra.mxu0 %v3159_v3 }
0x1b72   :  { %v3122_v62 = vmul.f32 %v3120_v60, %v3088_v22 }
0x1b73   :  { %3193 = vmatpush.msra.mxu0 %v3158_v8  ;;  %v3145_v12 = vpop.permute.xlu1 %3144 }
0x1b74   :  { %v3127_v1 = vmul.f32 %v3656_v59, %v3122_v62  ;;  %v3155_v15 = vsel %vm843_vm3, %v3154_v14, %v3145_v12 }
0x1b76   :  { %v3132_v4 = vadd.f32 %v3657_v2, %v3127_v1 }
0x1b78   :  { %v3149_v6 = vrot.slane %v3132_v4, 7 }
0x1b7a   :  { %v3150_v7 = vsel %vm3134_vm1, %v3149_v6, %v3131_v5 }
0x1b7b   :  { %3151 = vrot.lane.b32.xlu2 %v3150_v7, %s3820_s11 }
0x1bd5   :  { %v3152_v17 = vpop.permute.xlu2 %3151 }
0x1bd6   :  { %v3157_v18 = vsel %vm3156_vm10, %v3155_v15, %v3152_v17 }
0x1bd7   :  { %3194 = vmatmul.f32.vlgmr.msra.gmra.mxu0 %v3157_v18 }
0x1c54   :  { %v3195_v20 = vpop.f32.mrf.mxu0 }
0x1c55   :  { %v3196_v42 = vadd.f32 %v3658_v19, %v3195_v20 }
0x1c57   :  { %v3253_v21 = vsel %vm3252_vm12, %v3196_v42, -inf  ;;  %v3224_v22 = vsel %vm3223_vm13, %v3196_v42, -inf  ;;  %v3199_v36 = vsel %vm3198_vm14, %v3196_v42, -inf  ;;  %vm3281_vm12 = vcmask 31744  }
0x1c58   :  { %3254 = vmax.xlane.f32.xlu2 %v3253_v21  ;;  %3225 = vmax.xlane.f32.xlu0 %v3224_v22  ;;  %vm3284_vm13 = vcmask 91136  }
0x1c59   :  { %3200 = vmax.xlane.f32.xlu1 %v3199_v36 }
0x1ccb   :  { %v3255_v23 = vpop.xlane.xlu2 %3254  ;;  %v3226_v49 = vpop.xlane.xlu0 %3225 }
0x1ccc   :  { %v3256_v44 = vsub.f32 %v3196_v42, %v3255_v23  ;;  %v3227_v24 = vsub.f32 %v3196_v42, %v3226_v49  ;;  %v3201_v30 = vpop.xlane.xlu1 %3200 }
0x1ccd   :  { %v3202_v25 = vsub.f32 %v3196_v42, %v3201_v30 }
0x1cce   :  { %v3257_v26 = vmul.f32 1.442695, %v3256_v44  ;;  %v3228_v27 = vmul.f32 1.442695, %v3227_v24 }
0x1ccf   :  { %v3203_v28 = vmul.f32 1.442695, %v3202_v25 }
0x1cd0   :  { %3777 = vpow2.f32 %v3257_v26 }
0x1cd1   :  { %3779 = vpow2.f32 %v3228_v27 }
0x1cd2   :  { %3781 = vpow2.f32 %v3203_v28 }
0x1cd6   :  { %v5081_v35 = vpop.eup %3777 }
0x1cd7   :  { %v5083_v0 = vpop.eup %3779  ;;  %3260 = vrot.lane.b32.xlu2 %v5081_v35, %s3821_s22 }
0x1cd8   :  { %v5086_v54 = vpop.eup %3781  ;;  %3231 = vrot.lane.b32.xlu0 %v5083_v0, %s3822_s23 }
0x1cd9   :  { %v3205_v29 = vsel %vm3198_vm14, %v5086_v54, 0.0 }
0x1cda   :  { %3206 = vadd.xlane.f32.xlu1 %v3205_v29 }
0x1d31   :  { %v3261_v31 = vpop.permute.xlu2 %3260 }
0x1d32   :  { %v3263_v32 = vsel %vm3198_vm14, %v3261_v31, 0.0 }
0x1d33   :  { %3264 = vadd.xlane.f32.xlu0 %v3263_v32 }
0x1d4a   :  { %v3232_v33 = vpop.permute.xlu0 %3231 }
0x1d4b   :  { %v3234_v34 = vsel %vm3198_vm14, %v3232_v33, 0.0 }
0x1d4c   :  { %3235 = vadd.xlane.f32.xlu1 %v3234_v34 }
0x1d4d   :  { %v3207_v37 = vpop.xlane.xlu1 %3206 }
0x1d4e   :  { %3783 = vrcp.f32 %v3207_v37  ;;  %v3219_v55 = vand.u32 2147483648, %v3207_v37  ;;  %vm3213_vm15 = vweird.f32 %v3207_v37  ;;  %v3217_v57 = vand.u32 2147483647, %v3207_v37 }
0x1d50   :  { %v3220_v1 = vor.u32 1.1754944e-38, %v3219_v55  ;;  %vm3218_vm6 = vcmp.eq.f32.partialorder %v3217_v57, 8.507059e+37 }
0x1d54   :  { %v3784_v39 = vpop.eup %3783 }
0x1d55   :  { %v3209_v41 = vmul.f32 %v3784_v39, %v3207_v37  ;;  %vm3214_vm2 = vweird.f32 %v3784_v39 }
0x1d56   :  { %vm5093_vm0 = vmor %vm3213_vm15, %vm3214_vm2 }
0x1d57   :  { %v3210_v45 = vsub.f32 1.0, %v3209_v41 }
0x1d59   :  { %v3211_v48 = vmul.f32 %v3784_v39, %v3210_v45 }
0x1d5b   :  { %v3212_v52 = vadd.f32 %v3784_v39, %v3211_v48 }
0x1d5d   :  { %v3216_v62 = vsel %vm5093_vm0, %v3784_v39, %v3212_v52 }
0x1d5e   :  { %v3221_v5 = vsel %vm3218_vm6, %v3220_v1, %v3216_v62 }
0x1d5f   :  { %v3222_v12 = vmul.f32 %v5086_v54, %v3221_v5 }
0x1da6   :  { %v3265_v38 = vpop.xlane.xlu0 %3264 }
0x1da7   :  { %3785 = vrcp.f32 %v3265_v38  ;;  %v3277_v11 = vand.u32 2147483648, %v3265_v38  ;;  %vm3271_vm1 = vweird.f32 %v3265_v38  ;;  %v3275_v60 = vand.u32 2147483647, %v3265_v38 }
0x1da9   :  { %v3278_v3 = vor.u32 1.1754944e-38, %v3277_v11  ;;  %vm3276_vm8 = vcmp.eq.f32.partialorder %v3275_v60, 8.507059e+37 }
0x1dad   :  { %v3786_v40 = vpop.eup %3785 }
0x1dae   :  { %v3267_v43 = vmul.f32 %v3786_v40, %v3265_v38  ;;  %vm3272_vm3 = vweird.f32 %v3786_v40 }
0x1daf   :  { %vm3273_vm4 = vmor %vm3271_vm1, %vm3272_vm3 }
0x1db0   :  { %v3268_v47 = vsub.f32 1.0, %v3267_v43 }
0x1db2   :  { %v3269_v50 = vmul.f32 %v3786_v40, %v3268_v47 }
0x1db4   :  { %v3270_v56 = vadd.f32 %v3786_v40, %v3269_v50 }
0x1db6   :  { %v3274_v2 = vsel %vm3273_vm4, %v3786_v40, %v3270_v56 }
0x1db7   :  { %v3279_v7 = vsel %vm3276_vm8, %v3278_v3, %v3274_v2 }
0x1db8   :  { %v3280_v13 = vmul.f32 %v5081_v35, %v3279_v7 }
0x1dbf   :  { %v3236_v46 = vpop.xlane.xlu1 %3235 }
0x1dc0   :  { %3787 = vrcp.f32 %v3236_v46  ;;  %v3248_v61 = vand.u32 2147483648, %v3236_v46  ;;  %v3246_v63 = vand.u32 2147483647, %v3236_v46  ;;  %vm3242_vm7 = vweird.f32 %v3236_v46 }
0x1dc2   :  { %v3249_v6 = vor.u32 1.1754944e-38, %v3248_v61  ;;  %vm3247_vm10 = vcmp.eq.f32.partialorder %v3246_v63, 8.507059e+37 }
0x1dc6   :  { %v3788_v51 = vpop.eup %3787 }
0x1dc7   :  { %v3238_v53 = vmul.f32 %v3788_v51, %v3236_v46  ;;  %vm3243_vm5 = vweird.f32 %v3788_v51 }
0x1dc8   :  { %vm3244_vm9 = vmor %vm3242_vm7, %vm3243_vm5 }
0x1dc9   :  { %v3239_v58 = vsub.f32 1.0, %v3238_v53 }
0x1dcb   :  { %v3240_v16 = vmul.f32 %v3788_v51, %v3239_v58 }
0x1dcd   :  { %v3241_v4 = vadd.f32 %v3788_v51, %v3240_v16 }
0x1dcf   :  { %v3245_v8 = vsel %vm3244_vm9, %v3788_v51, %v3241_v4 }
0x1dd0   :  { %v3250_v9 = vsel %vm3247_vm10, %v3249_v6, %v3245_v8 }
0x1dd1   :  { %v3251_v10 = vmul.f32 %v5083_v0, %v3250_v9 }
0x1dd3   :  { %v3282_v14 = vsel %vm3281_vm12, %v3222_v12, %v3251_v10 }
0x1dd4   :  { %v3283_v15 = vsel %vm516_vm11, %v3282_v14, %v3280_v13 }
0x1dd5   :  { %3285 = vst.msk [vmem:[#allocation2] sm:$0x3] %vm3284_vm13, %v3283_v15 }
0x1dd6   :  { %3296 = dma.vmem_to_hbm [thread:$0]  %s3292_s28, 32, %s3294_s12, [#allocation3]  }
0x1dd7   :  { %3813 = dma.done.wait [#allocation3], 32  }
0x1dd8   :  { %3814 = vsyncadd [#allocation3], 4294967264 }
0x1dd9   :  { %3301 = vsyncpa [#allocation3], 1 }

</bundles_post_ra>
